<compile_context>
chip_gen: v7x
topology: tpu7x:2x2x1
jax: 0.10.0
libtpu: 0.0.40
codegen_flags: <defaults>
</compile_context>

<pallas_src>
import math
from functools import partial

import jax
import jax.numpy as jnp
from jax import lax
from jax.experimental import pallas as pl
from jax.experimental.pallas import tpu as pltpu


def _fused_block_kernel(xp00, xp01, xp10, xp11, w1_ref, b1_ref, w2_ref, b2_ref,
                        o_ref, yp_ref, *, H, W, C_in, C_mid, C_out, alpha):
    """Fused conv1(s=1)+LReLU -> conv2(s=2)+LReLU for one batch element.

    xp{qi}{qj} : (1, (H+2)//2, (W+2)//2, C_in)   parity phases of the padded input
    w1_ref     : (3, 3, C_in,  C_mid)            EqualLR-scaled, HWIO
    b1_ref     : (1, C_mid)
    w2_ref     : (3, 3, C_mid, C_out)
    b2_ref     : (1, C_out)
    o_ref      : (1, H//2, W//2, C_out)
    yp_ref     : (2, 2, (H+2)//2, (W+2)//2, C_mid) f32 scratch — parity phases of
                 the zero-padded conv1 output (zero halo kept around the interior).
    """
    Hh, Wh = H // 2, W // 2
    xp = ((xp00, xp01), (xp10, xp11))

    # Zero the scratch every step so the halo is valid regardless of which core
    # / grid step runs first (scratch persists across grid iterations).
    yp_ref[...] = jnp.zeros_like(yp_ref)

    w1 = w1_ref[...].astype(jnp.float32)
    b1 = b1_ref[...].astype(jnp.float32)

    # ---- conv1 (stride 1) + bias + LeakyReLU, computed per output parity phase.
    # Phase (pi, pj) of the padded intermediate y_pad: y_pad[2a+pi, 2b+pj].
    # Its interior (the actual conv1 output) is an (H/2, W/2) block starting at
    # (a0, b0) = (1-pi, 1-pj); the remaining border stays zero (padding of conv2).
    for pi in range(2):
        for pj in range(2):
            a0, b0 = 1 - pi, 1 - pj
            acc = jnp.zeros((Hh * Wh, C_mid), jnp.float32)
            for kh in range(3):
                for kw in range(3):
                    t = pi - 1 + kh          # row offset in padded-input coords
                    s = pj - 1 + kw
                    src = xp[t % 2][s % 2]   # which input parity phase
                    u0 = a0 + (t // 2)       # static, in-bounds start indices
                    v0 = b0 + (s // 2)
                    patch = src[0, u0:u0 + Hh, v0:v0 + Wh, :]
                    patch = patch.reshape(Hh * Wh, C_in).astype(jnp.float32)
                    acc = acc + jnp.dot(patch, w1[kh, kw],
                                        preferred_element_type=jnp.float32)
            yv = acc + b1
            yv = jnp.where(yv >= 0.0, yv, alpha * yv)            # LeakyReLU(0.2)
            yp_ref[pi, pj, a0:a0 + Hh, b0:b0 + Wh, :] = yv.reshape(Hh, Wh, C_mid)

    # ---- conv2 (stride 2) + bias + LeakyReLU.  Tap (kh, kw) of output (h2, w2)
    # reads y_pad[2*h2+kh, 2*w2+kw] = phase(kh%2, kw%2)[h2 + kh//2, w2 + kw//2],
    # i.e. a static unit-stride slice of the phase scratch (halo supplies pad=1).
    w2 = w2_ref[...].astype(jnp.float32)
    b2 = b2_ref[...].astype(jnp.float32)
    acc2 = jnp.zeros((Hh * Wh, C_out), jnp.float32)
    for kh in range(3):
        for kw in range(3):
            patch = yp_ref[kh % 2, kw % 2,
                           (kh // 2):(kh // 2) + Hh,
                           (kw // 2):(kw // 2) + Wh, :]
            acc2 = acc2 + jnp.dot(patch.reshape(Hh * Wh, C_mid), w2[kh, kw],
                                  preferred_element_type=jnp.float32)
    out = acc2 + b2
    out = jnp.where(out >= 0.0, out, alpha * out)
    o_ref[0] = out.reshape(Hh, Wh, C_out).astype(o_ref.dtype)


def encode_conv_block(x_nchw, w1, b1, w2, b2, *, padding=1, alpha=0.2):
    """EncodeConvBlock.forward.  x: (N, C_in, H, W) NCHW; weights OIHW.

    The InstanceNorm results are discarded in the original forward, so they are
    intentionally no-ops here.
    """
    N, C_in, H, W = x_nchw.shape
    C_mid, C_in_w, K, K2 = w1.shape
    C_out, C_mid_w, K3, K4 = w2.shape
    assert C_in_w == C_in and C_mid_w == C_mid
    assert K == K2 == K3 == K4 == 3 and padding == 1, "block defaults: k=3, pad=1"
    # TODO(synk): odd spatial sizes need an extra halo row/col in the phase decomposition.
    assert H % 2 == 0 and W % 2 == 0, "fused kernel assumes even spatial dims"

    dt = x_nchw.dtype
    x = jnp.transpose(x_nchw, (0, 2, 3, 1))                       # NCHW -> NHWC
    x_pad = jnp.pad(x, ((0, 0), (1, 1), (1, 1), (0, 0)))
    PH, PW = (H + 2) // 2, (W + 2) // 2
    # 4 parity phases of the padded input (wrapper-side layout plumbing).
    phases = [x_pad[:, qi::2, qj::2, :] for qi in range(2) for qj in range(2)]

    # EqualLR: effective weight = weight_orig * sqrt(2 / fan_in), bias unscaled.
    w1h = (jnp.transpose(w1, (2, 3, 1, 0)).astype(jnp.float32)
           * math.sqrt(2.0 / (C_in * 9))).astype(dt)              # HWIO
    w2h = (jnp.transpose(w2, (2, 3, 1, 0)).astype(jnp.float32)
           * math.sqrt(2.0 / (C_mid * 9))).astype(dt)
    b1h = b1.reshape(1, C_mid).astype(dt)
    b2h = b2.reshape(1, C_out).astype(dt)

    H2, W2 = H // 2, W // 2
    kernel = partial(_fused_block_kernel, H=H, W=W, C_in=C_in, C_mid=C_mid,
                     C_out=C_out, alpha=alpha)

    phase_spec = pl.BlockSpec((1, PH, PW, C_in), lambda n: (n, 0, 0, 0))
    out = pl.pallas_call(
        kernel,
        out_shape=jax.ShapeDtypeStruct((N, H2, W2, C_out), dt),
        grid=(N,),
        in_specs=[phase_spec] * 4 + [
            pl.BlockSpec((3, 3, C_in, C_mid), lambda n: (0, 0, 0, 0)),
            pl.BlockSpec((1, C_mid), lambda n: (0, 0)),
            pl.BlockSpec((3, 3, C_mid, C_out), lambda n: (0, 0, 0, 0)),
            pl.BlockSpec((1, C_out), lambda n: (0, 0)),
        ],
        out_specs=pl.BlockSpec((1, H2, W2, C_out), lambda n: (n, 0, 0, 0)),
        scratch_shapes=[pltpu.VMEM((2, 2, PH, PW, C_mid), jnp.float32)],
        compiler_params=pltpu.CompilerParams(dimension_semantics=("parallel",)),
    )(*phases, w1h, b1h, w2h, b2h)

    return jnp.transpose(out, (0, 3, 1, 2))                       # NHWC -> NCHW


if __name__ == "__main__":
    key = jax.random.PRNGKey(0)
    k_x, k_w1, k_b1, k_w2, k_b2 = jax.random.split(key, 5)

    N, C_in, C_out, H, W = 2, 4, 8, 16, 16
    x = jax.random.normal(k_x, (N, C_in, H, W), dtype=jnp.float32)
    # EqualConv2d init: weight ~ N(0,1) (EqualLR scale applied in the wrapper);
    # PyTorch inits bias to zero -- use small random values so the bias path is
    # actually exercised.
    w1 = jax.random.normal(k_w1, (C_out, C_in, 3, 3), dtype=jnp.float32)
    b1 = 0.1 * jax.random.normal(k_b1, (C_out,), dtype=jnp.float32)
    w2 = jax.random.normal(k_w2, (C_out, C_out, 3, 3), dtype=jnp.float32)
    b2 = 0.1 * jax.random.normal(k_b2, (C_out,), dtype=jnp.float32)

    out = encode_conv_block(x, w1, b1, w2, b2)
    out = jax.block_until_ready(out)

    # Pure-JAX reference (same EqualLR scaling; the InstanceNorms are no-ops).
    def ref_forward(x, w1, b1, w2, b2):
        def eq_conv(xx, w, b, stride):
            scale = math.sqrt(2.0 / (w.shape[1] * w.shape[2] * w.shape[3]))
            y = lax.conv_general_dilated(
                xx, w * scale, (stride, stride), [(1, 1), (1, 1)],
                dimension_numbers=("NCHW", "OIHW", "NCHW"),
                precision=lax.Precision.HIGHEST)
            return y + b.reshape(1, -1, 1, 1)
        y = eq_conv(x, w1, b1, 1)
        y = jnp.where(y >= 0, y, 0.2 * y)
        z = eq_conv(y, w2, b2, 2)
        z = jnp.where(z >= 0, z, 0.2 * z)
        return z

    ref = ref_forward(x, w1, b1, w2, b2)

    assert out.shape == (N, C_out, H // 2, W // 2), out.shape
    err = float(jnp.max(jnp.abs(out - ref)))
    assert jnp.allclose(out, ref, atol=5e-3, rtol=5e-3), err

    print("KERNEL_OK")
</pallas_src>

<mosaic_0001>
module attributes {stable_mosaic.version = 11 : i64} {
  func.func @_fused_block_kernel(%arg0: i32, %arg1: memref<1x9x9x4xf32, #tpu.memory_space<vmem>>, %arg2: memref<1x9x9x4xf32, #tpu.memory_space<vmem>>, %arg3: memref<1x9x9x4xf32, #tpu.memory_space<vmem>>, %arg4: memref<1x9x9x4xf32, #tpu.memory_space<vmem>>, %arg5: memref<3x3x4x8xf32, #tpu.memory_space<vmem>>, %arg6: memref<1x8xf32, #tpu.memory_space<vmem>>, %arg7: memref<3x3x8x8xf32, #tpu.memory_space<vmem>>, %arg8: memref<1x8xf32, #tpu.memory_space<vmem>>, %arg9: memref<1x8x8x8xf32, #tpu.memory_space<vmem>>, %arg10: memref<2x2x9x9x8xf32, #tpu.memory_space<vmem>>) attributes {dimension_semantics = [#tpu.dimension_semantics<parallel>], iteration_bounds = array<i64: 2>, scalar_prefetch = 0 : i64, scratch_operands = 1 : i64, tpu.core_type = #tpu.core_type<tc>, window_params = [{transform_indices = @transform_0, window_bounds = array<i64: 1, 9, 9, 4>}, {transform_indices = @transform_1, window_bounds = array<i64: 1, 9, 9, 4>}, {transform_indices = @transform_2, window_bounds = array<i64: 1, 9, 9, 4>}, {transform_indices = @transform_3, window_bounds = array<i64: 1, 9, 9, 4>}, {pipeline_mode = #tpu.pipeline_mode<synchronous>, transform_indices = @transform_4, window_bounds = array<i64: 3, 3, 4, 8>}, {pipeline_mode = #tpu.pipeline_mode<synchronous>, transform_indices = @transform_5, window_bounds = array<i64: 1, 8>}, {pipeline_mode = #tpu.pipeline_mode<synchronous>, transform_indices = @transform_6, window_bounds = array<i64: 3, 3, 8, 8>}, {pipeline_mode = #tpu.pipeline_mode<synchronous>, transform_indices = @transform_7, window_bounds = array<i64: 1, 8>}, {transform_indices = @transform_8, window_bounds = array<i64: 1, 8, 8, 8>}]} {
    %cst = arith.constant 0.000000e+00 : f32
    %0 = vector.broadcast %cst : f32 to vector<2x2x9x9x8xf32>
    %c0 = arith.constant 0 : index
    %c0_0 = arith.constant 0 : index
    %c0_1 = arith.constant 0 : index
    %c0_2 = arith.constant 0 : index
    %c0_3 = arith.constant 0 : index
    %1 = vector.load %arg10[%c0, %c0_0, %c0_1, %c0_2, %c0_3] : memref<2x2x9x9x8xf32, #tpu.memory_space<vmem>>, vector<2x2x9x9x8xf32>
    tpu.vector_store %arg10[%c0, %c0_0, %c0_1, %c0_2, %c0_3], %0 {strides = array<i32>} : memref<2x2x9x9x8xf32, #tpu.memory_space<vmem>>, vector<2x2x9x9x8xf32>,
    %c0_4 = arith.constant 0 : index
    %c0_5 = arith.constant 0 : index
    %c0_6 = arith.constant 0 : index
    %c0_7 = arith.constant 0 : index
    %2 = vector.load %arg5[%c0_4, %c0_5, %c0_6, %c0_7] : memref<3x3x4x8xf32, #tpu.memory_space<vmem>>, vector<3x3x4x8xf32>
    %c0_8 = arith.constant 0 : index
    %c0_9 = arith.constant 0 : index
    %3 = vector.load %arg6[%c0_8, %c0_9] : memref<1x8xf32, #tpu.memory_space<vmem>>, vector<1x8xf32>
    %cst_10 = arith.constant 0.000000e+00 : f32
    %4 = vector.broadcast %cst_10 : f32 to vector<64x8xf32>
    %c0_11 = arith.constant 0 : index
    %c0_12 = arith.constant 0 : index
    %c0_13 = arith.constant 0 : index
    %c0_14 = arith.constant 0 : index
    %5 = vector.load %arg4[%c0_11, %c0_12, %c0_13, %c0_14] : memref<1x9x9x4xf32, #tpu.memory_space<vmem>>, vector<1x8x8x4xf32>
    %6 = vector.shape_cast %5 : vector<1x8x8x4xf32> to vector<8x8x4xf32>
    %7 = vector.shape_cast %6 : vector<8x8x4xf32> to vector<64x4xf32>
    %8 = vector.extract_strided_slice %2 {offsets = [0, 0, 0, 0], sizes = [1, 1, 4, 8], strides = [1, 1, 1, 1]} : vector<3x3x4x8xf32> to vector<1x1x4x8xf32>
    %9 = vector.shape_cast %8 : vector<1x1x4x8xf32> to vector<4x8xf32>
    %cst_15 = arith.constant dense<0.000000e+00> : vector<64x8xf32>
    %10 = tpu.matmul %7, %9, %cst_15 {dimension_numbers = #tpu.dot_dimension_numbers<[1], [0], [0], [1], [0, 0, 1, 1], [], []>} : vector<64x4xf32>, vector<4x8xf32>, vector<64x8xf32> -> vector<64x8xf32>
    %11 = arith.addf %4, %10 : vector<64x8xf32>
    %c0_16 = arith.constant 0 : index
    %c0_17 = arith.constant 0 : index
    %c1 = arith.constant 1 : index
    %c0_18 = arith.constant 0 : index
    %12 = vector.load %arg3[%c0_16, %c0_17, %c1, %c0_18] : memref<1x9x9x4xf32, #tpu.memory_space<vmem>>, vector<1x8x8x4xf32>
    %13 = vector.shape_cast %12 : vector<1x8x8x4xf32> to vector<8x8x4xf32>
    %14 = vector.shape_cast %13 : vector<8x8x4xf32> to vector<64x4xf32>
    %15 = vector.extract_strided_slice %2 {offsets = [0, 1, 0, 0], sizes = [1, 1, 4, 8], strides = [1, 1, 1, 1]} : vector<3x3x4x8xf32> to vector<1x1x4x8xf32>
    %16 = vector.shape_cast %15 : vector<1x1x4x8xf32> to vector<4x8xf32>
    %cst_19 = arith.constant dense<0.000000e+00> : vector<64x8xf32>
    %17 = tpu.matmul %14, %16, %cst_19 {dimension_numbers = #tpu.dot_dimension_numbers<[1], [0], [0], [1], [0, 0, 1, 1], [], []>} : vector<64x4xf32>, vector<4x8xf32>, vector<64x8xf32> -> vector<64x8xf32>
    %18 = arith.addf %11, %17 : vector<64x8xf32>
    %c0_20 = arith.constant 0 : index
    %c0_21 = arith.constant 0 : index
    %c1_22 = arith.constant 1 : index
    %c0_23 = arith.constant 0 : index
    %19 = vector.load %arg4[%c0_20, %c0_21, %c1_22, %c0_23] : memref<1x9x9x4xf32, #tpu.memory_space<vmem>>, vector<1x8x8x4xf32>
    %20 = vector.shape_cast %19 : vector<1x8x8x4xf32> to vector<8x8x4xf32>
    %21 = vector.shape_cast %20 : vector<8x8x4xf32> to vector<64x4xf32>
    %22 = vector.extract_strided_slice %2 {offsets = [0, 2, 0, 0], sizes = [1, 1, 4, 8], strides = [1, 1, 1, 1]} : vector<3x3x4x8xf32> to vector<1x1x4x8xf32>
    %23 = vector.shape_cast %22 : vector<1x1x4x8xf32> to vector<4x8xf32>
    %cst_24 = arith.constant dense<0.000000e+00> : vector<64x8xf32>
    %24 = tpu.matmul %21, %23, %cst_24 {dimension_numbers = #tpu.dot_dimension_numbers<[1], [0], [0], [1], [0, 0, 1, 1], [], []>} : vector<64x4xf32>, vector<4x8xf32>, vector<64x8xf32> -> vector<64x8xf32>
    %25 = arith.addf %18, %24 : vector<64x8xf32>
    %c0_25 = arith.constant 0 : index
    %c1_26 = arith.constant 1 : index
    %c0_27 = arith.constant 0 : index
    %c0_28 = arith.constant 0 : index
    %26 = vector.load %arg2[%c0_25, %c1_26, %c0_27, %c0_28] : memref<1x9x9x4xf32, #tpu.memory_space<vmem>>, vector<1x8x8x4xf32>
    %27 = vector.shape_cast %26 : vector<1x8x8x4xf32> to vector<8x8x4xf32>
    %28 = vector.shape_cast %27 : vector<8x8x4xf32> to vector<64x4xf32>
    %29 = vector.extract_strided_slice %2 {offsets = [1, 0, 0, 0], sizes = [1, 1, 4, 8], strides = [1, 1, 1, 1]} : vector<3x3x4x8xf32> to vector<1x1x4x8xf32>
    %30 = vector.shape_cast %29 : vector<1x1x4x8xf32> to vector<4x8xf32>
    %cst_29 = arith.constant dense<0.000000e+00> : vector<64x8xf32>
    %31 = tpu.matmul %28, %30, %cst_29 {dimension_numbers = #tpu.dot_dimension_numbers<[1], [0], [0], [1], [0, 0, 1, 1], [], []>} : vector<64x4xf32>, vector<4x8xf32>, vector<64x8xf32> -> vector<64x8xf32>
    %32 = arith.addf %25, %31 : vector<64x8xf32>
    %c0_30 = arith.constant 0 : index
    %c1_31 = arith.constant 1 : index
    %c1_32 = arith.constant 1 : index
    %c0_33 = arith.constant 0 : index
    %33 = vector.load %arg1[%c0_30, %c1_31, %c1_32, %c0_33] : memref<1x9x9x4xf32, #tpu.memory_space<vmem>>, vector<1x8x8x4xf32>
    %34 = vector.shape_cast %33 : vector<1x8x8x4xf32> to vector<8x8x4xf32>
    %35 = vector.shape_cast %34 : vector<8x8x4xf32> to vector<64x4xf32>
    %36 = vector.extract_strided_slice %2 {offsets = [1, 1, 0, 0], sizes = [1, 1, 4, 8], strides = [1, 1, 1, 1]} : vector<3x3x4x8xf32> to vector<1x1x4x8xf32>
    %37 = vector.shape_cast %36 : vector<1x1x4x8xf32> to vector<4x8xf32>
    %cst_34 = arith.constant dense<0.000000e+00> : vector<64x8xf32>
    %38 = tpu.matmul %35, %37, %cst_34 {dimension_numbers = #tpu.dot_dimension_numbers<[1], [0], [0], [1], [0, 0, 1, 1], [], []>} : vector<64x4xf32>, vector<4x8xf32>, vector<64x8xf32> -> vector<64x8xf32>
    %39 = arith.addf %32, %38 : vector<64x8xf32>
    %c0_35 = arith.constant 0 : index
    %c1_36 = arith.constant 1 : index
    %c1_37 = arith.constant 1 : index
    %c0_38 = arith.constant 0 : index
    %40 = vector.load %arg2[%c0_35, %c1_36, %c1_37, %c0_38] : memref<1x9x9x4xf32, #tpu.memory_space<vmem>>, vector<1x8x8x4xf32>
    %41 = vector.shape_cast %40 : vector<1x8x8x4xf32> to vector<8x8x4xf32>
    %42 = vector.shape_cast %41 : vector<8x8x4xf32> to vector<64x4xf32>
    %43 = vector.extract_strided_slice %2 {offsets = [1, 2, 0, 0], sizes = [1, 1, 4, 8], strides = [1, 1, 1, 1]} : vector<3x3x4x8xf32> to vector<1x1x4x8xf32>
    %44 = vector.shape_cast %43 : vector<1x1x4x8xf32> to vector<4x8xf32>
    %cst_39 = arith.constant dense<0.000000e+00> : vector<64x8xf32>
    %45 = tpu.matmul %42, %44, %cst_39 {dimension_numbers = #tpu.dot_dimension_numbers<[1], [0], [0], [1], [0, 0, 1, 1], [], []>} : vector<64x4xf32>, vector<4x8xf32>, vector<64x8xf32> -> vector<64x8xf32>
    %46 = arith.addf %39, %45 : vector<64x8xf32>
    %c0_40 = arith.constant 0 : index
    %c1_41 = arith.constant 1 : index
    %c0_42 = arith.constant 0 : index
    %c0_43 = arith.constant 0 : index
    %47 = vector.load %arg4[%c0_40, %c1_41, %c0_42, %c0_43] : memref<1x9x9x4xf32, #tpu.memory_space<vmem>>, vector<1x8x8x4xf32>
    %48 = vector.shape_cast %47 : vector<1x8x8x4xf32> to vector<8x8x4xf32>
    %49 = vector.shape_cast %48 : vector<8x8x4xf32> to vector<64x4xf32>
    %50 = vector.extract_strided_slice %2 {offsets = [2, 0, 0, 0], sizes = [1, 1, 4, 8], strides = [1, 1, 1, 1]} : vector<3x3x4x8xf32> to vector<1x1x4x8xf32>
    %51 = vector.shape_cast %50 : vector<1x1x4x8xf32> to vector<4x8xf32>
    %cst_44 = arith.constant dense<0.000000e+00> : vector<64x8xf32>
    %52 = tpu.matmul %49, %51, %cst_44 {dimension_numbers = #tpu.dot_dimension_numbers<[1], [0], [0], [1], [0, 0, 1, 1], [], []>} : vector<64x4xf32>, vector<4x8xf32>, vector<64x8xf32> -> vector<64x8xf32>
    %53 = arith.addf %46, %52 : vector<64x8xf32>
    %c0_45 = arith.constant 0 : index
    %c1_46 = arith.constant 1 : index
    %c1_47 = arith.constant 1 : index
    %c0_48 = arith.constant 0 : index
    %54 = vector.load %arg3[%c0_45, %c1_46, %c1_47, %c0_48] : memref<1x9x9x4xf32, #tpu.memory_space<vmem>>, vector<1x8x8x4xf32>
    %55 = vector.shape_cast %54 : vector<1x8x8x4xf32> to vector<8x8x4xf32>
    %56 = vector.shape_cast %55 : vector<8x8x4xf32> to vector<64x4xf32>
    %57 = vector.extract_strided_slice %2 {offsets = [2, 1, 0, 0], sizes = [1, 1, 4, 8], strides = [1, 1, 1, 1]} : vector<3x3x4x8xf32> to vector<1x1x4x8xf32>
    %58 = vector.shape_cast %57 : vector<1x1x4x8xf32> to vector<4x8xf32>
    %cst_49 = arith.constant dense<0.000000e+00> : vector<64x8xf32>
    %59 = tpu.matmul %56, %58, %cst_49 {dimension_numbers = #tpu.dot_dimension_numbers<[1], [0], [0], [1], [0, 0, 1, 1], [], []>} : vector<64x4xf32>, vector<4x8xf32>, vector<64x8xf32> -> vector<64x8xf32>
    %60 = arith.addf %53, %59 : vector<64x8xf32>
    %c0_50 = arith.constant 0 : index
    %c1_51 = arith.constant 1 : index
    %c1_52 = arith.constant 1 : index
    %c0_53 = arith.constant 0 : index
    %61 = vector.load %arg4[%c0_50, %c1_51, %c1_52, %c0_53] : memref<1x9x9x4xf32, #tpu.memory_space<vmem>>, vector<1x8x8x4xf32>
    %62 = vector.shape_cast %61 : vector<1x8x8x4xf32> to vector<8x8x4xf32>
    %63 = vector.shape_cast %62 : vector<8x8x4xf32> to vector<64x4xf32>
    %64 = vector.extract_strided_slice %2 {offsets = [2, 2, 0, 0], sizes = [1, 1, 4, 8], strides = [1, 1, 1, 1]} : vector<3x3x4x8xf32> to vector<1x1x4x8xf32>
    %65 = vector.shape_cast %64 : vector<1x1x4x8xf32> to vector<4x8xf32>
    %cst_54 = arith.constant dense<0.000000e+00> : vector<64x8xf32>
    %66 = tpu.matmul %63, %65, %cst_54 {dimension_numbers = #tpu.dot_dimension_numbers<[1], [0], [0], [1], [0, 0, 1, 1], [], []>} : vector<64x4xf32>, vector<4x8xf32>, vector<64x8xf32> -> vector<64x8xf32>
    %67 = arith.addf %60, %66 : vector<64x8xf32>
    %68 = vector.broadcast %3 : vector<1x8xf32> to vector<64x8xf32>
    %69 = arith.addf %67, %68 : vector<64x8xf32>
    %cst_55 = arith.constant 0.000000e+00 : f32
    %70 = vector.broadcast %cst_55 : f32 to vector<64x8xf32>
    %71 = arith.cmpf oge, %69, %70 : vector<64x8xf32>
    %cst_56 = arith.constant 2.000000e-01 : f32
    %72 = vector.broadcast %cst_56 : f32 to vector<64x8xf32>
    %73 = arith.mulf %72, %69 : vector<64x8xf32>
    %74 = arith.select %71, %69, %73 : vector<64x8xi1>, vector<64x8xf32>
    %75 = vector.shape_cast %74 : vector<64x8xf32> to vector<8x8x8xf32>
    %c0_57 = arith.constant 0 : index
    %c0_58 = arith.constant 0 : index
    %c1_59 = arith.constant 1 : index
    %c1_60 = arith.constant 1 : index
    %c0_61 = arith.constant 0 : index
    %76 = vector.load %arg10[%c0_57, %c0_58, %c1_59, %c1_60, %c0_61] : memref<2x2x9x9x8xf32, #tpu.memory_space<vmem>>, vector<1x1x8x8x8xf32>
    %77 = vector.shape_cast %76 : vector<1x1x8x8x8xf32> to vector<8x8x8xf32>
    %78 = vector.shape_cast %75 : vector<8x8x8xf32> to vector<1x1x8x8x8xf32>
    tpu.vector_store %arg10[%c0_57, %c0_58, %c1_59, %c1_60, %c0_61], %78 {strides = array<i32>} : memref<2x2x9x9x8xf32, #tpu.memory_space<vmem>>, vector<1x1x8x8x8xf32>,
    %cst_62 = arith.constant 0.000000e+00 : f32
    %79 = vector.broadcast %cst_62 : f32 to vector<64x8xf32>
    %c0_63 = arith.constant 0 : index
    %c0_64 = arith.constant 0 : index
    %c0_65 = arith.constant 0 : index
    %c0_66 = arith.constant 0 : index
    %80 = vector.load %arg3[%c0_63, %c0_64, %c0_65, %c0_66] : memref<1x9x9x4xf32, #tpu.memory_space<vmem>>, vector<1x8x8x4xf32>
    %81 = vector.shape_cast %80 : vector<1x8x8x4xf32> to vector<8x8x4xf32>
    %82 = vector.shape_cast %81 : vector<8x8x4xf32> to vector<64x4xf32>
    %83 = vector.extract_strided_slice %2 {offsets = [0, 0, 0, 0], sizes = [1, 1, 4, 8], strides = [1, 1, 1, 1]} : vector<3x3x4x8xf32> to vector<1x1x4x8xf32>
    %84 = vector.shape_cast %83 : vector<1x1x4x8xf32> to vector<4x8xf32>
    %cst_67 = arith.constant dense<0.000000e+00> : vector<64x8xf32>
    %85 = tpu.matmul %82, %84, %cst_67 {dimension_numbers = #tpu.dot_dimension_numbers<[1], [0], [0], [1], [0, 0, 1, 1], [], []>} : vector<64x4xf32>, vector<4x8xf32>, vector<64x8xf32> -> vector<64x8xf32>
    %86 = arith.addf %79, %85 : vector<64x8xf32>
    %c0_68 = arith.constant 0 : index
    %c0_69 = arith.constant 0 : index
    %c0_70 = arith.constant 0 : index
    %c0_71 = arith.constant 0 : index
    %87 = vector.load %arg4[%c0_68, %c0_69, %c0_70, %c0_71] : memref<1x9x9x4xf32, #tpu.memory_space<vmem>>, vector<1x8x8x4xf32>
    %88 = vector.shape_cast %87 : vector<1x8x8x4xf32> to vector<8x8x4xf32>
    %89 = vector.shape_cast %88 : vector<8x8x4xf32> to vector<64x4xf32>
    %90 = vector.extract_strided_slice %2 {offsets = [0, 1, 0, 0], sizes = [1, 1, 4, 8], strides = [1, 1, 1, 1]} : vector<3x3x4x8xf32> to vector<1x1x4x8xf32>
    %91 = vector.shape_cast %90 : vector<1x1x4x8xf32> to vector<4x8xf32>
    %cst_72 = arith.constant dense<0.000000e+00> : vector<64x8xf32>
    %92 = tpu.matmul %89, %91, %cst_72 {dimension_numbers = #tpu.dot_dimension_numbers<[1], [0], [0], [1], [0, 0, 1, 1], [], []>} : vector<64x4xf32>, vector<4x8xf32>, vector<64x8xf32> -> vector<64x8xf32>
    %93 = arith.addf %86, %92 : vector<64x8xf32>
    %c0_73 = arith.constant 0 : index
    %c0_74 = arith.constant 0 : index
    %c1_75 = arith.constant 1 : index
    %c0_76 = arith.constant 0 : index
    %94 = vector.load %arg3[%c0_73, %c0_74, %c1_75, %c0_76] : memref<1x9x9x4xf32, #tpu.memory_space<vmem>>, vector<1x8x8x4xf32>
    %95 = vector.shape_cast %94 : vector<1x8x8x4xf32> to vector<8x8x4xf32>
    %96 = vector.shape_cast %95 : vector<8x8x4xf32> to vector<64x4xf32>
    %97 = vector.extract_strided_slice %2 {offsets = [0, 2, 0, 0], sizes = [1, 1, 4, 8], strides = [1, 1, 1, 1]} : vector<3x3x4x8xf32> to vector<1x1x4x8xf32>
    %98 = vector.shape_cast %97 : vector<1x1x4x8xf32> to vector<4x8xf32>
    %cst_77 = arith.constant dense<0.000000e+00> : vector<64x8xf32>
    %99 = tpu.matmul %96, %98, %cst_77 {dimension_numbers = #tpu.dot_dimension_numbers<[1], [0], [0], [1], [0, 0, 1, 1], [], []>} : vector<64x4xf32>, vector<4x8xf32>, vector<64x8xf32> -> vector<64x8xf32>
    %100 = arith.addf %93, %99 : vector<64x8xf32>
    %c0_78 = arith.constant 0 : index
    %c1_79 = arith.constant 1 : index
    %c0_80 = arith.constant 0 : index
    %c0_81 = arith.constant 0 : index
    %101 = vector.load %arg1[%c0_78, %c1_79, %c0_80, %c0_81] : memref<1x9x9x4xf32, #tpu.memory_space<vmem>>, vector<1x8x8x4xf32>
    %102 = vector.shape_cast %101 : vector<1x8x8x4xf32> to vector<8x8x4xf32>
    %103 = vector.shape_cast %102 : vector<8x8x4xf32> to vector<64x4xf32>
    %104 = vector.extract_strided_slice %2 {offsets = [1, 0, 0, 0], sizes = [1, 1, 4, 8], strides = [1, 1, 1, 1]} : vector<3x3x4x8xf32> to vector<1x1x4x8xf32>
    %105 = vector.shape_cast %104 : vector<1x1x4x8xf32> to vector<4x8xf32>
    %cst_82 = arith.constant dense<0.000000e+00> : vector<64x8xf32>
    %106 = tpu.matmul %103, %105, %cst_82 {dimension_numbers = #tpu.dot_dimension_numbers<[1], [0], [0], [1], [0, 0, 1, 1], [], []>} : vector<64x4xf32>, vector<4x8xf32>, vector<64x8xf32> -> vector<64x8xf32>
    %107 = arith.addf %100, %106 : vector<64x8xf32>
    %c0_83 = arith.constant 0 : index
    %c1_84 = arith.constant 1 : index
    %c0_85 = arith.constant 0 : index
    %c0_86 = arith.constant 0 : index
    %108 = vector.load %arg2[%c0_83, %c1_84, %c0_85, %c0_86] : memref<1x9x9x4xf32, #tpu.memory_space<vmem>>, vector<1x8x8x4xf32>
    %109 = vector.shape_cast %108 : vector<1x8x8x4xf32> to vector<8x8x4xf32>
    %110 = vector.shape_cast %109 : vector<8x8x4xf32> to vector<64x4xf32>
    %111 = vector.extract_strided_slice %2 {offsets = [1, 1, 0, 0], sizes = [1, 1, 4, 8], strides = [1, 1, 1, 1]} : vector<3x3x4x8xf32> to vector<1x1x4x8xf32>
    %112 = vector.shape_cast %111 : vector<1x1x4x8xf32> to vector<4x8xf32>
    %cst_87 = arith.constant dense<0.000000e+00> : vector<64x8xf32>
    %113 = tpu.matmul %110, %112, %cst_87 {dimension_numbers = #tpu.dot_dimension_numbers<[1], [0], [0], [1], [0, 0, 1, 1], [], []>} : vector<64x4xf32>, vector<4x8xf32>, vector<64x8xf32> -> vector<64x8xf32>
    %114 = arith.addf %107, %113 : vector<64x8xf32>
    %c0_88 = arith.constant 0 : index
    %c1_89 = arith.constant 1 : index
    %c1_90 = arith.constant 1 : index
    %c0_91 = arith.constant 0 : index
    %115 = vector.load %arg1[%c0_88, %c1_89, %c1_90, %c0_91] : memref<1x9x9x4xf32, #tpu.memory_space<vmem>>, vector<1x8x8x4xf32>
    %116 = vector.shape_cast %115 : vector<1x8x8x4xf32> to vector<8x8x4xf32>
    %117 = vector.shape_cast %116 : vector<8x8x4xf32> to vector<64x4xf32>
    %118 = vector.extract_strided_slice %2 {offsets = [1, 2, 0, 0], sizes = [1, 1, 4, 8], strides = [1, 1, 1, 1]} : vector<3x3x4x8xf32> to vector<1x1x4x8xf32>
    %119 = vector.shape_cast %118 : vector<1x1x4x8xf32> to vector<4x8xf32>
    %cst_92 = arith.constant dense<0.000000e+00> : vector<64x8xf32>
    %120 = tpu.matmul %117, %119, %cst_92 {dimension_numbers = #tpu.dot_dimension_numbers<[1], [0], [0], [1], [0, 0, 1, 1], [], []>} : vector<64x4xf32>, vector<4x8xf32>, vector<64x8xf32> -> vector<64x8xf32>
    %121 = arith.addf %114, %120 : vector<64x8xf32>
    %c0_93 = arith.constant 0 : index
    %c1_94 = arith.constant 1 : index
    %c0_95 = arith.constant 0 : index
    %c0_96 = arith.constant 0 : index
    %122 = vector.load %arg3[%c0_93, %c1_94, %c0_95, %c0_96] : memref<1x9x9x4xf32, #tpu.memory_space<vmem>>, vector<1x8x8x4xf32>
    %123 = vector.shape_cast %122 : vector<1x8x8x4xf32> to vector<8x8x4xf32>
    %124 = vector.shape_cast %123 : vector<8x8x4xf32> to vector<64x4xf32>
    %125 = vector.extract_strided_slice %2 {offsets = [2, 0, 0, 0], sizes = [1, 1, 4, 8], strides = [1, 1, 1, 1]} : vector<3x3x4x8xf32> to vector<1x1x4x8xf32>
    %126 = vector.shape_cast %125 : vector<1x1x4x8xf32> to vector<4x8xf32>
    %cst_97 = arith.constant dense<0.000000e+00> : vector<64x8xf32>
    %127 = tpu.matmul %124, %126, %cst_97 {dimension_numbers = #tpu.dot_dimension_numbers<[1], [0], [0], [1], [0, 0, 1, 1], [], []>} : vector<64x4xf32>, vector<4x8xf32>, vector<64x8xf32> -> vector<64x8xf32>
    %128 = arith.addf %121, %127 : vector<64x8xf32>
    %c0_98 = arith.constant 0 : index
    %c1_99 = arith.constant 1 : index
    %c0_100 = arith.constant 0 : index
    %c0_101 = arith.constant 0 : index
    %129 = vector.load %arg4[%c0_98, %c1_99, %c0_100, %c0_101] : memref<1x9x9x4xf32, #tpu.memory_space<vmem>>, vector<1x8x8x4xf32>
    %130 = vector.shape_cast %129 : vector<1x8x8x4xf32> to vector<8x8x4xf32>
    %131 = vector.shape_cast %130 : vector<8x8x4xf32> to vector<64x4xf32>
    %132 = vector.extract_strided_slice %2 {offsets = [2, 1, 0, 0], sizes = [1, 1, 4, 8], strides = [1, 1, 1, 1]} : vector<3x3x4x8xf32> to vector<1x1x4x8xf32>
    %133 = vector.shape_cast %132 : vector<1x1x4x8xf32> to vector<4x8xf32>
    %cst_102 = arith.constant dense<0.000000e+00> : vector<64x8xf32>
    %134 = tpu.matmul %131, %133, %cst_102 {dimension_numbers = #tpu.dot_dimension_numbers<[1], [0], [0], [1], [0, 0, 1, 1], [], []>} : vector<64x4xf32>, vector<4x8xf32>, vector<64x8xf32> -> vector<64x8xf32>
    %135 = arith.addf %128, %134 : vector<64x8xf32>
    %c0_103 = arith.constant 0 : index
    %c1_104 = arith.constant 1 : index
    %c1_105 = arith.constant 1 : index
    %c0_106 = arith.constant 0 : index
    %136 = vector.load %arg3[%c0_103, %c1_104, %c1_105, %c0_106] : memref<1x9x9x4xf32, #tpu.memory_space<vmem>>, vector<1x8x8x4xf32>
    %137 = vector.shape_cast %136 : vector<1x8x8x4xf32> to vector<8x8x4xf32>
    %138 = vector.shape_cast %137 : vector<8x8x4xf32> to vector<64x4xf32>
    %139 = vector.extract_strided_slice %2 {offsets = [2, 2, 0, 0], sizes = [1, 1, 4, 8], strides = [1, 1, 1, 1]} : vector<3x3x4x8xf32> to vector<1x1x4x8xf32>
    %140 = vector.shape_cast %139 : vector<1x1x4x8xf32> to vector<4x8xf32>
    %cst_107 = arith.constant dense<0.000000e+00> : vector<64x8xf32>
    %141 = tpu.matmul %138, %140, %cst_107 {dimension_numbers = #tpu.dot_dimension_numbers<[1], [0], [0], [1], [0, 0, 1, 1], [], []>} : vector<64x4xf32>, vector<4x8xf32>, vector<64x8xf32> -> vector<64x8xf32>
    %142 = arith.addf %135, %141 : vector<64x8xf32>
    %143 = vector.broadcast %3 : vector<1x8xf32> to vector<64x8xf32>
    %144 = arith.addf %142, %143 : vector<64x8xf32>
    %cst_108 = arith.constant 0.000000e+00 : f32
    %145 = vector.broadcast %cst_108 : f32 to vector<64x8xf32>
    %146 = arith.cmpf oge, %144, %145 : vector<64x8xf32>
    %cst_109 = arith.constant 2.000000e-01 : f32
    %147 = vector.broadcast %cst_109 : f32 to vector<64x8xf32>
    %148 = arith.mulf %147, %144 : vector<64x8xf32>
    %149 = arith.select %146, %144, %148 : vector<64x8xi1>, vector<64x8xf32>
    %150 = vector.shape_cast %149 : vector<64x8xf32> to vector<8x8x8xf32>
    %c0_110 = arith.constant 0 : index
    %c1_111 = arith.constant 1 : index
    %c1_112 = arith.constant 1 : index
    %c0_113 = arith.constant 0 : index
    %c0_114 = arith.constant 0 : index
    %151 = vector.load %arg10[%c0_110, %c1_111, %c1_112, %c0_113, %c0_114] : memref<2x2x9x9x8xf32, #tpu.memory_space<vmem>>, vector<1x1x8x8x8xf32>
    %152 = vector.shape_cast %151 : vector<1x1x8x8x8xf32> to vector<8x8x8xf32>
    %153 = vector.shape_cast %150 : vector<8x8x8xf32> to vector<1x1x8x8x8xf32>
    tpu.vector_store %arg10[%c0_110, %c1_111, %c1_112, %c0_113, %c0_114], %153 {strides = array<i32>} : memref<2x2x9x9x8xf32, #tpu.memory_space<vmem>>, vector<1x1x8x8x8xf32>,
    %cst_115 = arith.constant 0.000000e+00 : f32
    %154 = vector.broadcast %cst_115 : f32 to vector<64x8xf32>
    %c0_116 = arith.constant 0 : index
    %c0_117 = arith.constant 0 : index
    %c0_118 = arith.constant 0 : index
    %c0_119 = arith.constant 0 : index
    %155 = vector.load %arg2[%c0_116, %c0_117, %c0_118, %c0_119] : memref<1x9x9x4xf32, #tpu.memory_space<vmem>>, vector<1x8x8x4xf32>
    %156 = vector.shape_cast %155 : vector<1x8x8x4xf32> to vector<8x8x4xf32>
    %157 = vector.shape_cast %156 : vector<8x8x4xf32> to vector<64x4xf32>
    %158 = vector.extract_strided_slice %2 {offsets = [0, 0, 0, 0], sizes = [1, 1, 4, 8], strides = [1, 1, 1, 1]} : vector<3x3x4x8xf32> to vector<1x1x4x8xf32>
    %159 = vector.shape_cast %158 : vector<1x1x4x8xf32> to vector<4x8xf32>
    %cst_120 = arith.constant dense<0.000000e+00> : vector<64x8xf32>
    %160 = tpu.matmul %157, %159, %cst_120 {dimension_numbers = #tpu.dot_dimension_numbers<[1], [0], [0], [1], [0, 0, 1, 1], [], []>} : vector<64x4xf32>, vector<4x8xf32>, vector<64x8xf32> -> vector<64x8xf32>
    %161 = arith.addf %154, %160 : vector<64x8xf32>
    %c0_121 = arith.constant 0 : index
    %c0_122 = arith.constant 0 : index
    %c1_123 = arith.constant 1 : index
    %c0_124 = arith.constant 0 : index
    %162 = vector.load %arg1[%c0_121, %c0_122, %c1_123, %c0_124] : memref<1x9x9x4xf32, #tpu.memory_space<vmem>>, vector<1x8x8x4xf32>
    %163 = vector.shape_cast %162 : vector<1x8x8x4xf32> to vector<8x8x4xf32>
    %164 = vector.shape_cast %163 : vector<8x8x4xf32> to vector<64x4xf32>
    %165 = vector.extract_strided_slice %2 {offsets = [0, 1, 0, 0], sizes = [1, 1, 4, 8], strides = [1, 1, 1, 1]} : vector<3x3x4x8xf32> to vector<1x1x4x8xf32>
    %166 = vector.shape_cast %165 : vector<1x1x4x8xf32> to vector<4x8xf32>
    %cst_125 = arith.constant dense<0.000000e+00> : vector<64x8xf32>
    %167 = tpu.matmul %164, %166, %cst_125 {dimension_numbers = #tpu.dot_dimension_numbers<[1], [0], [0], [1], [0, 0, 1, 1], [], []>} : vector<64x4xf32>, vector<4x8xf32>, vector<64x8xf32> -> vector<64x8xf32>
    %168 = arith.addf %161, %167 : vector<64x8xf32>
    %c0_126 = arith.constant 0 : index
    %c0_127 = arith.constant 0 : index
    %c1_128 = arith.constant 1 : index
    %c0_129 = arith.constant 0 : index
    %169 = vector.load %arg2[%c0_126, %c0_127, %c1_128, %c0_129] : memref<1x9x9x4xf32, #tpu.memory_space<vmem>>, vector<1x8x8x4xf32>
    %170 = vector.shape_cast %169 : vector<1x8x8x4xf32> to vector<8x8x4xf32>
    %171 = vector.shape_cast %170 : vector<8x8x4xf32> to vector<64x4xf32>
    %172 = vector.extract_strided_slice %2 {offsets = [0, 2, 0, 0], sizes = [1, 1, 4, 8], strides = [1, 1, 1, 1]} : vector<3x3x4x8xf32> to vector<1x1x4x8xf32>
    %173 = vector.shape_cast %172 : vector<1x1x4x8xf32> to vector<4x8xf32>
    %cst_130 = arith.constant dense<0.000000e+00> : vector<64x8xf32>
    %174 = tpu.matmul %171, %173, %cst_130 {dimension_numbers = #tpu.dot_dimension_numbers<[1], [0], [0], [1], [0, 0, 1, 1], [], []>} : vector<64x4xf32>, vector<4x8xf32>, vector<64x8xf32> -> vector<64x8xf32>
    %175 = arith.addf %168, %174 : vector<64x8xf32>
    %c0_131 = arith.constant 0 : index
    %c0_132 = arith.constant 0 : index
    %c0_133 = arith.constant 0 : index
    %c0_134 = arith.constant 0 : index
    %176 = vector.load %arg4[%c0_131, %c0_132, %c0_133, %c0_134] : memref<1x9x9x4xf32, #tpu.memory_space<vmem>>, vector<1x8x8x4xf32>
    %177 = vector.shape_cast %176 : vector<1x8x8x4xf32> to vector<8x8x4xf32>
    %178 = vector.shape_cast %177 : vector<8x8x4xf32> to vector<64x4xf32>
    %179 = vector.extract_strided_slice %2 {offsets = [1, 0, 0, 0], sizes = [1, 1, 4, 8], strides = [1, 1, 1, 1]} : vector<3x3x4x8xf32> to vector<1x1x4x8xf32>
    %180 = vector.shape_cast %179 : vector<1x1x4x8xf32> to vector<4x8xf32>
    %cst_135 = arith.constant dense<0.000000e+00> : vector<64x8xf32>
    %181 = tpu.matmul %178, %180, %cst_135 {dimension_numbers = #tpu.dot_dimension_numbers<[1], [0], [0], [1], [0, 0, 1, 1], [], []>} : vector<64x4xf32>, vector<4x8xf32>, vector<64x8xf32> -> vector<64x8xf32>
    %182 = arith.addf %175, %181 : vector<64x8xf32>
    %c0_136 = arith.constant 0 : index
    %c0_137 = arith.constant 0 : index
    %c1_138 = arith.constant 1 : index
    %c0_139 = arith.constant 0 : index
    %183 = vector.load %arg3[%c0_136, %c0_137, %c1_138, %c0_139] : memref<1x9x9x4xf32, #tpu.memory_space<vmem>>, vector<1x8x8x4xf32>
    %184 = vector.shape_cast %183 : vector<1x8x8x4xf32> to vector<8x8x4xf32>
    %185 = vector.shape_cast %184 : vector<8x8x4xf32> to vector<64x4xf32>
    %186 = vector.extract_strided_slice %2 {offsets = [1, 1, 0, 0], sizes = [1, 1, 4, 8], strides = [1, 1, 1, 1]} : vector<3x3x4x8xf32> to vector<1x1x4x8xf32>
    %187 = vector.shape_cast %186 : vector<1x1x4x8xf32> to vector<4x8xf32>
    %cst_140 = arith.constant dense<0.000000e+00> : vector<64x8xf32>
    %188 = tpu.matmul %185, %187, %cst_140 {dimension_numbers = #tpu.dot_dimension_numbers<[1], [0], [0], [1], [0, 0, 1, 1], [], []>} : vector<64x4xf32>, vector<4x8xf32>, vector<64x8xf32> -> vector<64x8xf32>
    %189 = arith.addf %182, %188 : vector<64x8xf32>
    %c0_141 = arith.constant 0 : index
    %c0_142 = arith.constant 0 : index
    %c1_143 = arith.constant 1 : index
    %c0_144 = arith.constant 0 : index
    %190 = vector.load %arg4[%c0_141, %c0_142, %c1_143, %c0_144] : memref<1x9x9x4xf32, #tpu.memory_space<vmem>>, vector<1x8x8x4xf32>
    %191 = vector.shape_cast %190 : vector<1x8x8x4xf32> to vector<8x8x4xf32>
    %192 = vector.shape_cast %191 : vector<8x8x4xf32> to vector<64x4xf32>
    %193 = vector.extract_strided_slice %2 {offsets = [1, 2, 0, 0], sizes = [1, 1, 4, 8], strides = [1, 1, 1, 1]} : vector<3x3x4x8xf32> to vector<1x1x4x8xf32>
    %194 = vector.shape_cast %193 : vector<1x1x4x8xf32> to vector<4x8xf32>
    %cst_145 = arith.constant dense<0.000000e+00> : vector<64x8xf32>
    %195 = tpu.matmul %192, %194, %cst_145 {dimension_numbers = #tpu.dot_dimension_numbers<[1], [0], [0], [1], [0, 0, 1, 1], [], []>} : vector<64x4xf32>, vector<4x8xf32>, vector<64x8xf32> -> vector<64x8xf32>
    %196 = arith.addf %189, %195 : vector<64x8xf32>
    %c0_146 = arith.constant 0 : index
    %c1_147 = arith.constant 1 : index
    %c0_148 = arith.constant 0 : index
    %c0_149 = arith.constant 0 : index
    %197 = vector.load %arg2[%c0_146, %c1_147, %c0_148, %c0_149] : memref<1x9x9x4xf32, #tpu.memory_space<vmem>>, vector<1x8x8x4xf32>
    %198 = vector.shape_cast %197 : vector<1x8x8x4xf32> to vector<8x8x4xf32>
    %199 = vector.shape_cast %198 : vector<8x8x4xf32> to vector<64x4xf32>
    %200 = vector.extract_strided_slice %2 {offsets = [2, 0, 0, 0], sizes = [1, 1, 4, 8], strides = [1, 1, 1, 1]} : vector<3x3x4x8xf32> to vector<1x1x4x8xf32>
    %201 = vector.shape_cast %200 : vector<1x1x4x8xf32> to vector<4x8xf32>
    %cst_150 = arith.constant dense<0.000000e+00> : vector<64x8xf32>
    %202 = tpu.matmul %199, %201, %cst_150 {dimension_numbers = #tpu.dot_dimension_numbers<[1], [0], [0], [1], [0, 0, 1, 1], [], []>} : vector<64x4xf32>, vector<4x8xf32>, vector<64x8xf32> -> vector<64x8xf32>
    %203 = arith.addf %196, %202 : vector<64x8xf32>
    %c0_151 = arith.constant 0 : index
    %c1_152 = arith.constant 1 : index
    %c1_153 = arith.constant 1 : index
    %c0_154 = arith.constant 0 : index
    %204 = vector.load %arg1[%c0_151, %c1_152, %c1_153, %c0_154] : memref<1x9x9x4xf32, #tpu.memory_space<vmem>>, vector<1x8x8x4xf32>
    %205 = vector.shape_cast %204 : vector<1x8x8x4xf32> to vector<8x8x4xf32>
    %206 = vector.shape_cast %205 : vector<8x8x4xf32> to vector<64x4xf32>
    %207 = vector.extract_strided_slice %2 {offsets = [2, 1, 0, 0], sizes = [1, 1, 4, 8], strides = [1, 1, 1, 1]} : vector<3x3x4x8xf32> to vector<1x1x4x8xf32>
    %208 = vector.shape_cast %207 : vector<1x1x4x8xf32> to vector<4x8xf32>
    %cst_155 = arith.constant dense<0.000000e+00> : vector<64x8xf32>
    %209 = tpu.matmul %206, %208, %cst_155 {dimension_numbers = #tpu.dot_dimension_numbers<[1], [0], [0], [1], [0, 0, 1, 1], [], []>} : vector<64x4xf32>, vector<4x8xf32>, vector<64x8xf32> -> vector<64x8xf32>
    %210 = arith.addf %203, %209 : vector<64x8xf32>
    %c0_156 = arith.constant 0 : index
    %c1_157 = arith.constant 1 : index
    %c1_158 = arith.constant 1 : index
    %c0_159 = arith.constant 0 : index
    %211 = vector.load %arg2[%c0_156, %c1_157, %c1_158, %c0_159] : memref<1x9x9x4xf32, #tpu.memory_space<vmem>>, vector<1x8x8x4xf32>
    %212 = vector.shape_cast %211 : vector<1x8x8x4xf32> to vector<8x8x4xf32>
    %213 = vector.shape_cast %212 : vector<8x8x4xf32> to vector<64x4xf32>
    %214 = vector.extract_strided_slice %2 {offsets = [2, 2, 0, 0], sizes = [1, 1, 4, 8], strides = [1, 1, 1, 1]} : vector<3x3x4x8xf32> to vector<1x1x4x8xf32>
    %215 = vector.shape_cast %214 : vector<1x1x4x8xf32> to vector<4x8xf32>
    %cst_160 = arith.constant dense<0.000000e+00> : vector<64x8xf32>
    %216 = tpu.matmul %213, %215, %cst_160 {dimension_numbers = #tpu.dot_dimension_numbers<[1], [0], [0], [1], [0, 0, 1, 1], [], []>} : vector<64x4xf32>, vector<4x8xf32>, vector<64x8xf32> -> vector<64x8xf32>
    %217 = arith.addf %210, %216 : vector<64x8xf32>
    %218 = vector.broadcast %3 : vector<1x8xf32> to vector<64x8xf32>
    %219 = arith.addf %217, %218 : vector<64x8xf32>
    %cst_161 = arith.constant 0.000000e+00 : f32
    %220 = vector.broadcast %cst_161 : f32 to vector<64x8xf32>
    %221 = arith.cmpf oge, %219, %220 : vector<64x8xf32>
    %cst_162 = arith.constant 2.000000e-01 : f32
    %222 = vector.broadcast %cst_162 : f32 to vector<64x8xf32>
    %223 = arith.mulf %222, %219 : vector<64x8xf32>
    %224 = arith.select %221, %219, %223 : vector<64x8xi1>, vector<64x8xf32>
    %225 = vector.shape_cast %224 : vector<64x8xf32> to vector<8x8x8xf32>
    %c1_163 = arith.constant 1 : index
    %c0_164 = arith.constant 0 : index
    %c0_165 = arith.constant 0 : index
    %c1_166 = arith.constant 1 : index
    %c0_167 = arith.constant 0 : index
    %226 = vector.load %arg10[%c1_163, %c0_164, %c0_165, %c1_166, %c0_167] : memref<2x2x9x9x8xf32, #tpu.memory_space<vmem>>, vector<1x1x8x8x8xf32>
    %227 = vector.shape_cast %226 : vector<1x1x8x8x8xf32> to vector<8x8x8xf32>
    %228 = vector.shape_cast %225 : vector<8x8x8xf32> to vector<1x1x8x8x8xf32>
    tpu.vector_store %arg10[%c1_163, %c0_164, %c0_165, %c1_166, %c0_167], %228 {strides = array<i32>} : memref<2x2x9x9x8xf32, #tpu.memory_space<vmem>>, vector<1x1x8x8x8xf32>,
    %cst_168 = arith.constant 0.000000e+00 : f32
    %229 = vector.broadcast %cst_168 : f32 to vector<64x8xf32>
    %c0_169 = arith.constant 0 : index
    %c0_170 = arith.constant 0 : index
    %c0_171 = arith.constant 0 : index
    %c0_172 = arith.constant 0 : index
    %230 = vector.load %arg1[%c0_169, %c0_170, %c0_171, %c0_172] : memref<1x9x9x4xf32, #tpu.memory_space<vmem>>, vector<1x8x8x4xf32>
    %231 = vector.shape_cast %230 : vector<1x8x8x4xf32> to vector<8x8x4xf32>
    %232 = vector.shape_cast %231 : vector<8x8x4xf32> to vector<64x4xf32>
    %233 = vector.extract_strided_slice %2 {offsets = [0, 0, 0, 0], sizes = [1, 1, 4, 8], strides = [1, 1, 1, 1]} : vector<3x3x4x8xf32> to vector<1x1x4x8xf32>
    %234 = vector.shape_cast %233 : vector<1x1x4x8xf32> to vector<4x8xf32>
    %cst_173 = arith.constant dense<0.000000e+00> : vector<64x8xf32>
    %235 = tpu.matmul %232, %234, %cst_173 {dimension_numbers = #tpu.dot_dimension_numbers<[1], [0], [0], [1], [0, 0, 1, 1], [], []>} : vector<64x4xf32>, vector<4x8xf32>, vector<64x8xf32> -> vector<64x8xf32>
    %236 = arith.addf %229, %235 : vector<64x8xf32>
    %c0_174 = arith.constant 0 : index
    %c0_175 = arith.constant 0 : index
    %c0_176 = arith.constant 0 : index
    %c0_177 = arith.constant 0 : index
    %237 = vector.load %arg2[%c0_174, %c0_175, %c0_176, %c0_177] : memref<1x9x9x4xf32, #tpu.memory_space<vmem>>, vector<1x8x8x4xf32>
    %238 = vector.shape_cast %237 : vector<1x8x8x4xf32> to vector<8x8x4xf32>
    %239 = vector.shape_cast %238 : vector<8x8x4xf32> to vector<64x4xf32>
    %240 = vector.extract_strided_slice %2 {offsets = [0, 1, 0, 0], sizes = [1, 1, 4, 8], strides = [1, 1, 1, 1]} : vector<3x3x4x8xf32> to vector<1x1x4x8xf32>
    %241 = vector.shape_cast %240 : vector<1x1x4x8xf32> to vector<4x8xf32>
    %cst_178 = arith.constant dense<0.000000e+00> : vector<64x8xf32>
    %242 = tpu.matmul %239, %241, %cst_178 {dimension_numbers = #tpu.dot_dimension_numbers<[1], [0], [0], [1], [0, 0, 1, 1], [], []>} : vector<64x4xf32>, vector<4x8xf32>, vector<64x8xf32> -> vector<64x8xf32>
    %243 = arith.addf %236, %242 : vector<64x8xf32>
    %c0_179 = arith.constant 0 : index
    %c0_180 = arith.constant 0 : index
    %c1_181 = arith.constant 1 : index
    %c0_182 = arith.constant 0 : index
    %244 = vector.load %arg1[%c0_179, %c0_180, %c1_181, %c0_182] : memref<1x9x9x4xf32, #tpu.memory_space<vmem>>, vector<1x8x8x4xf32>
    %245 = vector.shape_cast %244 : vector<1x8x8x4xf32> to vector<8x8x4xf32>
    %246 = vector.shape_cast %245 : vector<8x8x4xf32> to vector<64x4xf32>
    %247 = vector.extract_strided_slice %2 {offsets = [0, 2, 0, 0], sizes = [1, 1, 4, 8], strides = [1, 1, 1, 1]} : vector<3x3x4x8xf32> to vector<1x1x4x8xf32>
    %248 = vector.shape_cast %247 : vector<1x1x4x8xf32> to vector<4x8xf32>
    %cst_183 = arith.constant dense<0.000000e+00> : vector<64x8xf32>
    %249 = tpu.matmul %246, %248, %cst_183 {dimension_numbers = #tpu.dot_dimension_numbers<[1], [0], [0], [1], [0, 0, 1, 1], [], []>} : vector<64x4xf32>, vector<4x8xf32>, vector<64x8xf32> -> vector<64x8xf32>
    %250 = arith.addf %243, %249 : vector<64x8xf32>
    %c0_184 = arith.constant 0 : index
    %c0_185 = arith.constant 0 : index
    %c0_186 = arith.constant 0 : index
    %c0_187 = arith.constant 0 : index
    %251 = vector.load %arg3[%c0_184, %c0_185, %c0_186, %c0_187] : memref<1x9x9x4xf32, #tpu.memory_space<vmem>>, vector<1x8x8x4xf32>
    %252 = vector.shape_cast %251 : vector<1x8x8x4xf32> to vector<8x8x4xf32>
    %253 = vector.shape_cast %252 : vector<8x8x4xf32> to vector<64x4xf32>
    %254 = vector.extract_strided_slice %2 {offsets = [1, 0, 0, 0], sizes = [1, 1, 4, 8], strides = [1, 1, 1, 1]} : vector<3x3x4x8xf32> to vector<1x1x4x8xf32>
    %255 = vector.shape_cast %254 : vector<1x1x4x8xf32> to vector<4x8xf32>
    %cst_188 = arith.constant dense<0.000000e+00> : vector<64x8xf32>
    %256 = tpu.matmul %253, %255, %cst_188 {dimension_numbers = #tpu.dot_dimension_numbers<[1], [0], [0], [1], [0, 0, 1, 1], [], []>} : vector<64x4xf32>, vector<4x8xf32>, vector<64x8xf32> -> vector<64x8xf32>
    %257 = arith.addf %250, %256 : vector<64x8xf32>
    %c0_189 = arith.constant 0 : index
    %c0_190 = arith.constant 0 : index
    %c0_191 = arith.constant 0 : index
    %c0_192 = arith.constant 0 : index
    %258 = vector.load %arg4[%c0_189, %c0_190, %c0_191, %c0_192] : memref<1x9x9x4xf32, #tpu.memory_space<vmem>>, vector<1x8x8x4xf32>
    %259 = vector.shape_cast %258 : vector<1x8x8x4xf32> to vector<8x8x4xf32>
    %260 = vector.shape_cast %259 : vector<8x8x4xf32> to vector<64x4xf32>
    %261 = vector.extract_strided_slice %2 {offsets = [1, 1, 0, 0], sizes = [1, 1, 4, 8], strides = [1, 1, 1, 1]} : vector<3x3x4x8xf32> to vector<1x1x4x8xf32>
    %262 = vector.shape_cast %261 : vector<1x1x4x8xf32> to vector<4x8xf32>
    %cst_193 = arith.constant dense<0.000000e+00> : vector<64x8xf32>
    %263 = tpu.matmul %260, %262, %cst_193 {dimension_numbers = #tpu.dot_dimension_numbers<[1], [0], [0], [1], [0, 0, 1, 1], [], []>} : vector<64x4xf32>, vector<4x8xf32>, vector<64x8xf32> -> vector<64x8xf32>
    %264 = arith.addf %257, %263 : vector<64x8xf32>
    %c0_194 = arith.constant 0 : index
    %c0_195 = arith.constant 0 : index
    %c1_196 = arith.constant 1 : index
    %c0_197 = arith.constant 0 : index
    %265 = vector.load %arg3[%c0_194, %c0_195, %c1_196, %c0_197] : memref<1x9x9x4xf32, #tpu.memory_space<vmem>>, vector<1x8x8x4xf32>
    %266 = vector.shape_cast %265 : vector<1x8x8x4xf32> to vector<8x8x4xf32>
    %267 = vector.shape_cast %266 : vector<8x8x4xf32> to vector<64x4xf32>
    %268 = vector.extract_strided_slice %2 {offsets = [1, 2, 0, 0], sizes = [1, 1, 4, 8], strides = [1, 1, 1, 1]} : vector<3x3x4x8xf32> to vector<1x1x4x8xf32>
    %269 = vector.shape_cast %268 : vector<1x1x4x8xf32> to vector<4x8xf32>
    %cst_198 = arith.constant dense<0.000000e+00> : vector<64x8xf32>
    %270 = tpu.matmul %267, %269, %cst_198 {dimension_numbers = #tpu.dot_dimension_numbers<[1], [0], [0], [1], [0, 0, 1, 1], [], []>} : vector<64x4xf32>, vector<4x8xf32>, vector<64x8xf32> -> vector<64x8xf32>
    %271 = arith.addf %264, %270 : vector<64x8xf32>
    %c0_199 = arith.constant 0 : index
    %c1_200 = arith.constant 1 : index
    %c0_201 = arith.constant 0 : index
    %c0_202 = arith.constant 0 : index
    %272 = vector.load %arg1[%c0_199, %c1_200, %c0_201, %c0_202] : memref<1x9x9x4xf32, #tpu.memory_space<vmem>>, vector<1x8x8x4xf32>
    %273 = vector.shape_cast %272 : vector<1x8x8x4xf32> to vector<8x8x4xf32>
    %274 = vector.shape_cast %273 : vector<8x8x4xf32> to vector<64x4xf32>
    %275 = vector.extract_strided_slice %2 {offsets = [2, 0, 0, 0], sizes = [1, 1, 4, 8], strides = [1, 1, 1, 1]} : vector<3x3x4x8xf32> to vector<1x1x4x8xf32>
    %276 = vector.shape_cast %275 : vector<1x1x4x8xf32> to vector<4x8xf32>
    %cst_203 = arith.constant dense<0.000000e+00> : vector<64x8xf32>
    %277 = tpu.matmul %274, %276, %cst_203 {dimension_numbers = #tpu.dot_dimension_numbers<[1], [0], [0], [1], [0, 0, 1, 1], [], []>} : vector<64x4xf32>, vector<4x8xf32>, vector<64x8xf32> -> vector<64x8xf32>
    %278 = arith.addf %271, %277 : vector<64x8xf32>
    %c0_204 = arith.constant 0 : index
    %c1_205 = arith.constant 1 : index
    %c0_206 = arith.constant 0 : index
    %c0_207 = arith.constant 0 : index
    %279 = vector.load %arg2[%c0_204, %c1_205, %c0_206, %c0_207] : memref<1x9x9x4xf32, #tpu.memory_space<vmem>>, vector<1x8x8x4xf32>
    %280 = vector.shape_cast %279 : vector<1x8x8x4xf32> to vector<8x8x4xf32>
    %281 = vector.shape_cast %280 : vector<8x8x4xf32> to vector<64x4xf32>
    %282 = vector.extract_strided_slice %2 {offsets = [2, 1, 0, 0], sizes = [1, 1, 4, 8], strides = [1, 1, 1, 1]} : vector<3x3x4x8xf32> to vector<1x1x4x8xf32>
    %283 = vector.shape_cast %282 : vector<1x1x4x8xf32> to vector<4x8xf32>
    %cst_208 = arith.constant dense<0.000000e+00> : vector<64x8xf32>
    %284 = tpu.matmul %281, %283, %cst_208 {dimension_numbers = #tpu.dot_dimension_numbers<[1], [0], [0], [1], [0, 0, 1, 1], [], []>} : vector<64x4xf32>, vector<4x8xf32>, vector<64x8xf32> -> vector<64x8xf32>
    %285 = arith.addf %278, %284 : vector<64x8xf32>
    %c0_209 = arith.constant 0 : index
    %c1_210 = arith.constant 1 : index
    %c1_211 = arith.constant 1 : index
    %c0_212 = arith.constant 0 : index
    %286 = vector.load %arg1[%c0_209, %c1_210, %c1_211, %c0_212] : memref<1x9x9x4xf32, #tpu.memory_space<vmem>>, vector<1x8x8x4xf32>
    %287 = vector.shape_cast %286 : vector<1x8x8x4xf32> to vector<8x8x4xf32>
    %288 = vector.shape_cast %287 : vector<8x8x4xf32> to vector<64x4xf32>
    %289 = vector.extract_strided_slice %2 {offsets = [2, 2, 0, 0], sizes = [1, 1, 4, 8], strides = [1, 1, 1, 1]} : vector<3x3x4x8xf32> to vector<1x1x4x8xf32>
    %290 = vector.shape_cast %289 : vector<1x1x4x8xf32> to vector<4x8xf32>
    %cst_213 = arith.constant dense<0.000000e+00> : vector<64x8xf32>
    %291 = tpu.matmul %288, %290, %cst_213 {dimension_numbers = #tpu.dot_dimension_numbers<[1], [0], [0], [1], [0, 0, 1, 1], [], []>} : vector<64x4xf32>, vector<4x8xf32>, vector<64x8xf32> -> vector<64x8xf32>
    %292 = arith.addf %285, %291 : vector<64x8xf32>
    %293 = vector.broadcast %3 : vector<1x8xf32> to vector<64x8xf32>
    %294 = arith.addf %292, %293 : vector<64x8xf32>
    %cst_214 = arith.constant 0.000000e+00 : f32
    %295 = vector.broadcast %cst_214 : f32 to vector<64x8xf32>
    %296 = arith.cmpf oge, %294, %295 : vector<64x8xf32>
    %cst_215 = arith.constant 2.000000e-01 : f32
    %297 = vector.broadcast %cst_215 : f32 to vector<64x8xf32>
    %298 = arith.mulf %297, %294 : vector<64x8xf32>
    %299 = arith.select %296, %294, %298 : vector<64x8xi1>, vector<64x8xf32>
    %300 = vector.shape_cast %299 : vector<64x8xf32> to vector<8x8x8xf32>
    %c1_216 = arith.constant 1 : index
    %c1_217 = arith.constant 1 : index
    %c0_218 = arith.constant 0 : index
    %c0_219 = arith.constant 0 : index
    %c0_220 = arith.constant 0 : index
    %301 = vector.load %arg10[%c1_216, %c1_217, %c0_218, %c0_219, %c0_220] : memref<2x2x9x9x8xf32, #tpu.memory_space<vmem>>, vector<1x1x8x8x8xf32>
    %302 = vector.shape_cast %301 : vector<1x1x8x8x8xf32> to vector<8x8x8xf32>
    %303 = vector.shape_cast %300 : vector<8x8x8xf32> to vector<1x1x8x8x8xf32>
    tpu.vector_store %arg10[%c1_216, %c1_217, %c0_218, %c0_219, %c0_220], %303 {strides = array<i32>} : memref<2x2x9x9x8xf32, #tpu.memory_space<vmem>>, vector<1x1x8x8x8xf32>,
    %c0_221 = arith.constant 0 : index
    %c0_222 = arith.constant 0 : index
    %c0_223 = arith.constant 0 : index
    %c0_224 = arith.constant 0 : index
    %304 = vector.load %arg7[%c0_221, %c0_222, %c0_223, %c0_224] : memref<3x3x8x8xf32, #tpu.memory_space<vmem>>, vector<3x3x8x8xf32>
    %c0_225 = arith.constant 0 : index
    %c0_226 = arith.constant 0 : index
    %305 = vector.load %arg8[%c0_225, %c0_226] : memref<1x8xf32, #tpu.memory_space<vmem>>, vector<1x8xf32>
    %cst_227 = arith.constant 0.000000e+00 : f32
    %306 = vector.broadcast %cst_227 : f32 to vector<64x8xf32>
    %c0_228 = arith.constant 0 : index
    %c0_229 = arith.constant 0 : index
    %c0_230 = arith.constant 0 : index
    %c0_231 = arith.constant 0 : index
    %c0_232 = arith.constant 0 : index
    %307 = vector.load %arg10[%c0_228, %c0_229, %c0_230, %c0_231, %c0_232] : memref<2x2x9x9x8xf32, #tpu.memory_space<vmem>>, vector<1x1x8x8x8xf32>
    %308 = vector.shape_cast %307 : vector<1x1x8x8x8xf32> to vector<8x8x8xf32>
    %309 = vector.shape_cast %308 : vector<8x8x8xf32> to vector<64x8xf32>
    %310 = vector.extract_strided_slice %304 {offsets = [0, 0, 0, 0], sizes = [1, 1, 8, 8], strides = [1, 1, 1, 1]} : vector<3x3x8x8xf32> to vector<1x1x8x8xf32>
    %311 = vector.shape_cast %310 : vector<1x1x8x8xf32> to vector<8x8xf32>
    %cst_233 = arith.constant dense<0.000000e+00> : vector<64x8xf32>
    %312 = tpu.matmul %309, %311, %cst_233 {dimension_numbers = #tpu.dot_dimension_numbers<[1], [0], [0], [1], [0, 0, 1, 1], [], []>} : vector<64x8xf32>, vector<8x8xf32>, vector<64x8xf32> -> vector<64x8xf32>
    %313 = arith.addf %306, %312 : vector<64x8xf32>
    %c0_234 = arith.constant 0 : index
    %c1_235 = arith.constant 1 : index
    %c0_236 = arith.constant 0 : index
    %c0_237 = arith.constant 0 : index
    %c0_238 = arith.constant 0 : index
    %314 = vector.load %arg10[%c0_234, %c1_235, %c0_236, %c0_237, %c0_238] : memref<2x2x9x9x8xf32, #tpu.memory_space<vmem>>, vector<1x1x8x8x8xf32>
    %315 = vector.shape_cast %314 : vector<1x1x8x8x8xf32> to vector<8x8x8xf32>
    %316 = vector.shape_cast %315 : vector<8x8x8xf32> to vector<64x8xf32>
    %317 = vector.extract_strided_slice %304 {offsets = [0, 1, 0, 0], sizes = [1, 1, 8, 8], strides = [1, 1, 1, 1]} : vector<3x3x8x8xf32> to vector<1x1x8x8xf32>
    %318 = vector.shape_cast %317 : vector<1x1x8x8xf32> to vector<8x8xf32>
    %cst_239 = arith.constant dense<0.000000e+00> : vector<64x8xf32>
    %319 = tpu.matmul %316, %318, %cst_239 {dimension_numbers = #tpu.dot_dimension_numbers<[1], [0], [0], [1], [0, 0, 1, 1], [], []>} : vector<64x8xf32>, vector<8x8xf32>, vector<64x8xf32> -> vector<64x8xf32>
    %320 = arith.addf %313, %319 : vector<64x8xf32>
    %c0_240 = arith.constant 0 : index
    %c0_241 = arith.constant 0 : index
    %c0_242 = arith.constant 0 : index
    %c1_243 = arith.constant 1 : index
    %c0_244 = arith.constant 0 : index
    %321 = vector.load %arg10[%c0_240, %c0_241, %c0_242, %c1_243, %c0_244] : memref<2x2x9x9x8xf32, #tpu.memory_space<vmem>>, vector<1x1x8x8x8xf32>
    %322 = vector.shape_cast %321 : vector<1x1x8x8x8xf32> to vector<8x8x8xf32>
    %323 = vector.shape_cast %322 : vector<8x8x8xf32> to vector<64x8xf32>
    %324 = vector.extract_strided_slice %304 {offsets = [0, 2, 0, 0], sizes = [1, 1, 8, 8], strides = [1, 1, 1, 1]} : vector<3x3x8x8xf32> to vector<1x1x8x8xf32>
    %325 = vector.shape_cast %324 : vector<1x1x8x8xf32> to vector<8x8xf32>
    %cst_245 = arith.constant dense<0.000000e+00> : vector<64x8xf32>
    %326 = tpu.matmul %323, %325, %cst_245 {dimension_numbers = #tpu.dot_dimension_numbers<[1], [0], [0], [1], [0, 0, 1, 1], [], []>} : vector<64x8xf32>, vector<8x8xf32>, vector<64x8xf32> -> vector<64x8xf32>
    %327 = arith.addf %320, %326 : vector<64x8xf32>
    %c1_246 = arith.constant 1 : index
    %c0_247 = arith.constant 0 : index
    %c0_248 = arith.constant 0 : index
    %c0_249 = arith.constant 0 : index
    %c0_250 = arith.constant 0 : index
    %328 = vector.load %arg10[%c1_246, %c0_247, %c0_248, %c0_249, %c0_250] : memref<2x2x9x9x8xf32, #tpu.memory_space<vmem>>, vector<1x1x8x8x8xf32>
    %329 = vector.shape_cast %328 : vector<1x1x8x8x8xf32> to vector<8x8x8xf32>
    %330 = vector.shape_cast %329 : vector<8x8x8xf32> to vector<64x8xf32>
    %331 = vector.extract_strided_slice %304 {offsets = [1, 0, 0, 0], sizes = [1, 1, 8, 8], strides = [1, 1, 1, 1]} : vector<3x3x8x8xf32> to vector<1x1x8x8xf32>
    %332 = vector.shape_cast %331 : vector<1x1x8x8xf32> to vector<8x8xf32>
    %cst_251 = arith.constant dense<0.000000e+00> : vector<64x8xf32>
    %333 = tpu.matmul %330, %332, %cst_251 {dimension_numbers = #tpu.dot_dimension_numbers<[1], [0], [0], [1], [0, 0, 1, 1], [], []>} : vector<64x8xf32>, vector<8x8xf32>, vector<64x8xf32> -> vector<64x8xf32>
    %334 = arith.addf %327, %333 : vector<64x8xf32>
    %c1_252 = arith.constant 1 : index
    %c1_253 = arith.constant 1 : index
    %c0_254 = arith.constant 0 : index
    %c0_255 = arith.constant 0 : index
    %c0_256 = arith.constant 0 : index
    %335 = vector.load %arg10[%c1_252, %c1_253, %c0_254, %c0_255, %c0_256] : memref<2x2x9x9x8xf32, #tpu.memory_space<vmem>>, vector<1x1x8x8x8xf32>
    %336 = vector.shape_cast %335 : vector<1x1x8x8x8xf32> to vector<8x8x8xf32>
    %337 = vector.shape_cast %336 : vector<8x8x8xf32> to vector<64x8xf32>
    %338 = vector.extract_strided_slice %304 {offsets = [1, 1, 0, 0], sizes = [1, 1, 8, 8], strides = [1, 1, 1, 1]} : vector<3x3x8x8xf32> to vector<1x1x8x8xf32>
    %339 = vector.shape_cast %338 : vector<1x1x8x8xf32> to vector<8x8xf32>
    %cst_257 = arith.constant dense<0.000000e+00> : vector<64x8xf32>
    %340 = tpu.matmul %337, %339, %cst_257 {dimension_numbers = #tpu.dot_dimension_numbers<[1], [0], [0], [1], [0, 0, 1, 1], [], []>} : vector<64x8xf32>, vector<8x8xf32>, vector<64x8xf32> -> vector<64x8xf32>
    %341 = arith.addf %334, %340 : vector<64x8xf32>
    %c1_258 = arith.constant 1 : index
    %c0_259 = arith.constant 0 : index
    %c0_260 = arith.constant 0 : index
    %c1_261 = arith.constant 1 : index
    %c0_262 = arith.constant 0 : index
    %342 = vector.load %arg10[%c1_258, %c0_259, %c0_260, %c1_261, %c0_262] : memref<2x2x9x9x8xf32, #tpu.memory_space<vmem>>, vector<1x1x8x8x8xf32>
    %343 = vector.shape_cast %342 : vector<1x1x8x8x8xf32> to vector<8x8x8xf32>
    %344 = vector.shape_cast %343 : vector<8x8x8xf32> to vector<64x8xf32>
    %345 = vector.extract_strided_slice %304 {offsets = [1, 2, 0, 0], sizes = [1, 1, 8, 8], strides = [1, 1, 1, 1]} : vector<3x3x8x8xf32> to vector<1x1x8x8xf32>
    %346 = vector.shape_cast %345 : vector<1x1x8x8xf32> to vector<8x8xf32>
    %cst_263 = arith.constant dense<0.000000e+00> : vector<64x8xf32>
    %347 = tpu.matmul %344, %346, %cst_263 {dimension_numbers = #tpu.dot_dimension_numbers<[1], [0], [0], [1], [0, 0, 1, 1], [], []>} : vector<64x8xf32>, vector<8x8xf32>, vector<64x8xf32> -> vector<64x8xf32>
    %348 = arith.addf %341, %347 : vector<64x8xf32>
    %c0_264 = arith.constant 0 : index
    %c0_265 = arith.constant 0 : index
    %c1_266 = arith.constant 1 : index
    %c0_267 = arith.constant 0 : index
    %c0_268 = arith.constant 0 : index
    %349 = vector.load %arg10[%c0_264, %c0_265, %c1_266, %c0_267, %c0_268] : memref<2x2x9x9x8xf32, #tpu.memory_space<vmem>>, vector<1x1x8x8x8xf32>
    %350 = vector.shape_cast %349 : vector<1x1x8x8x8xf32> to vector<8x8x8xf32>
    %351 = vector.shape_cast %350 : vector<8x8x8xf32> to vector<64x8xf32>
    %352 = vector.extract_strided_slice %304 {offsets = [2, 0, 0, 0], sizes = [1, 1, 8, 8], strides = [1, 1, 1, 1]} : vector<3x3x8x8xf32> to vector<1x1x8x8xf32>
    %353 = vector.shape_cast %352 : vector<1x1x8x8xf32> to vector<8x8xf32>
    %cst_269 = arith.constant dense<0.000000e+00> : vector<64x8xf32>
    %354 = tpu.matmul %351, %353, %cst_269 {dimension_numbers = #tpu.dot_dimension_numbers<[1], [0], [0], [1], [0, 0, 1, 1], [], []>} : vector<64x8xf32>, vector<8x8xf32>, vector<64x8xf32> -> vector<64x8xf32>
    %355 = arith.addf %348, %354 : vector<64x8xf32>
    %c0_270 = arith.constant 0 : index
    %c1_271 = arith.constant 1 : index
    %c1_272 = arith.constant 1 : index
    %c0_273 = arith.constant 0 : index
    %c0_274 = arith.constant 0 : index
    %356 = vector.load %arg10[%c0_270, %c1_271, %c1_272, %c0_273, %c0_274] : memref<2x2x9x9x8xf32, #tpu.memory_space<vmem>>, vector<1x1x8x8x8xf32>
    %357 = vector.shape_cast %356 : vector<1x1x8x8x8xf32> to vector<8x8x8xf32>
    %358 = vector.shape_cast %357 : vector<8x8x8xf32> to vector<64x8xf32>
    %359 = vector.extract_strided_slice %304 {offsets = [2, 1, 0, 0], sizes = [1, 1, 8, 8], strides = [1, 1, 1, 1]} : vector<3x3x8x8xf32> to vector<1x1x8x8xf32>
    %360 = vector.shape_cast %359 : vector<1x1x8x8xf32> to vector<8x8xf32>
    %cst_275 = arith.constant dense<0.000000e+00> : vector<64x8xf32>
    %361 = tpu.matmul %358, %360, %cst_275 {dimension_numbers = #tpu.dot_dimension_numbers<[1], [0], [0], [1], [0, 0, 1, 1], [], []>} : vector<64x8xf32>, vector<8x8xf32>, vector<64x8xf32> -> vector<64x8xf32>
    %362 = arith.addf %355, %361 : vector<64x8xf32>
    %c0_276 = arith.constant 0 : index
    %c0_277 = arith.constant 0 : index
    %c1_278 = arith.constant 1 : index
    %c1_279 = arith.constant 1 : index
    %c0_280 = arith.constant 0 : index
    %363 = vector.load %arg10[%c0_276, %c0_277, %c1_278, %c1_279, %c0_280] : memref<2x2x9x9x8xf32, #tpu.memory_space<vmem>>, vector<1x1x8x8x8xf32>
    %364 = vector.shape_cast %363 : vector<1x1x8x8x8xf32> to vector<8x8x8xf32>
    %365 = vector.shape_cast %364 : vector<8x8x8xf32> to vector<64x8xf32>
    %366 = vector.extract_strided_slice %304 {offsets = [2, 2, 0, 0], sizes = [1, 1, 8, 8], strides = [1, 1, 1, 1]} : vector<3x3x8x8xf32> to vector<1x1x8x8xf32>
    %367 = vector.shape_cast %366 : vector<1x1x8x8xf32> to vector<8x8xf32>
    %cst_281 = arith.constant dense<0.000000e+00> : vector<64x8xf32>
    %368 = tpu.matmul %365, %367, %cst_281 {dimension_numbers = #tpu.dot_dimension_numbers<[1], [0], [0], [1], [0, 0, 1, 1], [], []>} : vector<64x8xf32>, vector<8x8xf32>, vector<64x8xf32> -> vector<64x8xf32>
    %369 = arith.addf %362, %368 : vector<64x8xf32>
    %370 = vector.broadcast %305 : vector<1x8xf32> to vector<64x8xf32>
    %371 = arith.addf %369, %370 : vector<64x8xf32>
    %cst_282 = arith.constant 0.000000e+00 : f32
    %372 = vector.broadcast %cst_282 : f32 to vector<64x8xf32>
    %373 = arith.cmpf oge, %371, %372 : vector<64x8xf32>
    %cst_283 = arith.constant 2.000000e-01 : f32
    %374 = vector.broadcast %cst_283 : f32 to vector<64x8xf32>
    %375 = arith.mulf %374, %371 : vector<64x8xf32>
    %376 = arith.select %373, %371, %375 : vector<64x8xi1>, vector<64x8xf32>
    %377 = vector.shape_cast %376 : vector<64x8xf32> to vector<8x8x8xf32>
    %c0_284 = arith.constant 0 : index
    %c0_285 = arith.constant 0 : index
    %c0_286 = arith.constant 0 : index
    %c0_287 = arith.constant 0 : index
    %378 = vector.load %arg9[%c0_284, %c0_285, %c0_286, %c0_287] : memref<1x8x8x8xf32, #tpu.memory_space<vmem>>, vector<1x8x8x8xf32>
    %379 = vector.shape_cast %378 : vector<1x8x8x8xf32> to vector<8x8x8xf32>
    %380 = vector.shape_cast %377 : vector<8x8x8xf32> to vector<1x8x8x8xf32>
    tpu.vector_store %arg9[%c0_284, %c0_285, %c0_286, %c0_287], %380 {strides = array<i32>} : memref<1x8x8x8xf32, #tpu.memory_space<vmem>>, vector<1x8x8x8xf32>,
    return
  }
  func.func @transform_0(%arg0: i32) -> (i32, i32, i32, i32) {
    %c0_i32 = arith.constant 0 : i32
    %c0_i32_0 = arith.constant 0 : i32
    %c0_i32_1 = arith.constant 0 : i32
    %c0_i32_2 = arith.constant 0 : i32
    return %arg0, %c0_i32, %c0_i32_0, %c0_i32_1 : i32, i32, i32, i32
  }
  func.func @transform_1(%arg0: i32) -> (i32, i32, i32, i32) {
    %c0_i32 = arith.constant 0 : i32
    %c0_i32_0 = arith.constant 0 : i32
    %c0_i32_1 = arith.constant 0 : i32
    %c0_i32_2 = arith.constant 0 : i32
    return %arg0, %c0_i32, %c0_i32_0, %c0_i32_1 : i32, i32, i32, i32
  }
  func.func @transform_2(%arg0: i32) -> (i32, i32, i32, i32) {
    %c0_i32 = arith.constant 0 : i32
    %c0_i32_0 = arith.constant 0 : i32
    %c0_i32_1 = arith.constant 0 : i32
    %c0_i32_2 = arith.constant 0 : i32
    return %arg0, %c0_i32, %c0_i32_0, %c0_i32_1 : i32, i32, i32, i32
  }
  func.func @transform_3(%arg0: i32) -> (i32, i32, i32, i32) {
    %c0_i32 = arith.constant 0 : i32
    %c0_i32_0 = arith.constant 0 : i32
    %c0_i32_1 = arith.constant 0 : i32
    %c0_i32_2 = arith.constant 0 : i32
    return %arg0, %c0_i32, %c0_i32_0, %c0_i32_1 : i32, i32, i32, i32
  }
  func.func @transform_4(%arg0: i32) -> (i32, i32, i32, i32) {
    %c0_i32 = arith.constant 0 : i32
    %c0_i32_0 = arith.constant 0 : i32
    %c0_i32_1 = arith.constant 0 : i32
    %c0_i32_2 = arith.constant 0 : i32
    %c0_i32_3 = arith.constant 0 : i32
    return %c0_i32, %c0_i32_0, %c0_i32_1, %c0_i32_2 : i32, i32, i32, i32
  }
  func.func @transform_5(%arg0: i32) -> (i32, i32) {
    %c0_i32 = arith.constant 0 : i32
    %c0_i32_0 = arith.constant 0 : i32
    %c0_i32_1 = arith.constant 0 : i32
    return %c0_i32, %c0_i32_0 : i32, i32
  }
  func.func @transform_6(%arg0: i32) -> (i32, i32, i32, i32) {
    %c0_i32 = arith.constant 0 : i32
    %c0_i32_0 = arith.constant 0 : i32
    %c0_i32_1 = arith.constant 0 : i32
    %c0_i32_2 = arith.constant 0 : i32
    %c0_i32_3 = arith.constant 0 : i32
    return %c0_i32, %c0_i32_0, %c0_i32_1, %c0_i32_2 : i32, i32, i32, i32
  }
  func.func @transform_7(%arg0: i32) -> (i32, i32) {
    %c0_i32 = arith.constant 0 : i32
    %c0_i32_0 = arith.constant 0 : i32
    %c0_i32_1 = arith.constant 0 : i32
    return %c0_i32, %c0_i32_0 : i32, i32
  }
  func.func @transform_8(%arg0: i32) -> (i32, i32, i32, i32) {
    %c0_i32 = arith.constant 0 : i32
    %c0_i32_0 = arith.constant 0 : i32
    %c0_i32_1 = arith.constant 0 : i32
    %c0_i32_2 = arith.constant 0 : i32
    return %arg0, %c0_i32, %c0_i32_0, %c0_i32_1 : i32, i32, i32, i32
  }
}

</mosaic_0001>

<bundles_post_ra>
// kernel: tpu_custom_call.1
= control target key start
LH: loop header
LB: loop body
LE: loop exit
PB: predicated region body
PF: predicated region fallthrough
CT: control target
= control target key end

     0   :  { %13 = vsyncpa [#allocation4], 0  ;;  %s10793_s0 = inlined_call_operand.vmem [shape: f32[2,9,9,4], index: 0, kind: input, shape index: {}]   ;;  %s10794_s1 = inlined_call_operand.vmem [shape: f32[2,9,9,4], index: 1, kind: input, shape index: {}]   ;;  %s10795_s2 = inlined_call_operand.vmem [shape: f32[2,9,9,4], index: 2, kind: input, shape index: {}]   ;;  %s10796_s3 = inlined_call_operand.vmem [shape: f32[2,9,9,4], index: 3, kind: input, shape index: {}]   ;;  %s10797_s4 = inlined_call_operand.vmem [shape: f32[3,3,4,8], index: 4, kind: input, shape index: {}]   ;;  %s10798_s5 = inlined_call_operand.vmem [shape: f32[1,8], index: 5, kind: input, shape index: {}]   ;;  %s10799_s6 = inlined_call_operand.vmem [shape: f32[3,3,8,8], index: 6, kind: input, shape index: {}]   ;;  %s10800_s7 = inlined_call_operand.vmem [shape: f32[1,8], index: 7, kind: input, shape index: {}]   ;;  %s10801_s8 = inlined_call_operand.hbm [shape: f32[2,8,8,8], index: 8, kind: output, shape index: {}]  }
   0x1   :  { %15 = vsyncpa [#allocation4 + $0x1], 0  ;;  %s9339_s27 = smov 0   ;;  %s9341_s28 = smov 0  }
   0x2   :  { %s9343_s29 = smov 0   ;;  %s9345_s30 = smov 0  }
   0x3 LB: > { %s9360_s9 = sadd.s32 4294967295, %s9288_s30   ;;  %s7265_s10 = sadd.s32 4294967294, %s9288_s30   ;;  %s9288_s30 = sphi %s9345_s30, %s10849_s30   ;;  %s9284_s29 = sphi %s9343_s29, %s10848_s29   ;;  %s9280_s28 = sphi %s9341_s28, %s10847_s28   ;;  %s9276_s27 = sphi %s9339_s27, %s10846_s27  }
   0x4   : > { %s9364_s11 = sadd.s32 1, %s9288_s30   ;;  %s216_s12 = sadd.s32 1, %s9284_s29 }
   0x5   : > { %s213_s13 = ssub.s32 %s9288_s30, %s9364_s11  ;;  %p226_p0 = scmp.ne.s32.totalorder %s9284_s29, %s9280_s28 }
   0x6   : > { %p214_p1 = scmp.eq.s32.totalorder %s213_s13, 0  ;;  %p227_p2 = scmp.eq.s32.totalorder %s9360_s9, 1 }
   0x7   : > { %p232_p3 = scmp.ne.s32.totalorder %s9280_s28, %s9276_s27  ;;  %p233_p4 = scmp.eq.s32.totalorder %s7265_s10, 1 }
   0x8   : > { %s9375_s14 = scalar_select %p214_p1, %s9284_s29, %s216_s12  }
   0x9   : > { %p9377_p5 = por %p227_p2, %p226_p0  ;;  %p9381_p6 = por %p233_p4, %p232_p3 }
   0xa   : > { %p7268_p7 = scmp.ge.s32.totalorder %s9288_s30, 1  ;;  %p295_p8 = scmp.lt.s32.totalorder %s9288_s30, 3 }
   0xc   : > { %p296_p9 = pnand %p7268_p7, %p295_p8 }
   0xe   : > { %299 = sbr.rel (%p296_p9) target bundleno = 910 (0x38e), region = 52 }
  0x15   : > { %v9390_v0 = vld [vmem:[%s10797_s4 + $0x4] sm:$0xf]  ;;  %vm489_vm0 = vcmask 1043456   ;;  %v9395_v1 = vld [vmem:[%s10797_s4 + $0x10] sm:$0xf]  ;;  %p344_p10 = scmp.lt.s32.totalorder %s9360_s9, 1 }
  0x16   : > { %10822 = vst [vmem:[#allocation6_spill] sm:$0xff] %v9395_v1  ;;  %8227 = vmatprep.subr.msk.mxu1 %vm489_vm0, %v9390_v0  ;;  %8283 = vmatprep.subr.msk.mxu0 %vm489_vm0, %v9395_v1  ;;  %v9405_v2 = vld [vmem:[%s10797_s4] sm:$0xf]  ;;  %v9410_v3 = vld [vmem:[%s10797_s4 + $0x14] sm:$0xf]  ;;  %vm464_vm1 = vcmask 31744  }
  0x17   : > { %8228 = vmatpush3.msk.msra.mxu1 %vm489_vm0, %v9390_v0  ;;  %s345_s25 = scalar_select %p344_p10, %s9360_s9, 1  ;;  %8284 = vmatpush3.msk.msra.mxu0 %vm489_vm0, %v9395_v1  ;;  %v9470_v10 = vld [vmem:[%s10797_s4 + $0x8] sm:$0xf]  ;;  %v9475_v11 = vld [vmem:[%s10797_s4 + $0x18] sm:$0xf]  ;;  %vm364_vm2 = vcmask 64512  }
  0x18   : > { %8241 = vmatprep.subr.msk.mxu1 %vm489_vm0, %v9405_v2  ;;  %8297 = vmatprep.subr.msk.mxu0 %vm489_vm0, %v9410_v3  ;;  %10823 = vst [vmem:[#allocation7_spill] sm:$0xff] %v9470_v10  ;;  %v9534_v20 = vld [vmem:[%s10797_s4 + $0x1c] sm:$0xf]  ;;  %v9579_v29 = vld [vmem:[%s10797_s4 + $0xc] sm:$0xf]  ;;  %vm366_vm3 = vcmask 57344  }
  0x19   : > { %s9421_s26 = smul.u32 144, %s345_s25  ;;  %10825 = vst [vmem:[#allocation9_spill] sm:$0xff] %v9579_v29  ;;  %v9623_v35 = vld [vmem:[%s10797_s4 + $0x20] sm:$0xf]  ;;  %s7821_s24 = sshll.u32 %s9360_s9, 10 }
  0x1a   : > { %s10742_s12 = scalar_lea.hbm %s10801_s8, %s7821_s24  ;;  %s9291_s17 = smov [#allocation3]  }
  0x1b   : > { %s9427_s13 = scalar_lea.vmem %s10795_s2, %s9421_s26  ;;  %s9433_s19 = scalar_lea.vmem %s10793_s0, %s9421_s26 }
  0x1c   : > { %v9436_v4 = vld [vmem:[%s9427_s13 + $0x1] sm:$0xff]  ;;  %v9439_v5 = vld [vmem:[%s9433_s19 + $0x11] sm:$0xff]  ;;  %s9461_s22 = scalar_lea.vmem %s10794_s1, %s9421_s26  ;;  %s9525_s18 = scalar_lea.vmem %s10796_s3, %s9421_s26 }
  0x1d   : > { %v9442_v6 = vld [vmem:[%s9427_s13 + $0x11] sm:$0xff]  ;;  %8229 = vmatprep.mubr.msk.f32.mxu1 %vm464_vm1, %v9436_v4  ;;  %8285 = vmatprep.mubr.msk.f32.mxu0 %vm464_vm1, %v9439_v5  ;;  %v9449_v7 = vld [vmem:[%s9433_s19 + $0x21] sm:$0xff] }
  0x1e   : > { %v9452_v8 = vld [vmem:[%s9427_s13 + $0x21] sm:$0xff]  ;;  %v9455_v9 = vld [vmem:[%s9433_s19 + $0x31] sm:$0xff]  ;;  %8230 = vmatmul.mubr.msk.f32.vlgmr.msra.gmra.mrb[0].mxu1 %vm464_vm1, %v9442_v6  ;;  %8286 = vmatmul.mubr.msk.f32.vlgmr.msra.gmra.mrb[0].mxu0 %vm464_vm1, %v9449_v7 }
  0x1f   : > { %8242 = vmatpush3.msk.msra.mxu1 %vm489_vm0, %v9405_v2  ;;  %8232 = vmatprep.mubr.msk.f32.mxu1 %vm464_vm1, %v9452_v8  ;;  %v9482_v12 = vld [vmem:[%s9427_s13 + $0x31] sm:$0xff]  ;;  %v9485_v13 = vld [vmem:[%s9433_s19 + $0x41] sm:$0xff] }
  0x20   : > { %8288 = vmatprep.mubr.msk.f32.mxu0 %vm464_vm1, %v9455_v9  ;;  %v9490_v14 = vld [vmem:[%s9427_s13 + $0x41] sm:$0xff]  ;;  %8298 = vmatpush3.msk.msra.mxu0 %vm489_vm0, %v9410_v3  ;;  %v9495_v15 = vld [vmem:[%s9461_s22 + $0x11] sm:$0xff] }
  0x21   : > { %8255 = vmatprep.subr.msk.mxu1 %vm489_vm0, %v9470_v10  ;;  %8311 = vmatprep.subr.msk.mxu0 %vm489_vm0, %v9475_v11  ;;  %v9510_v16 = vld [vmem:[%s9427_s13 + $0x51] sm:$0xff]  ;;  %v9513_v17 = vld [vmem:[%s9461_s22 + $0x21] sm:$0xff] }
  0x22   : > { %8233 = vmatmul.mubr.msk.f32.gmra.mrb[2].mxu1 %vm464_vm1, %v9482_v12  ;;  %8289 = vmatmul.mubr.msk.f32.gmra.mrb[2].mxu0 %vm464_vm1, %v9485_v13  ;;  %v9516_v18 = vld [vmem:[%s9427_s13 + $0x61] sm:$0xff]  ;;  %v9519_v19 = vld [vmem:[%s9461_s22 + $0x31] sm:$0xff] }
  0x23   : > { %8235 = vmatprep.mubr.msk.f32.mxu1 %vm464_vm1, %v9490_v14  ;;  %8299 = vmatprep.mubr.msk.f32.mxu0 %vm464_vm1, %v9495_v15  ;;  %v9541_v21 = vld [vmem:[%s9427_s13 + $0x71] sm:$0xff]  ;;  %v9544_v22 = vld [vmem:[%s9461_s22 + $0x41] sm:$0xff] }
  0x24   : > { %v9547_v23 = vld [vmem:[%s9525_s18] sm:$0xff]  ;;  %v9550_v24 = vld [vmem:[%s9461_s22 + $0x51] sm:$0xff] }
  0x25   : > { %10824 = vst [vmem:[#allocation8_spill] sm:$0xff] %v9550_v24  ;;  %v9565_v25 = vld [vmem:[%s9525_s18 + $0x10] sm:$0xff]  ;;  %v9568_v26 = vld [vmem:[%s9461_s22 + $0x61] sm:$0xff] }
  0x26   : > { %8236 = vmatmul.mubr.msk.f32.gmra.mrb[4].mxu1 %vm464_vm1, %v9510_v16  ;;  %8300 = vmatmul.mubr.msk.f32.vlgmr.msra.gmra.mrb[0].mxu0 %vm464_vm1, %v9513_v17  ;;  %v9571_v27 = vld [vmem:[%s9525_s18 + $0x20] sm:$0xff]  ;;  %v9574_v28 = vld [vmem:[%s9461_s22 + $0x71] sm:$0xff] }
  0x27   : > { %8238 = vmatprep.mubr.msk.f32.mxu1 %vm464_vm1, %v9516_v18  ;;  %8302 = vmatprep.mubr.msk.f32.mxu0 %vm464_vm1, %v9519_v19  ;;  %v9590_v30 = vld [vmem:[%s9525_s18 + $0x30] sm:$0xff]  ;;  %v9593_v31 = vld [vmem:[%s9461_s22 + $0x81] sm:$0xff] }
  0x28   : > { %8312 = vmatpush3.msk.msra.mxu0 %vm489_vm0, %v9475_v11  ;;  %10826 = vst [vmem:[#allocation10_spill] sm:$0xff] %v9593_v31  ;;  %v9598_v32 = vld [vmem:[%s9525_s18 + $0x40] sm:$0xff]  ;;  %v9611_v33 = vld [vmem:[%s9525_s18 + $0x50] sm:$0xff] }
  0x29   : > { %8325 = vmatprep.subr.msk.mxu0 %vm489_vm0, %v9534_v20  ;;  %v9614_v34 = vld [vmem:[%s9525_s18 + $0x60] sm:$0xff]  ;;  %v9630_v36 = vld [vmem:[%s9525_s18 + $0x70] sm:$0xff] }
  0x2a   : > { %8239 = vmatmul.mubr.msk.f32.gmra.mrb[6].mxu1 %vm464_vm1, %v9541_v21  ;;  %8303 = vmatmul.mubr.msk.f32.gmra.mrb[2].mxu0 %vm464_vm1, %v9544_v22  ;;  %v9633_v37 = vld [vmem:[%s9525_s18 + $0x1] sm:$0xff]  ;;  %v9648_v38 = vld [vmem:[%s9525_s18 + $0x11] sm:$0xff] }
  0x2b   : > { %8243 = vmatprep.mubr.msk.f32.mxu1 %vm464_vm1, %v9547_v23  ;;  %8305 = vmatprep.mubr.msk.f32.mxu0 %vm464_vm1, %v9550_v24  ;;  %v9651_v39 = vld [vmem:[%s9525_s18 + $0x21] sm:$0xff]  ;;  %v9662_v40 = vld [vmem:[%s9525_s18 + $0x31] sm:$0xff] }
  0x2c   : > { %v9665_v41 = vld [vmem:[%s9525_s18 + $0x80] sm:$0xff]  ;;  %v9683_v43 = vld [vmem:[%s9525_s18 + $0x51] sm:$0xff] }
  0x2d   : > { %v9670_v42 = vld [vmem:[%s9525_s18 + $0x41] sm:$0xff]  ;;  %v9697_v45 = vld [vmem:[%s9525_s18 + $0x71] sm:$0xff] }
  0x2e   : > { %8244 = vmatmul.mubr.msk.f32.vlgmr.msra.gmra.mrb[0].mxu1 %vm464_vm1, %v9565_v25  ;;  %8306 = vmatmul.mubr.msk.f32.gmra.mrb[4].mxu0 %vm464_vm1, %v9568_v26  ;;  %v9686_v44 = vld [vmem:[%s9525_s18 + $0x61] sm:$0xff]  ;;  %v9700_v46 = vld [vmem:[%s9461_s22 + $0x10] sm:$0xff] }
  0x2f   : > { %8256 = vmatpush3.msk.msra.mxu1 %vm489_vm0, %v9470_v10  ;;  %8246 = vmatprep.mubr.msk.f32.mxu1 %vm464_vm1, %v9571_v27  ;;  %v9715_v47 = vld [vmem:[%s9461_s22 + $0x20] sm:$0xff]  ;;  %v9718_v48 = vld [vmem:[%s9461_s22 + $0x30] sm:$0xff] }
  0x30   : > { %8308 = vmatprep.mubr.msk.f32.mxu0 %vm464_vm1, %v9574_v28  ;;  %8269 = vmatprep.subr.msk.mxu1 %vm489_vm0, %v9579_v29  ;;  %v9729_v49 = vld [vmem:[%s9461_s22 + $0x40] sm:$0xff]  ;;  %v9737_v51 = vld [vmem:[%s9461_s22 + $0x50] sm:$0xff] }
  0x31   : > { %v9732_v50 = vld [vmem:[%s9427_s13 + $0x81] sm:$0xff]  ;;  %v9753_v53 = vld [vmem:[%s9461_s22 + $0x70] sm:$0xff] }
  0x32   : > { %8247 = vmatmul.mubr.msk.f32.gmra.mrb[2].mxu1 %vm464_vm1, %v9590_v30  ;;  %8309 = vmatmul.mubr.msk.f32.gmra.mrb[6].mxu0 %vm464_vm1, %v9593_v31  ;;  %10827 = vst [vmem:[#allocation11_spill] sm:$0xff] %v9732_v50  ;;  %v9750_v52 = vld [vmem:[%s9461_s22 + $0x60] sm:$0xff]  ;;  %v9767_v55 = vld [vmem:[%s9433_s19 + $0x51] sm:$0xff] }
  0x33   : > { %8249 = vmatprep.mubr.msk.f32.mxu1 %vm464_vm1, %v9598_v32  ;;  %8313 = vmatprep.mubr.msk.f32.mxu0 %vm464_vm1, %v9565_v25  ;;  %v9764_v54 = vld [vmem:[%s9461_s22 + $0x80] sm:$0xff]  ;;  %v9785_v57 = vld [vmem:[%s9433_s19 + $0x71] sm:$0xff] }
  0x34   : > { %v9782_v56 = vld [vmem:[%s9433_s19 + $0x61] sm:$0xff]  ;;  %v9860_v63 = vld [vmem:[%s9427_s13 + $0x10] sm:$0xff] }
  0x35   : > { %v9796_v58 = vld [vmem:[%s9433_s19 + $0x81] sm:$0xff] }
  0x36   : > { %8250 = vmatmul.mubr.msk.f32.gmra.mrb[4].mxu1 %vm464_vm1, %v9611_v33  ;;  %8314 = vmatmul.mubr.msk.f32.vlgmr.msra.gmra.mrb[0].mxu0 %vm464_vm1, %v9571_v27  ;;  %v7393_v59 = vld [vmem:[%s9525_s18 + $0x81] sm:$0xff] }
  0x37   : > { %8252 = vmatprep.mubr.msk.f32.mxu1 %vm464_vm1, %v9614_v34  ;;  %8316 = vmatprep.mubr.msk.f32.mxu0 %vm464_vm1, %v9590_v30  ;;  %v9804_v60 = vld [vmem:[%s9433_s19 + $0x1] sm:$0xff] }
  0x38   : > { %8326 = vmatpush3.msk.msra.mxu0 %vm489_vm0, %v9534_v20  ;;  %10828 = vst [vmem:[#allocation12_spill] sm:$0xff] %v9804_v60  ;;  %v9846_v61 = vld [vmem:[%s9427_s13] sm:$0xff] }
  0x39   : > { %8339 = vmatprep.subr.msk.mxu0 %vm489_vm0, %v9623_v35  ;;  %10829 = vst [vmem:[#allocation13_spill] sm:$0xff] %v9846_v61  ;;  %v9849_v62 = vld [vmem:[%s9461_s22] sm:$0xff] }
  0x3a   : > { %8253 = vmatmul.mubr.msk.f32.gmra.mrb[6].mxu1 %vm464_vm1, %v9630_v36  ;;  %8317 = vmatmul.mubr.msk.f32.gmra.mrb[2].mxu0 %vm464_vm1, %v9598_v32  ;;  %10830 = vst [vmem:[#allocation14_spill] sm:$0xff] %v9849_v62  ;;  %v9897_v31 = vld [vmem:[%s9427_s13 + $0x60] sm:$0xff] }
  0x3b   : > { %8257 = vmatprep.mubr.msk.f32.mxu1 %vm464_vm1, %v9633_v37  ;;  %8319 = vmatprep.mubr.msk.f32.mxu0 %vm464_vm1, %v9611_v33 }
  0x3e   : > { %8258 = vmatmul.mubr.msk.f32.vlgmr.msra.gmra.mrb[0].mxu1 %vm464_vm1, %v9648_v38  ;;  %8320 = vmatmul.mubr.msk.f32.gmra.mrb[4].mxu0 %vm464_vm1, %v9614_v34 }
  0x3f   : > { %8270 = vmatpush3.msk.msra.mxu1 %vm489_vm0, %v9579_v29  ;;  %8260 = vmatprep.mubr.msk.f32.mxu1 %vm464_vm1, %v9651_v39 }
  0x40   : > { %8322 = vmatprep.mubr.msk.f32.mxu0 %vm464_vm1, %v9630_v36  ;;  %8857 = vmatprep.subr.msk.mxu1 %vm489_vm0, %v9395_v1 }
  0x42   : > { %8261 = vmatmul.mubr.msk.f32.gmra.mrb[2].mxu1 %vm464_vm1, %v9662_v40  ;;  %8323 = vmatmul.mubr.msk.f32.gmra.mrb[6].mxu0 %vm464_vm1, %v9665_v41 }
  0x43   : > { %8263 = vmatprep.mubr.msk.f32.mxu1 %vm464_vm1, %v9670_v42  ;;  %8327 = vmatprep.mubr.msk.f32.mxu0 %vm464_vm1, %v9442_v6 }
  0x46   : > { %8264 = vmatmul.mubr.msk.f32.gmra.mrb[4].mxu1 %vm464_vm1, %v9683_v43  ;;  %8328 = vmatmul.mubr.msk.f32.vlgmr.msra.gmra.mrb[0].mxu0 %vm464_vm1, %v9452_v8 }
  0x47   : > { %8266 = vmatprep.mubr.msk.f32.mxu1 %vm464_vm1, %v9686_v44  ;;  %8330 = vmatprep.mubr.msk.f32.mxu0 %vm464_vm1, %v9482_v12 }
  0x48   : > { %8340 = vmatpush3.msk.msra.mxu0 %vm489_vm0, %v9623_v35 }
  0x49   : > { %8479 = vmatprep.subr.msk.mxu0 %vm489_vm0, %v9390_v0 }
  0x4a   : > { %8267 = vmatmul.mubr.msk.f32.gmra.mrb[6].mxu1 %vm464_vm1, %v9697_v45  ;;  %8331 = vmatmul.mubr.msk.f32.gmra.mrb[2].mxu0 %vm464_vm1, %v9490_v14 }
  0x4b   : > { %8271 = vmatprep.mubr.msk.f32.mxu1 %vm464_vm1, %v9700_v46  ;;  %8333 = vmatprep.mubr.msk.f32.mxu0 %vm464_vm1, %v9510_v16 }
  0x4e   : > { %8272 = vmatmul.mubr.msk.f32.vlgmr.msra.gmra.mrb[0].mxu1 %vm464_vm1, %v9715_v47  ;;  %8334 = vmatmul.mubr.msk.f32.gmra.mrb[4].mxu0 %vm464_vm1, %v9516_v18 }
  0x4f   : > { %8858 = vmatpush3.msk.msra.mxu1 %vm489_vm0, %v9395_v1  ;;  %8274 = vmatprep.mubr.msk.f32.mxu1 %vm464_vm1, %v9718_v48 }
  0x50   : > { %8336 = vmatprep.mubr.msk.f32.mxu0 %vm464_vm1, %v9541_v21  ;;  %8353 = vmatprep.subr.msk.mxu1 %vm489_vm0, %v9390_v0 }
  0x52   : > { %8275 = vmatmul.mubr.msk.f32.gmra.mrb[2].mxu1 %vm464_vm1, %v9729_v49  ;;  %8337 = vmatmul.mubr.msk.f32.gmra.mrb[6].mxu0 %vm464_vm1, %v9732_v50  ;;  %v3421_v50 = vld [vmem:[%s9461_s22 + $0x1] sm:$0xff] }
  0x53   : > { %8277 = vmatprep.mubr.msk.f32.mxu1 %vm464_vm1, %v9737_v51  ;;  %8341 = vmatprep.mubr.msk.f32.mxu0 %vm464_vm1, %v9648_v38 }
  0x56   : > { %8278 = vmatmul.mubr.msk.f32.gmra.mrb[4].mxu1 %vm464_vm1, %v9750_v52  ;;  %8342 = vmatmul.mubr.msk.f32.vlgmr.msra.gmra.mrb[0].mxu0 %vm464_vm1, %v9651_v39 }
  0x57   : > { %8280 = vmatprep.mubr.msk.f32.mxu1 %vm464_vm1, %v9753_v53  ;;  %8344 = vmatprep.mubr.msk.f32.mxu0 %vm464_vm1, %v9662_v40 }
  0x58   : > { %8480 = vmatpush3.msk.msra.mxu0 %vm489_vm0, %v9390_v0 }
  0x59   : > { %8493 = vmatprep.subr.msk.mxu0 %vm489_vm0, %v9405_v2 }
  0x5a   : > { %8281 = vmatmul.mubr.msk.f32.gmra.mrb[6].mxu1 %vm464_vm1, %v9764_v54  ;;  %8345 = vmatmul.mubr.msk.f32.gmra.mrb[2].mxu0 %vm464_vm1, %v9670_v42 }
  0x5b   : > { %8291 = vmatprep.mubr.msk.f32.mxu1 %vm464_vm1, %v9767_v55  ;;  %8347 = vmatprep.mubr.msk.f32.mxu0 %vm464_vm1, %v9683_v43 }
  0x5e   : > { %8292 = vmatmul.mubr.msk.f32.vlgmr.msra.gmra.mrb[4].mxu1 %vm464_vm1, %v9782_v56  ;;  %8348 = vmatmul.mubr.msk.f32.gmra.mrb[4].mxu0 %vm464_vm1, %v9686_v44 }
  0x5f   : > { %8354 = vmatpush3.msk.msra.mxu1 %vm489_vm0, %v9390_v0  ;;  %8294 = vmatprep.mubr.msk.f32.mxu1 %vm464_vm1, %v9785_v57 }
  0x60   : > { %8350 = vmatprep.mubr.msk.f32.mxu0 %vm464_vm1, %v9697_v45  ;;  %8367 = vmatprep.subr.msk.mxu1 %vm489_vm0, %v9405_v2 }
  0x62   : > { %8295 = vmatmul.mubr.msk.f32.gmra.mrb[6].mxu1 %vm464_vm1, %v9796_v58  ;;  %8351 = vmatmul.mubr.msk.f32.gmra.mrb[6].mxu0 %vm464_vm1, %v7393_v59  ;;  %v9863_v59 = vld [vmem:[%s9427_s13 + $0x20] sm:$0xff] }
  0x63   : > { %8355 = vmatprep.mubr.msk.f32.mxu1 %vm464_vm1, %v9547_v23  ;;  %8481 = vmatprep.mubr.msk.f32.mxu0 %vm464_vm1, %v9804_v60  ;;  %v9879_v60 = vld [vmem:[%s9427_s13 + $0x40] sm:$0xff] }
  0x66   : > { %8356 = vmatmul.mubr.msk.f32.vlgmr.msra.gmra.mrb[8].mxu1 %vm464_vm1, %v9565_v25  ;;  %8482 = vmatmul.mubr.msk.f32.vlgmr.msra.gmra.mrb[8].mxu0 %vm464_vm1, %v9439_v5 }
  0x67   : > { %8368 = vmatpush3.msk.msra.mxu1 %vm489_vm0, %v9405_v2  ;;  %8358 = vmatprep.mubr.msk.f32.mxu1 %vm464_vm1, %v9571_v27 }
  0x68   : > { %8484 = vmatprep.mubr.msk.f32.mxu0 %vm464_vm1, %v9449_v7  ;;  %8381 = vmatprep.subr.msk.mxu1 %vm489_vm0, %v9470_v10 }
  0x69   : > { %8494 = vmatpush3.msk.msra.mxu0 %vm489_vm0, %v9405_v2 }
  0x6a   : > { %8359 = vmatmul.mubr.msk.f32.gmra.mrb[10].mxu1 %vm464_vm1, %v9590_v30  ;;  %8485 = vmatmul.mubr.msk.f32.gmra.mrb[10].mxu0 %vm464_vm1, %v9455_v9 }
  0x6b   : > { %8361 = vmatprep.mubr.msk.f32.mxu1 %vm464_vm1, %v9598_v32  ;;  %8487 = vmatprep.mubr.msk.f32.mxu0 %vm464_vm1, %v9485_v13 }
  0x6c   : > { %8507 = vmatprep.subr.msk.mxu0 %vm489_vm0, %v9470_v10 }
  0x6e   : > { %8362 = vmatmul.mubr.msk.f32.gmra.mrb[12].mxu1 %vm464_vm1, %v9611_v33  ;;  %8488 = vmatmul.mubr.msk.f32.gmra.mrb[12].mxu0 %vm464_vm1, %v9767_v55 }
  0x6f   : > { %8364 = vmatprep.mubr.msk.f32.mxu1 %vm464_vm1, %v9614_v34  ;;  %8490 = vmatprep.mubr.msk.f32.mxu0 %vm464_vm1, %v9782_v56 }
  0x72   : > { %8365 = vmatmul.mubr.msk.f32.gmra.mrb[14].mxu1 %vm464_vm1, %v9630_v36  ;;  %8491 = vmatmul.mubr.msk.f32.gmra.mrb[14].mxu0 %vm464_vm1, %v9785_v57 }
  0x73   : > { %8369 = vmatprep.mubr.msk.f32.mxu1 %vm464_vm1, %v9846_v61  ;;  %8495 = vmatprep.mubr.msk.f32.mxu0 %vm464_vm1, %v9849_v62  ;;  %v9874_v61 = vld [vmem:[%s9427_s13 + $0x30] sm:$0xff] }
  0x74   : > { %v9894_v62 = vld [vmem:[%s9427_s13 + $0x50] sm:$0xff] }
  0x76   : > { %8370 = vmatmul.mubr.msk.f32.vlgmr.msra.gmra.mrb[8].mxu1 %vm464_vm1, %v9860_v63  ;;  %8496 = vmatmul.mubr.msk.f32.vlgmr.msra.gmra.mrb[8].mxu0 %vm464_vm1, %v9700_v46 }
  0x77   : > { %8382 = vmatpush3.msk.msra.mxu1 %vm489_vm0, %v9470_v10  ;;  %8372 = vmatprep.mubr.msk.f32.mxu1 %vm464_vm1, %v9863_v59 }
  0x78   : > { %8498 = vmatprep.mubr.msk.f32.mxu0 %vm464_vm1, %v9715_v47  ;;  %8395 = vmatprep.subr.msk.mxu1 %vm489_vm0, %v9579_v29 }
  0x79   : > { %8508 = vmatpush3.msk.msra.mxu0 %vm489_vm0, %v9470_v10  ;;  %v9910_v10 = vld [vmem:[%s9427_s13 + $0x70] sm:$0xff] }
  0x7a   : > { %8373 = vmatmul.mubr.msk.f32.gmra.mrb[10].mxu1 %vm464_vm1, %v9874_v61  ;;  %8499 = vmatmul.mubr.msk.f32.gmra.mrb[10].mxu0 %vm464_vm1, %v9718_v48 }
  0x7b   : > { %8375 = vmatprep.mubr.msk.f32.mxu1 %vm464_vm1, %v9879_v60  ;;  %8501 = vmatprep.mubr.msk.f32.mxu0 %vm464_vm1, %v9729_v49 }
  0x7c   : > { %8521 = vmatprep.subr.msk.mxu0 %vm489_vm0, %v9579_v29 }
  0x7e   : > { %8376 = vmatmul.mubr.msk.f32.gmra.mrb[12].mxu1 %vm464_vm1, %v9894_v62  ;;  %8502 = vmatmul.mubr.msk.f32.gmra.mrb[12].mxu0 %vm464_vm1, %v9737_v51 }
  0x7f   : > { %8378 = vmatprep.mubr.msk.f32.mxu1 %vm464_vm1, %v9897_v31  ;;  %8504 = vmatprep.mubr.msk.f32.mxu0 %vm464_vm1, %v9750_v52 }
  0x82   : > { %8379 = vmatmul.mubr.msk.f32.gmra.mrb[14].mxu1 %vm464_vm1, %v9910_v10  ;;  %8505 = vmatmul.mubr.msk.f32.gmra.mrb[14].mxu0 %vm464_vm1, %v9753_v53 }
  0x83   : > { %8383 = vmatprep.mubr.msk.f32.mxu1 %vm464_vm1, %v9436_v4  ;;  %8509 = vmatprep.mubr.msk.f32.mxu0 %vm464_vm1, %v3421_v50  ;;  %v9953_v50 = vld [vmem:[%s9433_s19 + $0x10] sm:$0xff] }
  0x84   : > { %10831 = vst [vmem:[#allocation15_spill] sm:$0xff] %v9953_v50 }
  0x86   : > { %8384 = vmatmul.mubr.msk.f32.vlgmr.msra.gmra.mrb[8].mxu1 %vm464_vm1, %v9442_v6  ;;  %8510 = vmatmul.mubr.msk.f32.vlgmr.msra.gmra.mrb[8].mxu0 %vm464_vm1, %v9495_v15 }
  0x87   : > { %8396 = vmatpush3.msk.msra.mxu1 %vm489_vm0, %v9579_v29  ;;  %8386 = vmatprep.mubr.msk.f32.mxu1 %vm464_vm1, %v9452_v8 }
  0x88   : > { %8512 = vmatprep.mubr.msk.f32.mxu0 %vm464_vm1, %v9513_v17  ;;  %8409 = vmatprep.subr.msk.mxu1 %vm489_vm0, %v9395_v1 }
  0x89   : > { %8522 = vmatpush3.msk.msra.mxu0 %vm489_vm0, %v9579_v29  ;;  %v9964_v29 = vld [vmem:[%s9433_s19 + $0x20] sm:$0xff] }
  0x8a   : > { %8387 = vmatmul.mubr.msk.f32.gmra.mrb[10].mxu1 %vm464_vm1, %v9482_v12  ;;  %8513 = vmatmul.mubr.msk.f32.gmra.mrb[10].mxu0 %vm464_vm1, %v9519_v19  ;;  %10832 = vst [vmem:[#allocation16_spill] sm:$0xff] %v9964_v29 }
  0x8b   : > { %8389 = vmatprep.mubr.msk.f32.mxu1 %vm464_vm1, %v9490_v14  ;;  %8515 = vmatprep.mubr.msk.f32.mxu0 %vm464_vm1, %v9544_v22 }
  0x8c   : > { %8535 = vmatprep.subr.msk.mxu0 %vm489_vm0, %v9395_v1 }
  0x8e   : > { %8390 = vmatmul.mubr.msk.f32.gmra.mrb[12].mxu1 %vm464_vm1, %v9510_v16  ;;  %8516 = vmatmul.mubr.msk.f32.gmra.mrb[12].mxu0 %vm464_vm1, %v9550_v24  ;;  %v9967_v24 = vld [vmem:[%s9433_s19 + $0x30] sm:$0xff] }
  0x8f   : > { %8392 = vmatprep.mubr.msk.f32.mxu1 %vm464_vm1, %v9516_v18  ;;  %8518 = vmatprep.mubr.msk.f32.mxu0 %vm464_vm1, %v9568_v26  ;;  %10833 = vst [vmem:[#allocation17_spill] sm:$0xff] %v9967_v24 }
  0x92   : > { %8393 = vmatmul.mubr.msk.f32.gmra.mrb[14].mxu1 %vm464_vm1, %v9541_v21  ;;  %8519 = vmatmul.mubr.msk.f32.gmra.mrb[14].mxu0 %vm464_vm1, %v9574_v28 }
  0x93   : > { %8397 = vmatprep.mubr.msk.f32.mxu1 %vm464_vm1, %v9953_v50  ;;  %8523 = vmatprep.mubr.msk.f32.mxu0 %vm464_vm1, %v9547_v23  ;;  %v9978_v50 = vld [vmem:[%s9433_s19 + $0x40] sm:$0xff]  ;;  %v9983_v23 = vld [vmem:[%s9433_s19 + $0x50] sm:$0xff] }
  0x96   : > { %8398 = vmatmul.mubr.msk.f32.vlgmr.msra.gmra.mrb[8].mxu1 %vm464_vm1, %v9964_v29  ;;  %8524 = vmatmul.mubr.msk.f32.vlgmr.msra.gmra.mrb[8].mxu0 %vm464_vm1, %v9565_v25  ;;  %v10001_v29 = vld [vmem:[%s9433_s19 + $0x70] sm:$0xff] }
  0x97   : > { %8410 = vmatpush3.msk.msra.mxu1 %vm489_vm0, %v9395_v1  ;;  %8400 = vmatprep.mubr.msk.f32.mxu1 %vm464_vm1, %v9967_v24  ;;  %v9998_v24 = vld [vmem:[%s9433_s19 + $0x60] sm:$0xff] }
  0x98   : > { %8526 = vmatprep.mubr.msk.f32.mxu0 %vm464_vm1, %v9571_v27  ;;  %8423 = vmatprep.subr.msk.mxu1 %vm489_vm0, %v9410_v3 }
  0x99   : > { %8536 = vmatpush3.msk.msra.mxu0 %vm489_vm0, %v9395_v1  ;;  %v10014_v1 = vld [vmem:[%s9433_s19 + $0x80] sm:$0xff] }
  0x9a   : > { %8401 = vmatmul.mubr.msk.f32.gmra.mrb[10].mxu1 %vm464_vm1, %v9978_v50  ;;  %8527 = vmatmul.mubr.msk.f32.gmra.mrb[10].mxu0 %vm464_vm1, %v9590_v30 }
  0x9b   : > { %8403 = vmatprep.mubr.msk.f32.mxu1 %vm464_vm1, %v9983_v23  ;;  %8529 = vmatprep.mubr.msk.f32.mxu0 %vm464_vm1, %v9598_v32 }
  0x9c   : > { %8549 = vmatprep.subr.msk.mxu0 %vm489_vm0, %v9410_v3 }
  0x9e   : > { %8404 = vmatmul.mubr.msk.f32.gmra.mrb[12].mxu1 %vm464_vm1, %v9998_v24  ;;  %8530 = vmatmul.mubr.msk.f32.gmra.mrb[12].mxu0 %vm464_vm1, %v9611_v33 }
  0x9f   : > { %8406 = vmatprep.mubr.msk.f32.mxu1 %vm464_vm1, %v10001_v29  ;;  %8532 = vmatprep.mubr.msk.f32.mxu0 %vm464_vm1, %v9614_v34 }
  0xa2   : > { %8407 = vmatmul.mubr.msk.f32.gmra.mrb[14].mxu1 %vm464_vm1, %v10014_v1  ;;  %8533 = vmatmul.mubr.msk.f32.gmra.mrb[14].mxu0 %vm464_vm1, %v9630_v36 }
  0xa3   : > { %8411 = vmatprep.mubr.msk.f32.mxu1 %vm464_vm1, %v9700_v46  ;;  %8537 = vmatprep.mubr.msk.f32.mxu0 %vm464_vm1, %v9436_v4  ;;  %v9290_v4 = vmov 0.0  }
  0xa4   : > { %370 = vst.msk [vmem:[#allocation2 + $0x20] sm:$0xff] %vm364_vm2, %v9290_v4  ;;  %365 = vst.msk [vmem:[#allocation2] sm:$0xff] %vm364_vm2, %v9290_v4 }
  0xa5   : > { %371 = vst.msk [vmem:[#allocation2 + $0x28] sm:$0x1] %vm366_vm3, %v9290_v4  ;;  %367 = vst.msk [vmem:[#allocation2 + $0x8] sm:$0x1] %vm366_vm3, %v9290_v4 }
  0xa6   : > { %8412 = vmatmul.mubr.msk.f32.vlgmr.msra.gmra.mrb[8].mxu1 %vm464_vm1, %v9715_v47  ;;  %8538 = vmatmul.mubr.msk.f32.vlgmr.msra.gmra.mrb[8].mxu0 %vm464_vm1, %v9442_v6  ;;  %368 = vst.msk [vmem:[#allocation2 + $0x10] sm:$0xff] %vm364_vm2, %v9290_v4  ;;  %372 = vst.msk [vmem:[#allocation2 + $0x30] sm:$0xff] %vm364_vm2, %v9290_v4 }
  0xa7   : > { %8424 = vmatpush3.msk.msra.mxu1 %vm489_vm0, %v9410_v3  ;;  %8414 = vmatprep.mubr.msk.f32.mxu1 %vm464_vm1, %v9718_v48  ;;  %369 = vst.msk [vmem:[#allocation2 + $0x18] sm:$0x1] %vm366_vm3, %v9290_v4  ;;  %373 = vst.msk [vmem:[#allocation2 + $0x38] sm:$0x1] %vm366_vm3, %v9290_v4 }
  0xa8   : > { %8540 = vmatprep.mubr.msk.f32.mxu0 %vm464_vm1, %v9452_v8  ;;  %8437 = vmatprep.subr.msk.mxu1 %vm489_vm0, %v9475_v11  ;;  %374 = vst.msk [vmem:[#allocation2 + $0x40] sm:$0xff] %vm364_vm2, %v9290_v4  ;;  %376 = vst.msk [vmem:[#allocation2 + $0x50] sm:$0xff] %vm364_vm2, %v9290_v4 }
  0xa9   : > { %375 = vst.msk [vmem:[#allocation2 + $0x48] sm:$0x1] %vm366_vm3, %v9290_v4  ;;  %377 = vst.msk [vmem:[#allocation2 + $0x58] sm:$0x1] %vm366_vm3, %v9290_v4  ;;  %8550 = vmatpush3.msk.msra.mxu0 %vm489_vm0, %v9410_v3 }
  0xaa   : > { %378 = vst.msk [vmem:[#allocation2 + $0x60] sm:$0xff] %vm364_vm2, %v9290_v4  ;;  %380 = vst.msk [vmem:[#allocation2 + $0x70] sm:$0xff] %vm364_vm2, %v9290_v4  ;;  %8415 = vmatmul.mubr.msk.f32.gmra.mrb[10].mxu1 %vm464_vm1, %v9729_v49  ;;  %8541 = vmatmul.mubr.msk.f32.gmra.mrb[10].mxu0 %vm464_vm1, %v9482_v12 }
  0xab   : > { %379 = vst.msk [vmem:[#allocation2 + $0x68] sm:$0x1] %vm366_vm3, %v9290_v4  ;;  %381 = vst.msk [vmem:[#allocation2 + $0x78] sm:$0x1] %vm366_vm3, %v9290_v4  ;;  %8417 = vmatprep.mubr.msk.f32.mxu1 %vm464_vm1, %v9737_v51  ;;  %8543 = vmatprep.mubr.msk.f32.mxu0 %vm464_vm1, %v9490_v14 }
  0xac   : > { %382 = vst.msk [vmem:[#allocation2 + $0x80] sm:$0xff] %vm364_vm2, %v9290_v4  ;;  %384 = vst.msk [vmem:[#allocation2 + $0x90] sm:$0xff] %vm364_vm2, %v9290_v4  ;;  %8563 = vmatprep.subr.msk.mxu0 %vm489_vm0, %v9475_v11 }
  0xad   : > { %383 = vst.msk [vmem:[#allocation2 + $0x88] sm:$0x1] %vm366_vm3, %v9290_v4  ;;  %403 = vst.msk [vmem:[#allocation2 + $0x128] sm:$0x1] %vm366_vm3, %v9290_v4 }
  0xae   : > { %386 = vst.msk [vmem:[#allocation2 + $0xa0] sm:$0xff] %vm364_vm2, %v9290_v4  ;;  %388 = vst.msk [vmem:[#allocation2 + $0xb0] sm:$0xff] %vm364_vm2, %v9290_v4  ;;  %8418 = vmatmul.mubr.msk.f32.gmra.mrb[12].mxu1 %vm464_vm1, %v9750_v52  ;;  %8544 = vmatmul.mubr.msk.f32.gmra.mrb[12].mxu0 %vm464_vm1, %v9510_v16 }
  0xaf   : > { %390 = vst.msk [vmem:[#allocation2 + $0xc0] sm:$0xff] %vm364_vm2, %v9290_v4  ;;  %392 = vst.msk [vmem:[#allocation2 + $0xd0] sm:$0xff] %vm364_vm2, %v9290_v4  ;;  %8420 = vmatprep.mubr.msk.f32.mxu1 %vm464_vm1, %v9753_v53  ;;  %8546 = vmatprep.mubr.msk.f32.mxu0 %vm464_vm1, %v9516_v18 }
  0xb0   : > { %394 = vst.msk [vmem:[#allocation2 + $0xe0] sm:$0xff] %vm364_vm2, %v9290_v4  ;;  %396 = vst.msk [vmem:[#allocation2 + $0xf0] sm:$0xff] %vm364_vm2, %v9290_v4 }
  0xb1   : > { %398 = vst.msk [vmem:[#allocation2 + $0x100] sm:$0xff] %vm364_vm2, %v9290_v4  ;;  %400 = vst.msk [vmem:[#allocation2 + $0x110] sm:$0xff] %vm364_vm2, %v9290_v4 }
  0xb2   : > { %402 = vst.msk [vmem:[#allocation2 + $0x120] sm:$0xff] %vm364_vm2, %v9290_v4  ;;  %404 = vst.msk [vmem:[#allocation2 + $0x130] sm:$0xff] %vm364_vm2, %v9290_v4  ;;  %8421 = vmatmul.mubr.msk.f32.gmra.mrb[14].mxu1 %vm464_vm1, %v9764_v54  ;;  %8547 = vmatmul.mubr.msk.f32.gmra.mrb[14].mxu0 %vm464_vm1, %v9541_v21 }
  0xb3   : > { %405 = vst.msk [vmem:[#allocation2 + $0x138] sm:$0x1] %vm366_vm3, %v9290_v4  ;;  %407 = vst.msk [vmem:[#allocation2 + $0x148] sm:$0x1] %vm366_vm3, %v9290_v4  ;;  %8425 = vmatprep.mubr.msk.f32.mxu1 %vm464_vm1, %v9439_v5  ;;  %8551 = vmatprep.mubr.msk.f32.mxu0 %vm464_vm1, %v9633_v37 }
  0xb4   : > { %406 = vst.msk [vmem:[#allocation2 + $0x140] sm:$0xff] %vm364_vm2, %v9290_v4  ;;  %408 = vst.msk [vmem:[#allocation2 + $0x150] sm:$0xff] %vm364_vm2, %v9290_v4 }
  0xb5   : > { %409 = vst.msk [vmem:[#allocation2 + $0x158] sm:$0x1] %vm366_vm3, %v9290_v4  ;;  %411 = vst.msk [vmem:[#allocation2 + $0x168] sm:$0x1] %vm366_vm3, %v9290_v4 }
  0xb6   : > { %410 = vst.msk [vmem:[#allocation2 + $0x160] sm:$0xff] %vm364_vm2, %v9290_v4  ;;  %412 = vst.msk [vmem:[#allocation2 + $0x170] sm:$0xff] %vm364_vm2, %v9290_v4  ;;  %8426 = vmatmul.mubr.msk.f32.vlgmr.msra.gmra.mrb[8].mxu1 %vm464_vm1, %v9449_v7  ;;  %8552 = vmatmul.mubr.msk.f32.vlgmr.msra.gmra.mrb[8].mxu0 %vm464_vm1, %v9648_v38 }
  0xb7   : > { %413 = vst.msk [vmem:[#allocation2 + $0x178] sm:$0x1] %vm366_vm3, %v9290_v4  ;;  %415 = vst.msk [vmem:[#allocation2 + $0x188] sm:$0x1] %vm366_vm3, %v9290_v4  ;;  %8438 = vmatpush3.msk.msra.mxu1 %vm489_vm0, %v9475_v11  ;;  %8428 = vmatprep.mubr.msk.f32.mxu1 %vm464_vm1, %v9455_v9 }
  0xb8   : > { %414 = vst.msk [vmem:[#allocation2 + $0x180] sm:$0xff] %vm364_vm2, %v9290_v4  ;;  %416 = vst.msk [vmem:[#allocation2 + $0x190] sm:$0xff] %vm364_vm2, %v9290_v4  ;;  %8554 = vmatprep.mubr.msk.f32.mxu0 %vm464_vm1, %v9651_v39  ;;  %8451 = vmatprep.subr.msk.mxu1 %vm489_vm0, %v9534_v20 }
  0xb9   : > { %417 = vst.msk [vmem:[#allocation2 + $0x198] sm:$0x1] %vm366_vm3, %v9290_v4  ;;  %8564 = vmatpush3.msk.msra.mxu0 %vm489_vm0, %v9475_v11  ;;  %v7489_v11 = vld [vmem:[%s9427_s13 + $0x80] sm:$0xff] }
  0xba   : > { %420 = vst.msk [vmem:[#allocation2 + $0x1b0] sm:$0xff] %vm364_vm2, %v9290_v4  ;;  %422 = vst.msk [vmem:[#allocation2 + $0x1c0] sm:$0xff] %vm364_vm2, %v9290_v4  ;;  %8429 = vmatmul.mubr.msk.f32.gmra.mrb[10].mxu1 %vm464_vm1, %v9485_v13  ;;  %8555 = vmatmul.mubr.msk.f32.gmra.mrb[10].mxu0 %vm464_vm1, %v9662_v40 }
  0xbb   : > { %424 = vst.msk [vmem:[#allocation2 + $0x1d0] sm:$0xff] %vm364_vm2, %v9290_v4  ;;  %426 = vst.msk [vmem:[#allocation2 + $0x1e0] sm:$0xff] %vm364_vm2, %v9290_v4  ;;  %8431 = vmatprep.mubr.msk.f32.mxu1 %vm464_vm1, %v9767_v55  ;;  %8557 = vmatprep.mubr.msk.f32.mxu0 %vm464_vm1, %v9670_v42 }
  0xbc   : > { %428 = vst.msk [vmem:[#allocation2 + $0x1f0] sm:$0xff] %vm364_vm2, %v9290_v4  ;;  %430 = vst.msk [vmem:[#allocation2 + $0x200] sm:$0xff] %vm364_vm2, %v9290_v4  ;;  %8577 = vmatprep.subr.msk.mxu0 %vm489_vm0, %v9534_v20 }
  0xbd   : > { %432 = vst.msk [vmem:[#allocation2 + $0x210] sm:$0xff] %vm364_vm2, %v9290_v4  ;;  %434 = vst.msk [vmem:[#allocation2 + $0x220] sm:$0xff] %vm364_vm2, %v9290_v4 }
  0xbe   : > { %8432 = vmatmul.mubr.msk.f32.gmra.mrb[12].mxu1 %vm464_vm1, %v9782_v56  ;;  %8558 = vmatmul.mubr.msk.f32.gmra.mrb[12].mxu0 %vm464_vm1, %v9683_v43 }
  0xbf   : > { %8434 = vmatprep.mubr.msk.f32.mxu1 %vm464_vm1, %v9785_v57  ;;  %8560 = vmatprep.mubr.msk.f32.mxu0 %vm464_vm1, %v9686_v44 }
  0xc2   : > { %8435 = vmatmul.mubr.msk.f32.gmra.mrb[14].mxu1 %vm464_vm1, %v9796_v58  ;;  %8561 = vmatmul.mubr.msk.f32.gmra.mrb[14].mxu0 %vm464_vm1, %v9697_v45  ;;  %v5041_v45 = vld [vmem:[%s9525_s18] sm:$0xff] }
  0xc3   : > { %8439 = vmatprep.mubr.msk.f32.mxu1 %vm464_vm1, %v9860_v63  ;;  %8565 = vmatprep.mubr.msk.f32.mxu0 %vm464_vm1, %v9700_v46 }
  0xc6   : > { %8440 = vmatmul.mubr.msk.f32.vlgmr.msra.gmra.mrb[8].mxu1 %vm464_vm1, %v9863_v59  ;;  %8566 = vmatmul.mubr.msk.f32.vlgmr.msra.gmra.mrb[8].mxu0 %vm464_vm1, %v9715_v47 }
  0xc7   : > { %8452 = vmatpush3.msk.msra.mxu1 %vm489_vm0, %v9534_v20  ;;  %8442 = vmatprep.mubr.msk.f32.mxu1 %vm464_vm1, %v9874_v61 }
  0xc8   : > { %8568 = vmatprep.mubr.msk.f32.mxu0 %vm464_vm1, %v9718_v48  ;;  %8465 = vmatprep.subr.msk.mxu1 %vm489_vm0, %v9623_v35 }
  0xc9   : > { %8578 = vmatpush3.msk.msra.mxu0 %vm489_vm0, %v9534_v20  ;;  %v10844_v20 = vld [vmem:[#allocation6_spill] sm:$0xff] }
  0xca   : > { %8443 = vmatmul.mubr.msk.f32.gmra.mrb[10].mxu1 %vm464_vm1, %v9879_v60  ;;  %8569 = vmatmul.mubr.msk.f32.gmra.mrb[10].mxu0 %vm464_vm1, %v9729_v49 }
  0xcb   : > { %8445 = vmatprep.mubr.msk.f32.mxu1 %vm464_vm1, %v9894_v62  ;;  %8571 = vmatprep.mubr.msk.f32.mxu0 %vm464_vm1, %v9737_v51 }
  0xcc   : > { %8591 = vmatprep.subr.msk.mxu0 %vm489_vm0, %v9623_v35 }
  0xce   : > { %8446 = vmatmul.mubr.msk.f32.gmra.mrb[12].mxu1 %vm464_vm1, %v9897_v31  ;;  %8572 = vmatmul.mubr.msk.f32.gmra.mrb[12].mxu0 %vm464_vm1, %v9750_v52 }
  0xcf   : > { %8448 = vmatprep.mubr.msk.f32.mxu1 %vm464_vm1, %v9910_v10  ;;  %8574 = vmatprep.mubr.msk.f32.mxu0 %vm464_vm1, %v9753_v53 }
  0xd2   : > { %8449 = vmatmul.mubr.msk.f32.gmra.mrb[14].mxu1 %vm464_vm1, %v7489_v11  ;;  %8575 = vmatmul.mubr.msk.f32.gmra.mrb[14].mxu0 %vm464_vm1, %v9764_v54 }
  0xd3   : > { %8453 = vmatprep.mubr.msk.f32.mxu1 %vm464_vm1, %v9565_v25  ;;  %8579 = vmatprep.mubr.msk.f32.mxu0 %vm464_vm1, %v9439_v5  ;;  %v10834_v5 = vld [vmem:[#allocation8_spill] sm:$0xff]  ;;  %v10845_v25 = vld [vmem:[#allocation13_spill] sm:$0xff] }
  0xd6   : > { %8454 = vmatmul.mubr.msk.f32.vlgmr.msra.gmra.mrb[8].mxu1 %vm464_vm1, %v9571_v27  ;;  %8580 = vmatmul.mubr.msk.f32.vlgmr.msra.gmra.mrb[8].mxu0 %vm464_vm1, %v9449_v7  ;;  %v10837_v7 = vld [vmem:[#allocation14_spill] sm:$0xff] }
  0xd7   : > { %8466 = vmatpush3.msk.msra.mxu1 %vm489_vm0, %v9623_v35  ;;  %8456 = vmatprep.mubr.msk.f32.mxu1 %vm464_vm1, %v9590_v30 }
  0xd8   : > { %8582 = vmatprep.mubr.msk.f32.mxu0 %vm464_vm1, %v9455_v9  ;;  %8592 = vmatpush3.msk.msra.mxu0 %vm489_vm0, %v9623_v35  ;;  %v10839_v9 = vld [vmem:[#allocation15_spill] sm:$0xff] }
  0xd9   : > { %8605 = vmatprep.subr.msk.mxu1 %vm489_vm0, %v9390_v0 }
  0xda   : > { %8457 = vmatmul.mubr.msk.f32.gmra.mrb[10].mxu1 %vm464_vm1, %v9598_v32  ;;  %8583 = vmatmul.mubr.msk.f32.gmra.mrb[10].mxu0 %vm464_vm1, %v9485_v13  ;;  %v10841_v13 = vld [vmem:[#allocation9_spill] sm:$0xff] }
  0xdb   : > { %8459 = vmatprep.mubr.msk.f32.mxu1 %vm464_vm1, %v9611_v33  ;;  %8585 = vmatprep.mubr.msk.f32.mxu0 %vm464_vm1, %v9767_v55 }
  0xde   : > { %8460 = vmatmul.mubr.msk.f32.gmra.mrb[12].mxu1 %vm464_vm1, %v9614_v34  ;;  %8586 = vmatmul.mubr.msk.f32.gmra.mrb[12].mxu0 %vm464_vm1, %v9782_v56 }
  0xdf   : > { %8462 = vmatprep.mubr.msk.f32.mxu1 %vm464_vm1, %v9630_v36  ;;  %8588 = vmatprep.mubr.msk.f32.mxu0 %vm464_vm1, %v9785_v57 }
  0xe2   : > { %8463 = vmatmul.mubr.msk.f32.gmra.mrb[14].mxu1 %vm464_vm1, %v9665_v41  ;;  %8589 = vmatmul.mubr.msk.f32.gmra.mrb[14].mxu0 %vm464_vm1, %v9796_v58 }
  0xe3   : > { %8467 = vmatprep.mubr.msk.f32.mxu1 %vm464_vm1, %v9442_v6  ;;  %8593 = vmatprep.mubr.msk.f32.mxu0 %vm464_vm1, %v9495_v15  ;;  %v10836_v6 = vld [vmem:[#allocation10_spill] sm:$0xff]  ;;  %v10843_v15 = vld [vmem:[#allocation12_spill] sm:$0xff] }
  0xe6   : > { %8468 = vmatmul.mubr.msk.f32.vlgmr.msra.gmra.mrb[8].mxu1 %vm464_vm1, %v9452_v8  ;;  %8594 = vmatmul.mubr.msk.f32.vlgmr.msra.gmra.mrb[8].mxu0 %vm464_vm1, %v9513_v17  ;;  %v10838_v8 = vld [vmem:[#allocation7_spill] sm:$0xff] }
  0xe7   : > { %8606 = vmatpush3.msk.msra.mxu1 %vm489_vm0, %v9390_v0  ;;  %8470 = vmatprep.mubr.msk.f32.mxu1 %vm464_vm1, %v9482_v12  ;;  %v10835_v0 = vld [vmem:[#allocation11_spill] sm:$0xff]  ;;  %v10840_v12 = vld [vmem:[#allocation16_spill] sm:$0xff] }
  0xe8   : > { %8596 = vmatprep.mubr.msk.f32.mxu0 %vm464_vm1, %v9519_v19  ;;  %8619 = vmatprep.subr.msk.mxu1 %vm489_vm0, %v9405_v2  ;;  %v10311_v17 = vld [vmem:[%s9433_s19 + $0x21] sm:$0xff] }
  0xe9   : > { %v10323_v19 = vld [vmem:[%s9433_s19 + $0x41] sm:$0xff] }
  0xea   : > { %8471 = vmatmul.mubr.msk.f32.gmra.mrb[10].mxu1 %vm464_vm1, %v9490_v14  ;;  %8597 = vmatmul.mubr.msk.f32.gmra.mrb[10].mxu0 %vm464_vm1, %v9544_v22  ;;  %v10842_v14 = vld [vmem:[#allocation17_spill] sm:$0xff] }
  0xeb   : > { %8473 = vmatprep.mubr.msk.f32.mxu1 %vm464_vm1, %v9510_v16  ;;  %8599 = vmatprep.mubr.msk.f32.mxu0 %vm464_vm1, %v10834_v5  ;;  %v10308_v16 = vld [vmem:[%s9433_s19 + $0x11] sm:$0xff] }
  0xee   : > { %8474 = vmatmul.mubr.msk.f32.gmra.mrb[12].mxu1 %vm464_vm1, %v9516_v18  ;;  %8600 = vmatmul.mubr.msk.f32.gmra.mrb[12].mxu0 %vm464_vm1, %v9568_v26  ;;  %v10320_v18 = vld [vmem:[%s9433_s19 + $0x31] sm:$0xff] }
  0xef   : > { %8476 = vmatprep.mubr.msk.f32.mxu1 %vm464_vm1, %v9541_v21  ;;  %8602 = vmatprep.mubr.msk.f32.mxu0 %vm464_vm1, %v9574_v28  ;;  %v10350_v28 = vld [vmem:[%s10798_s5] ss:$0 sm:$0xff] }
  0xf2   : > { %8477 = vmatmul.mubr.msk.f32.gmra.mrb[14].mxu1 %vm464_vm1, %v10835_v0  ;;  %8603 = vmatmul.mubr.msk.f32.gmra.mrb[14].mxu0 %vm464_vm1, %v10836_v6 }
  0xf3   : > { %8607 = vmatprep.mubr.msk.f32.mxu1 %vm464_vm1, %v10837_v7  ;;  %v9222_v7 = vld [vmem:[%s10797_s4 + $0x14] sm:$0xf] }
  0xf6   : > { %8608 = vmatmul.mubr.msk.f32.vlgmr.msra.gmra.mrb[16].mxu1 %vm464_vm1, %v9700_v46 }
  0xf7   : > { %8620 = vmatpush3.msk.msra.mxu1 %vm489_vm0, %v9405_v2  ;;  %8610 = vmatprep.mubr.msk.f32.mxu1 %vm464_vm1, %v9715_v47  ;;  %v4477_v2 = vld [vmem:[%s9433_s19] sm:$0xff] }
  0xf8   : > { %8633 = vmatprep.subr.msk.mxu1 %vm489_vm0, %v10838_v8 }
  0xfa   : > { %8611 = vmatmul.mubr.msk.f32.gmra.mrb[18].mxu1 %vm464_vm1, %v9718_v48 }
  0xfb   : > { %8613 = vmatprep.mubr.msk.f32.mxu1 %vm464_vm1, %v9729_v49 }
  0xfe   : > { %8614 = vmatmul.mubr.msk.f32.gmra.mrb[20].mxu1 %vm464_vm1, %v9737_v51 }
  0xff   : > { %8616 = vmatprep.mubr.msk.f32.mxu1 %vm464_vm1, %v9750_v52 }
 0x102   : > { %8617 = vmatmul.mubr.msk.f32.gmra.mrb[22].mxu1 %vm464_vm1, %v9753_v53 }
 0x103   : > { %8621 = vmatprep.mubr.msk.f32.mxu1 %vm464_vm1, %v4477_v2 }
 0x106   : > { %8622 = vmatmul.mubr.msk.f32.vlgmr.msra.gmra.mrb[16].mxu1 %vm464_vm1, %v10839_v9 }
 0x107   : > { %8634 = vmatpush3.msk.msra.mxu1 %vm489_vm0, %v10838_v8  ;;  %8624 = vmatprep.mubr.msk.f32.mxu1 %vm464_vm1, %v10840_v12  ;;  %v5044_v8 = vld [vmem:[%s9525_s18 + $0x30] sm:$0xff] }
 0x108   : > { %8647 = vmatprep.subr.msk.mxu1 %vm489_vm0, %v10841_v13 }
 0x10a   : > { %8625 = vmatmul.mubr.msk.f32.gmra.mrb[18].mxu1 %vm464_vm1, %v10842_v14 }
 0x10b   : > { %8627 = vmatprep.mubr.msk.f32.mxu1 %vm464_vm1, %v9978_v50 }
 0x10e   : > { %8628 = vmatmul.mubr.msk.f32.gmra.mrb[20].mxu1 %vm464_vm1, %v9983_v23 }
 0x10f   : > { %8630 = vmatprep.mubr.msk.f32.mxu1 %vm464_vm1, %v9998_v24 }
 0x112   : > { %8631 = vmatmul.mubr.msk.f32.gmra.mrb[22].mxu1 %vm464_vm1, %v10001_v29 }
 0x113   : > { %8635 = vmatprep.mubr.msk.f32.mxu1 %vm464_vm1, %v10843_v15  ;;  %v5045_v15 = vld [vmem:[%s9525_s18 + $0x40] sm:$0xff] }
 0x116   : > { %8636 = vmatmul.mubr.msk.f32.vlgmr.msra.gmra.mrb[16].mxu1 %vm464_vm1, %v10308_v16 }
 0x117   : > { %8648 = vmatpush3.msk.msra.mxu1 %vm489_vm0, %v10841_v13  ;;  %8638 = vmatprep.mubr.msk.f32.mxu1 %vm464_vm1, %v10311_v17 }
 0x118   : > { %8661 = vmatprep.subr.msk.mxu1 %vm489_vm0, %v10844_v20 }
 0x11a   : > { %8639 = vmatmul.mubr.msk.f32.gmra.mrb[18].mxu1 %vm464_vm1, %v10320_v18 }
 0x11b   : > { %8641 = vmatprep.mubr.msk.f32.mxu1 %vm464_vm1, %v10323_v19 }
 0x11e   : > { %8642 = vmatmul.mubr.msk.f32.gmra.mrb[20].mxu1 %vm464_vm1, %v9767_v55 }
 0x11f   : > { %8644 = vmatprep.mubr.msk.f32.mxu1 %vm464_vm1, %v9782_v56  ;;  %v5042_v56 = vld [vmem:[%s9525_s18 + $0x10] sm:$0xff] }
 0x121   : > { %v8273_v21 = vpop.f32.mrb[0].mxu1 }
 0x122   : > { %v980_v22 = vpop.f32.mrb[1].mxu1  ;;  %8645 = vmatmul.mubr.msk.f32.gmra.mrb[22].mxu1 %vm464_vm1, %v9785_v57 }
 0x123   : > { %8649 = vmatprep.mubr.msk.f32.mxu1 %vm464_vm1, %v10845_v25 }
 0x125   : > { %v8276_v26 = vpop.f32.mrb[2].mxu1 }
 0x126   : > { %v990_v27 = vpop.f32.mrb[3].mxu1  ;;  %8650 = vmatmul.mubr.msk.f32.vlgmr.msra.gmra.mrb[16].mxu1 %vm464_vm1, %v9860_v63 }
 0x127   : > { %8662 = vmatpush3.msk.msra.mxu1 %vm489_vm0, %v10844_v20  ;;  %8652 = vmatprep.mubr.msk.f32.mxu1 %vm464_vm1, %v9863_v59  ;;  %v9223_v20 = vld [vmem:[%s10797_s4 + $0x18] sm:$0xf] }
 0x128   : > { %8675 = vmatprep.subr.msk.mxu1 %vm489_vm0, %v9410_v3 }
 0x129   : > { %v8343_v30 = vpop.f32.mrb[0].mxu0 }
 0x12a   : > { %v8859_v32 = vadd.f32 %v8343_v30, %v8273_v21  ;;  %v1723_v33 = vpop.f32.mrb[1].mxu0  ;;  %8653 = vmatmul.mubr.msk.f32.gmra.mrb[18].mxu1 %vm464_vm1, %v9874_v61 }
 0x12b   : > { %v8860_v34 = vadd.f32 %v1723_v33, %v980_v22  ;;  %8655 = vmatprep.mubr.msk.f32.mxu1 %vm464_vm1, %v9879_v60  ;;  %v5043_v60 = vld [vmem:[%s9525_s18 + $0x20] sm:$0xff] }
 0x12c   : > { %v1777_v36 = vadd.f32 %v8859_v32, %v10350_v28  ;;  %v5047_v32 = vld [vmem:[%s9525_s18 + $0x60] sm:$0xff] }
 0x12d   : > { %v1776_v3 = vadd.f32 %v8860_v34, %v10350_v28  ;;  %v8346_v37 = vpop.f32.mrb[2].mxu0  ;;  %v5048_v34 = vld [vmem:[%s9525_s18 + $0x70] sm:$0xff] }
 0x12e   : > { %vm1785_vm4 = vcmp.ge.f32.partialorder %v1777_v36, 0.0  ;;  %v1793_v38 = vmul.f32 0.2, %v1777_v36  ;;  %v8861_v39 = vadd.f32 %v8346_v37, %v8276_v26  ;;  %v1733_v40 = vpop.f32.mrb[3].mxu0  ;;  %8656 = vmatmul.mubr.msk.f32.gmra.mrb[20].mxu1 %vm464_vm1, %v9894_v62  ;;  %v5188_v37 = vld [vmem:[%s9427_s13 + $0x21] sm:$0xff] }
 0x12f   : > { %vm1784_vm5 = vcmp.ge.f32.partialorder %v1776_v3, 0.0  ;;  %v1792_v41 = vmul.f32 0.2, %v1776_v3  ;;  %v8862_v42 = vadd.f32 %v1733_v40, %v990_v27  ;;  %8658 = vmatprep.mubr.msk.f32.mxu1 %vm464_vm1, %v9897_v31  ;;  %v5046_v27 = vld [vmem:[%s9525_s18 + $0x50] sm:$0xff]  ;;  %v5190_v40 = vld [vmem:[%s9427_s13 + $0x41] sm:$0xff] }
 0x130   : > { %v1801_v43 = vsel %vm1785_vm4, %v1777_v36, %v1793_v38  ;;  %v1779_v44 = vadd.f32 %v8861_v39, %v10350_v28  ;;  %v5186_v36 = vld [vmem:[%s9427_s13 + $0x1] sm:$0xff]  ;;  %v5189_v38 = vld [vmem:[%s9427_s13 + $0x31] sm:$0xff] }
 0x131   : > { %1810 = vst.msk [vmem:[#allocation2 + $0x21] sm:$0xff] %vm364_vm2, %v1801_v43  ;;  %v1800_v46 = vsel %vm1784_vm5, %v1776_v3, %v1792_v41  ;;  %v1778_v47 = vadd.f32 %v8862_v42, %v10350_v28  ;;  %v8293_v48 = vpop.f32.mrb[4].mxu1  ;;  %v8349_v49 = vpop.f32.mrb[4].mxu0  ;;  %v5187_v3 = vld [vmem:[%s9427_s13 + $0x11] sm:$0xff]  ;;  %v5808_v39 = vld [vmem:[%s10799_s6 + $0x8] sm:$0xff] }
 0x132   : > { %1809 = vst.msk [vmem:[#allocation2 + $0x11] sm:$0xff] %vm364_vm2, %v1800_v46  ;;  %vm1787_vm6 = vcmp.ge.f32.partialorder %v1779_v44, 0.0  ;;  %v1795_v51 = vmul.f32 0.2, %v1779_v44  ;;  %v8863_v52 = vadd.f32 %v8349_v49, %v8293_v48  ;;  %v1149_v53 = vpop.f32.mrb[5].mxu1  ;;  %v1743_v31 = vpop.f32.mrb[5].mxu0  ;;  %8659 = vmatmul.mubr.msk.f32.gmra.mrb[22].mxu1 %vm464_vm1, %v9910_v10  ;;  %8731 = vmatprep.subr.mxu0 %v5808_v39 }
 0x133   : > { %vm1786_vm7 = vcmp.ge.f32.partialorder %v1778_v47, 0.0  ;;  %v1794_v54 = vmul.f32 0.2, %v1778_v47  ;;  %v8864_v55 = vadd.f32 %v1743_v31, %v1149_v53  ;;  %8663 = vmatprep.mubr.msk.f32.mxu1 %vm464_vm1, %v5041_v45  ;;  %v9224_v41 = vld [vmem:[%s10797_s4 + $0x1c] sm:$0xf]  ;;  %v5826_v42 = vld [vmem:[#allocation2 + $0x90] sm:$0xff]  ;;  %8732 = vmatpush3.msra.mxu0 %v5808_v39 }
 0x134   : > { %v1803_v57 = vsel %vm1787_vm6, %v1779_v44, %v1795_v51  ;;  %v1781_v58 = vadd.f32 %v8863_v52, %v10350_v28  ;;  %8733 = vmatprep.mubr.msk.f32.mxu0 %vm364_vm2, %v5826_v42  ;;  %v5191_v43 = vld [vmem:[%s9427_s13 + $0x51] sm:$0xff]  ;;  %v5192_v44 = vld [vmem:[%s9427_s13 + $0x61] sm:$0xff] }
 0x135   : > { %1812 = vst.msk [vmem:[#allocation2 + $0x41] sm:$0xff] %vm364_vm2, %v1803_v57  ;;  %v1802_v61 = vsel %vm1786_vm7, %v1778_v47, %v1794_v54  ;;  %v1780_v62 = vadd.f32 %v8864_v55, %v10350_v28  ;;  %v8296_v63 = vpop.f32.mrb[6].mxu1  ;;  %v8352_v59 = vpop.f32.mrb[6].mxu0  ;;  %v5193_v45 = vld [vmem:[%s9427_s13 + $0x71] sm:$0xff]  ;;  %v10434_v46 = vld [vmem:[%s10799_s6] sm:$0xff] }
 0x136   : > { %1811 = vst.msk [vmem:[#allocation2 + $0x31] sm:$0xff] %vm364_vm2, %v1802_v61  ;;  %vm1789_vm8 = vcmp.ge.f32.partialorder %v1781_v58, 0.0  ;;  %v1797_v10 = vmul.f32 0.2, %v1781_v58  ;;  %v8865_v4 = vadd.f32 %v8352_v59, %v8296_v63  ;;  %v1159_v11 = vpop.f32.mrb[7].mxu1  ;;  %v1753_v5 = vpop.f32.mrb[7].mxu0  ;;  %8664 = vmatmul.mubr.msk.f32.vlgmr.msra.gmra.mrb[16].mxu1 %vm464_vm1, %v5042_v56  ;;  %8745 = vmatprep.subr.mxu0 %v10434_v46 }
 0x137   : > { %vm1788_vm9 = vcmp.ge.f32.partialorder %v1780_v62, 0.0  ;;  %v1796_v0 = vmul.f32 0.2, %v1780_v62  ;;  %v8866_v6 = vadd.f32 %v1753_v5, %v1159_v11  ;;  %8676 = vmatpush3.msk.msra.mxu1 %vm489_vm0, %v9222_v7  ;;  %8666 = vmatprep.mubr.msk.f32.mxu1 %vm464_vm1, %v5043_v60  ;;  %v7730_v47 = vld [vmem:[%s9433_s19 + $0x51] sm:$0xff]  ;;  %v7731_v48 = vld [vmem:[%s9433_s19 + $0x61] sm:$0xff] }
 0x138   : > { %v1805_v2 = vsel %vm1789_vm8, %v1781_v58, %v1797_v10  ;;  %v1783_v13 = vadd.f32 %v8865_v4, %v10350_v28  ;;  %8689 = vmatprep.subr.msk.mxu1 %vm489_vm0, %v9223_v20  ;;  %v7732_v49 = vld [vmem:[%s9433_s19 + $0x71] sm:$0xff]  ;;  %v7733_v51 = vld [vmem:[%s9433_s19 + $0x81] sm:$0xff]  ;;  %s9230_s19 = sshll.u32 %s9291_s17, 4  ;;  %s9231_s19 = int_to_ptr.vmem [resolvable:$false] %s9230_s19 }
 0x139   : > { %1814 = vst.msk [vmem:[#allocation2 + $0x61] sm:$0xff] %vm364_vm2, %v1805_v2  ;;  %v1804_v21 = vsel %vm1788_vm9, %v1780_v62, %v1796_v0  ;;  %v1782_v22 = vadd.f32 %v8866_v6, %v10350_v28  ;;  %s9232_s20 = scalar_lea.vmem %s9231_s19, 2048 }
 0x13a   : > { %1813 = vst.msk [vmem:[#allocation2 + $0x51] sm:$0xff] %vm364_vm2, %v1804_v21  ;;  %vm1791_vm10 = vcmp.ge.f32.partialorder %v1783_v13, 0.0  ;;  %v1799_v25 = vmul.f32 0.2, %v1783_v13  ;;  %8667 = vmatmul.mubr.msk.f32.gmra.mrb[18].mxu1 %vm464_vm1, %v5044_v8 }
 0x13b   : > { %vm1790_vm11 = vcmp.ge.f32.partialorder %v1782_v22, 0.0  ;;  %v1798_v26 = vmul.f32 0.2, %v1782_v22  ;;  %8669 = vmatprep.mubr.msk.f32.mxu1 %vm464_vm1, %v5045_v15 }
 0x13c   : > { %v1807_v30 = vsel %vm1791_vm10, %v1783_v13, %v1799_v25 }
 0x13d   : > { %1816 = vst.msk [vmem:[#allocation2 + $0x81] sm:$0xff] %vm364_vm2, %v1807_v30  ;;  %v1806_v33 = vsel %vm1790_vm11, %v1782_v22, %v1798_v26 }
 0x13e   : > { %1815 = vst.msk [vmem:[#allocation2 + $0x71] sm:$0xff] %vm364_vm2, %v1806_v33  ;;  %8670 = vmatmul.mubr.msk.f32.gmra.mrb[20].mxu1 %vm464_vm1, %v5046_v27 }
 0x13f   : > { %8672 = vmatprep.mubr.msk.f32.mxu1 %vm464_vm1, %v5047_v32 }
 0x142   : > { %8673 = vmatmul.mubr.msk.f32.gmra.mrb[22].mxu1 %vm464_vm1, %v5048_v34 }
 0x143   : > { %8677 = vmatprep.mubr.msk.f32.mxu1 %vm464_vm1, %v5186_v36 }
 0x146   : > { %8678 = vmatmul.mubr.msk.f32.vlgmr.msra.gmra.mrb[16].mxu1 %vm464_vm1, %v5187_v3 }
 0x147   : > { %8690 = vmatpush3.msk.msra.mxu1 %vm489_vm0, %v9223_v20  ;;  %8680 = vmatprep.mubr.msk.f32.mxu1 %vm464_vm1, %v5188_v37 }
 0x148   : > { %8703 = vmatprep.subr.msk.mxu1 %vm489_vm0, %v9224_v41 }
 0x14a   : > { %8681 = vmatmul.mubr.msk.f32.gmra.mrb[18].mxu1 %vm464_vm1, %v5189_v38 }
 0x14b   : > { %8683 = vmatprep.mubr.msk.f32.mxu1 %vm464_vm1, %v5190_v40 }
 0x14e   : > { %8684 = vmatmul.mubr.msk.f32.gmra.mrb[20].mxu1 %vm464_vm1, %v5191_v43 }
 0x14f   : > { %8686 = vmatprep.mubr.msk.f32.mxu1 %vm464_vm1, %v5192_v44 }
 0x152   : > { %8687 = vmatmul.mubr.msk.f32.gmra.mrb[22].mxu1 %vm464_vm1, %v5193_v45 }
 0x153   : > { %8691 = vmatprep.mubr.msk.f32.mxu1 %vm464_vm1, %v10839_v9  ;;  %v7709_v9 = vld [vmem:[%s9461_s22 + $0x10] sm:$0xff] }
 0x156   : > { %8692 = vmatmul.mubr.msk.f32.vlgmr.msra.gmra.mrb[16].mxu1 %vm464_vm1, %v10840_v12  ;;  %v7715_v12 = vld [vmem:[%s9461_s22 + $0x70] sm:$0xff] }
 0x157   : > { %8704 = vmatpush3.msk.msra.mxu1 %vm489_vm0, %v9224_v41  ;;  %8694 = vmatprep.mubr.msk.f32.mxu1 %vm464_vm1, %v10842_v14  ;;  %v7716_v14 = vld [vmem:[%s9461_s22 + $0x80] sm:$0xff] }
 0x158   : > { %8717 = vmatprep.subr.msk.mxu1 %vm489_vm0, %v9623_v35  ;;  %v7710_v35 = vld [vmem:[%s9461_s22 + $0x20] sm:$0xff] }
 0x15a   : > { %8695 = vmatmul.mubr.msk.f32.gmra.mrb[18].mxu1 %vm464_vm1, %v9978_v50  ;;  %v7711_v50 = vld [vmem:[%s9461_s22 + $0x30] sm:$0xff] }
 0x15b   : > { %8697 = vmatprep.mubr.msk.f32.mxu1 %vm464_vm1, %v9983_v23  ;;  %v9225_v23 = vld [vmem:[%s10797_s4 + $0x20] sm:$0xf] }
 0x15e   : > { %8698 = vmatmul.mubr.msk.f32.gmra.mrb[20].mxu1 %vm464_vm1, %v9998_v24  ;;  %v7712_v24 = vld [vmem:[%s9461_s22 + $0x40] sm:$0xff] }
 0x15f   : > { %8700 = vmatprep.mubr.msk.f32.mxu1 %vm464_vm1, %v10001_v29  ;;  %v7713_v29 = vld [vmem:[%s9461_s22 + $0x50] sm:$0xff] }
 0x162   : > { %8701 = vmatmul.mubr.msk.f32.gmra.mrb[22].mxu1 %vm464_vm1, %v10014_v1  ;;  %v7714_v1 = vld [vmem:[%s9461_s22 + $0x60] sm:$0xff]  ;;  %s341_s22 = sand.u32 1, %s9280_s28  }
 0x163   : > { %8705 = vmatprep.mubr.msk.f32.mxu1 %vm464_vm1, %v7709_v9  ;;  %s7269_s26 = sshll.u32 %s341_s22, 6  ;;  %s10752_s9 = scalar_lea.sflag [#allocation4], %s341_s22 }
 0x164   : > { %s10723_s23 = scalar_lea.vmem [#allocation3], %s7269_s26 }
 0x165   : > { %s7167_s18 = sshll.u32 %s10723_s23, 4  ;;  %s10744_s18 = int_to_ptr.vmem [resolvable:$true] %s7167_s18 }
 0x166   : > { %8706 = vmatmul.mubr.msk.f32.vlgmr.msra.gmra.mrb[16].mxu1 %vm464_vm1, %v7710_v35  ;;  %s9226_s13 = scalar_lea.vmem %s10744_s18, 1024  ;;  %p9233_p0 = scmp.lt.s32.totalorder %s10744_s18, %s9231_s19 }
 0x167   : > { %8718 = vmatpush3.msk.msra.mxu1 %vm489_vm0, %v9225_v23  ;;  %8708 = vmatprep.mubr.msk.f32.mxu1 %vm464_vm1, %v7711_v50  ;;  %p9227_p11 = scmp.ne.s32.totalorder %s10744_s18, %s9226_s13  ;;  %p9234_p1 = scmp.lt.s32.totalorder %s9232_s20, %s9226_s13 }
 0x169   : > { %p9228_p12 = pnand %p9227_p11, %p9377_p5  ;;  %p9235_p2 = por %p9234_p1, %p9233_p0 }
 0x16a   : > { %8709 = vmatmul.mubr.msk.f32.gmra.mrb[18].mxu1 %vm464_vm1, %v7712_v24  ;;  %v5809_v24 = vld [vmem:[%s10799_s6 + $0x10] sm:$0xff] }
 0x16b   : > { %8711 = vmatprep.mubr.msk.f32.mxu1 %vm464_vm1, %v7713_v29  ;;  %p9229_p13 = pneg %p9228_p12 }
 0x16d   : > { %p9236_p3 = pnand %p9235_p2, %p9229_p13 }
 0x16e   : > { %8712 = vmatmul.mubr.msk.f32.gmra.mrb[20].mxu1 %vm464_vm1, %v7714_v1 }
 0x16f   : > { %8714 = vmatprep.mubr.msk.f32.mxu1 %vm464_vm1, %v7715_v12 }
 0x172   : > { %8715 = vmatmul.mubr.msk.f32.gmra.mrb[22].mxu1 %vm464_vm1, %v7716_v14 }
 0x173   : > { %8719 = vmatprep.mubr.msk.f32.mxu1 %vm464_vm1, %v10308_v16 }
 0x176   : > { %8720 = vmatmul.mubr.msk.f32.vlgmr.msra.gmra.mrb[16].mxu1 %vm464_vm1, %v10311_v17 }
 0x177   : > { %8722 = vmatprep.mubr.msk.f32.mxu1 %vm464_vm1, %v10320_v18 }
 0x17a   : > { %8723 = vmatmul.mubr.msk.f32.gmra.mrb[18].mxu1 %vm464_vm1, %v10323_v19 }
 0x17b   : > { %8725 = vmatprep.mubr.msk.f32.mxu1 %vm464_vm1, %v7730_v47 }
 0x17e   : > { %8726 = vmatmul.mubr.msk.f32.gmra.mrb[20].mxu1 %vm464_vm1, %v7731_v48 }
 0x17f   : > { %8728 = vmatprep.mubr.msk.f32.mxu1 %vm464_vm1, %v7732_v49 }
 0x182   : > { %8729 = vmatmul.mubr.msk.f32.gmra.mrb[22].mxu1 %vm464_vm1, %v7733_v51 }
 0x1b9   : > { %v8469_v16 = vpop.f32.mrb[8].mxu1  ;;  %v8595_v17 = vpop.f32.mrb[8].mxu0 }
 0x1ba   : > { %v3107_v52 = vadd.f32 %v8469_v16, %v10350_v28  ;;  %v4437_v18 = vadd.f32 %v8595_v17, %v10350_v28  ;;  %v3059_v53 = vpop.f32.mrb[9].mxu1  ;;  %v4389_v31 = vpop.f32.mrb[9].mxu0 }
 0x1bb   : > { %v3106_v19 = vadd.f32 %v10350_v28, %v3059_v53  ;;  %v4436_v54 = vadd.f32 %v10350_v28, %v4389_v31 }
 0x1bc   : > { %vm3115_vm12 = vcmp.ge.f32.partialorder %v3107_v52, 0.0  ;;  %v3123_v55 = vmul.f32 0.2, %v3107_v52  ;;  %vm4445_vm13 = vcmp.ge.f32.partialorder %v4437_v18, 0.0  ;;  %v4453_v56 = vmul.f32 0.2, %v4437_v18 }
 0x1bd   : > { %vm3114_vm14 = vcmp.ge.f32.partialorder %v3106_v19, 0.0  ;;  %v3122_v57 = vmul.f32 0.2, %v3106_v19  ;;  %vm4444_vm15 = vcmp.ge.f32.partialorder %v4436_v54, 0.0  ;;  %v4452_v58 = vmul.f32 0.2, %v4436_v54 }
 0x1be   : > { %v3131_v60 = vsel %vm3115_vm12, %v3107_v52, %v3123_v55  ;;  %v4461_v61 = vsel %vm4445_vm13, %v4437_v18, %v4453_v56  ;;  %v8472_v62 = vpop.f32.mrb[10].mxu1  ;;  %v8598_v63 = vpop.f32.mrb[10].mxu0  ;;  %v5817_v55 = vld [vmem:[#allocation2] sm:$0xff] }
 0x1bf   : > { %3140 = vst.msk [vmem:[#allocation2 + $0xb0] sm:$0xff] %vm364_vm2, %v3131_v60  ;;  %4470 = vst.msk [vmem:[#allocation2 + $0x131] sm:$0xff] %vm364_vm2, %v4461_v61  ;;  %v3130_v59 = vsel %vm3114_vm14, %v3106_v19, %v3122_v57  ;;  %v4460_v10 = vsel %vm4444_vm15, %v4436_v54, %v4452_v58  ;;  %v3109_v4 = vadd.f32 %v8472_v62, %v10350_v28  ;;  %v3069_v5 = vpop.f32.mrb[11].mxu1  ;;  %v4399_v0 = vpop.f32.mrb[11].mxu0  ;;  %v10553_v57 = vld [vmem:[#allocation2 + $0x10] sm:$0xff]  ;;  %v5810_v58 = vld [vmem:[%s10799_s6 + $0x18] sm:$0xff] }
 0x1c0   : > { %v4439_v11 = vadd.f32 %v8598_v63, %v10350_v28  ;;  %3139 = vst.msk [vmem:[#allocation2 + $0xa0] sm:$0xff] %vm364_vm2, %v3130_v59  ;;  %4469 = vst.msk [vmem:[#allocation2 + $0x121] sm:$0xff] %vm364_vm2, %v4460_v10  ;;  %v3108_v6 = vadd.f32 %v10350_v28, %v3069_v5  ;;  %v4438_v7 = vadd.f32 %v10350_v28, %v4399_v0  ;;  %v10560_v60 = vld [vmem:[#allocation2 + $0x20] sm:$0xff]  ;;  %v10564_v61 = vld [vmem:[#allocation2 + $0x30] sm:$0xff] }
 0x1c1   : > { %vm3117_vm0 = vcmp.ge.f32.partialorder %v3109_v4, 0.0  ;;  %v3125_v8 = vmul.f32 0.2, %v3109_v4  ;;  %v8475_v22 = vpop.f32.mrb[12].mxu1  ;;  %v8601_v25 = vpop.f32.mrb[12].mxu0  ;;  %v10568_v62 = vld [vmem:[#allocation2 + $0x40] sm:$0xff] }
 0x1c2   : > { %vm4447_vm1 = vcmp.ge.f32.partialorder %v4439_v11, 0.0  ;;  %v4455_v2 = vmul.f32 0.2, %v4439_v11  ;;  %vm3116_vm3 = vcmp.ge.f32.partialorder %v3108_v6, 0.0  ;;  %v3124_v13 = vmul.f32 0.2, %v3108_v6 }
 0x1c3   : > { %vm4446_vm4 = vcmp.ge.f32.partialorder %v4438_v7, 0.0  ;;  %v4454_v15 = vmul.f32 0.2, %v4438_v7  ;;  %v3133_v20 = vsel %vm3117_vm0, %v3109_v4, %v3125_v8  ;;  %v3111_v30 = vadd.f32 %v8475_v22, %v10350_v28  ;;  %v3079_v33 = vpop.f32.mrb[13].mxu1  ;;  %v4409_v34 = vpop.f32.mrb[13].mxu0  ;;  %v10572_v63 = vld [vmem:[#allocation2 + $0x50] sm:$0xff] }
 0x1c4   : > { %v4463_v21 = vsel %vm4447_vm1, %v4439_v11, %v4455_v2  ;;  %3142 = vst.msk [vmem:[#allocation2 + $0xd0] sm:$0xff] %vm364_vm2, %v3133_v20  ;;  %v3132_v26 = vsel %vm3116_vm3, %v3108_v6, %v3124_v13  ;;  %v4441_v32 = vadd.f32 %v8601_v25, %v10350_v28  ;;  %v3110_v36 = vadd.f32 %v10350_v28, %v3079_v33  ;;  %v10576_v59 = vld [vmem:[#allocation2 + $0x60] sm:$0xff]  ;;  %v10580_v4 = vld [vmem:[#allocation2 + $0x70] sm:$0xff] }
 0x1c5   : > { %4472 = vst.msk [vmem:[#allocation2 + $0x151] sm:$0xff] %vm364_vm2, %v4463_v21  ;;  %v4462_v27 = vsel %vm4446_vm4, %v4438_v7, %v4454_v15  ;;  %3141 = vst.msk [vmem:[#allocation2 + $0xc0] sm:$0xff] %vm364_vm2, %v3132_v26  ;;  %v4440_v3 = vadd.f32 %v10350_v28, %v4409_v34  ;;  %v8478_v37 = vpop.f32.mrb[14].mxu1  ;;  %v8604_v38 = vpop.f32.mrb[14].mxu0  ;;  %vm3119_vm5 = vcmp.ge.f32.partialorder %v3111_v30, 0.0  ;;  %v6092_v10 = vld [vmem:[#allocation2 + $0x1] sm:$0xff] }
 0x1c6   : > { %4471 = vst.msk [vmem:[#allocation2 + $0x141] sm:$0xff] %vm364_vm2, %v4462_v27  ;;  %v3127_v39 = vmul.f32 0.2, %v3111_v30  ;;  %vm4449_vm6 = vcmp.ge.f32.partialorder %v4441_v32, 0.0  ;;  %v4457_v40 = vmul.f32 0.2, %v4441_v32  ;;  %v3113_v45 = vadd.f32 %v8478_v37, %v10350_v28 }
 0x1c7   : > { %vm3118_vm7 = vcmp.ge.f32.partialorder %v3110_v36, 0.0  ;;  %v3126_v41 = vmul.f32 0.2, %v3110_v36  ;;  %vm4448_vm8 = vcmp.ge.f32.partialorder %v4440_v3, 0.0  ;;  %v4456_v42 = vmul.f32 0.2, %v4440_v3 }
 0x1c8   : > { %v3135_v43 = vsel %vm3119_vm5, %v3111_v30, %v3127_v39  ;;  %v4465_v44 = vsel %vm4449_vm6, %v4441_v32, %v4457_v40  ;;  %v4443_v9 = vadd.f32 %v8604_v38, %v10350_v28  ;;  %v3089_v35 = vpop.f32.mrb[15].mxu1  ;;  %v4419_v50 = vpop.f32.mrb[15].mxu0  ;;  %v10510_v23 = vld [vmem:[#allocation2 + $0xa0] sm:$0xff]  ;;  %v10521_v47 = vld [vmem:[#allocation2 + $0xb0] sm:$0xff]  ;;  %vm3121_vm9 = vcmp.ge.f32.partialorder %v3113_v45, 0.0  ;;  %v10620_v21 = vld [vmem:[%s10799_s6 + $0x28] sm:$0xff] }
 0x1c9   : > { %3144 = vst.msk [vmem:[#allocation2 + $0xf0] sm:$0xff] %vm364_vm2, %v3135_v43  ;;  %4474 = vst.msk [vmem:[#allocation2 + $0x171] sm:$0xff] %vm364_vm2, %v4465_v44  ;;  %v3134_v29 = vsel %vm3118_vm7, %v3110_v36, %v3126_v41  ;;  %v4464_v1 = vsel %vm4448_vm8, %v4440_v3, %v4456_v42  ;;  %v3112_v12 = vadd.f32 %v10350_v28, %v3089_v35  ;;  %8734 = vmatmul.mubr.msk.f32.vlgmr.msra.gmra.mrb[16].mxu0 %vm364_vm2, %v10510_v23  ;;  %v10585_v11 = vld [vmem:[#allocation2 + $0x11] sm:$0xff]  ;;  %v5811_v5 = vld [vmem:[%s10799_s6 + $0x20] sm:$0xff] }
 0x1ca   : > { %v4442_v14 = vadd.f32 %v10350_v28, %v4419_v50  ;;  %3143 = vst.msk [vmem:[#allocation2 + $0xe0] sm:$0xff] %vm364_vm2, %v3134_v29  ;;  %4473 = vst.msk [vmem:[#allocation2 + $0x161] sm:$0xff] %vm364_vm2, %v4464_v1  ;;  %v3129_v48 = vmul.f32 0.2, %v3113_v45  ;;  %vm4451_vm10 = vcmp.ge.f32.partialorder %v4443_v9, 0.0  ;;  %8736 = vmatprep.mubr.msk.f32.mxu0 %vm364_vm2, %v10521_v47  ;;  %8746 = vmatpush3.msra.mxu0 %v10434_v46  ;;  %v10592_v0 = vld [vmem:[#allocation2 + $0x21] sm:$0xff] }
 0x1cb   : > { %v4459_v49 = vmul.f32 0.2, %v4443_v9  ;;  %vm3120_vm11 = vcmp.ge.f32.partialorder %v3112_v12, 0.0  ;;  %v3128_v51 = vmul.f32 0.2, %v3112_v12  ;;  %8759 = vmatprep.subr.mxu0 %v5809_v24  ;;  %v10534_v19 = vld [vmem:[#allocation2 + $0xd0] sm:$0xff] }
 0x1cc   : > { %vm4450_vm12 = vcmp.ge.f32.partialorder %v4442_v14, 0.0  ;;  %v4458_v16 = vmul.f32 0.2, %v4442_v14  ;;  %v3137_v17 = vsel %vm3121_vm9, %v3113_v45, %v3129_v48  ;;  %v10528_v18 = vld [vmem:[#allocation2 + $0xc0] sm:$0xff]  ;;  %v10596_v6 = vld [vmem:[#allocation2 + $0x31] sm:$0xff] }
 0x1cd   : > { %v4467_v52 = vsel %vm4451_vm10, %v4443_v9, %v4459_v49  ;;  %3146 = vst.msk [vmem:[#allocation2 + $0x110] sm:$0xff] %vm364_vm2, %v3137_v17  ;;  %v3136_v53 = vsel %vm3120_vm11, %v3112_v12, %v3128_v51  ;;  %8737 = vmatmul.mubr.msk.f32.gmra.mrb[18].mxu0 %vm364_vm2, %v10528_v18  ;;  %v10600_v7 = vld [vmem:[#allocation2 + $0x41] sm:$0xff]  ;;  %v10604_v8 = vld [vmem:[#allocation2 + $0x51] sm:$0xff] }
 0x1ce   : > { %4476 = vst.msk [vmem:[#allocation2 + $0x191] sm:$0xff] %vm364_vm2, %v4467_v52  ;;  %v4466_v31 = vsel %vm4450_vm12, %v4442_v14, %v4458_v16  ;;  %3145 = vst.msk [vmem:[#allocation2 + $0x100] sm:$0xff] %vm364_vm2, %v3136_v53  ;;  %8739 = vmatprep.mubr.msk.f32.mxu0 %vm364_vm2, %v10534_v19  ;;  %v10608_v2 = vld [vmem:[#allocation2 + $0x61] sm:$0xff]  ;;  %v10612_v13 = vld [vmem:[#allocation2 + $0x71] sm:$0xff] }
 0x1cf   : > { %4475 = vst.msk [vmem:[#allocation2 + $0x181] sm:$0xff] %vm364_vm2, %v4466_v31  ;;  %v6237_v15 = vld [vmem:[#allocation2 + $0x120] sm:$0xff]  ;;  %v6238_v20 = vld [vmem:[#allocation2 + $0x130] sm:$0xff] }
 0x1d0   : > { %v10544_v54 = vld [vmem:[#allocation2 + $0xf0] sm:$0xff]  ;;  %v6239_v22 = vld [vmem:[#allocation2 + $0x140] sm:$0xff] }
 0x1d1   : > { %v10540_v46 = vld [vmem:[#allocation2 + $0xe0] sm:$0xff]  ;;  %v6240_v25 = vld [vmem:[#allocation2 + $0x150] sm:$0xff] }
 0x1d2   : > { %8740 = vmatmul.mubr.msk.f32.gmra.mrb[20].mxu0 %vm364_vm2, %v10540_v46  ;;  %v6241_v26 = vld [vmem:[#allocation2 + $0x160] sm:$0xff]  ;;  %v6242_v27 = vld [vmem:[#allocation2 + $0x170] sm:$0xff] }
 0x1d3   : > { %8742 = vmatprep.mubr.msk.f32.mxu0 %vm364_vm2, %v10544_v54 }
 0x1d5   : > { %v10548_v56 = vld [vmem:[#allocation2 + $0x100] sm:$0xff]  ;;  %v6244_v32 = vld [vmem:[#allocation2 + $0x190] sm:$0xff] }
 0x1d6   : > { %8743 = vmatmul.mubr.msk.f32.gmra.mrb[22].mxu0 %vm364_vm2, %v10548_v56  ;;  %v6243_v30 = vld [vmem:[#allocation2 + $0x180] sm:$0xff] }
 0x1d7   : > { %8747 = vmatprep.mubr.msk.f32.mxu0 %vm364_vm2, %v5817_v55 }
 0x1da   : > { %8748 = vmatmul.mubr.msk.f32.vlgmr.msra.gmra.mrb[16].mxu0 %vm364_vm2, %v10553_v57 }
 0x1db   : > { %8750 = vmatprep.mubr.msk.f32.mxu0 %vm364_vm2, %v10560_v60  ;;  %8760 = vmatpush3.msra.mxu0 %v5809_v24 }
 0x1dc   : > { %8773 = vmatprep.subr.mxu0 %v5810_v58 }
 0x1de   : > { %8751 = vmatmul.mubr.msk.f32.gmra.mrb[18].mxu0 %vm364_vm2, %v10564_v61 }
 0x1df   : > { %8753 = vmatprep.mubr.msk.f32.mxu0 %vm364_vm2, %v10568_v62 }
 0x1e2   : > { %8754 = vmatmul.mubr.msk.f32.gmra.mrb[20].mxu0 %vm364_vm2, %v10572_v63 }
 0x1e3   : > { %8756 = vmatprep.mubr.msk.f32.mxu0 %vm364_vm2, %v10576_v59 }
 0x1e6   : > { %8757 = vmatmul.mubr.msk.f32.gmra.mrb[22].mxu0 %vm364_vm2, %v10580_v4 }
 0x1e7   : > { %8761 = vmatprep.mubr.msk.f32.mxu0 %vm364_vm2, %v6092_v10  ;;  %v5813_v10 = vld [vmem:[%s10799_s6 + $0x30] sm:$0xff] }
 0x1ea   : > { %8762 = vmatmul.mubr.msk.f32.vlgmr.msra.gmra.mrb[16].mxu0 %vm364_vm2, %v10585_v11 }
 0x1eb   : > { %8764 = vmatprep.mubr.msk.f32.mxu0 %vm364_vm2, %v10592_v0  ;;  %8774 = vmatpush3.msra.mxu0 %v5810_v58 }
 0x1ec   : > { %8787 = vmatprep.subr.mxu0 %v5811_v5 }
 0x1ee   : > { %8765 = vmatmul.mubr.msk.f32.gmra.mrb[18].mxu0 %vm364_vm2, %v10596_v6 }
 0x1ef   : > { %8767 = vmatprep.mubr.msk.f32.mxu0 %vm364_vm2, %v10600_v7 }
 0x1f2   : > { %8768 = vmatmul.mubr.msk.f32.gmra.mrb[20].mxu0 %vm364_vm2, %v10604_v8 }
 0x1f3   : > { %8770 = vmatprep.mubr.msk.f32.mxu0 %vm364_vm2, %v10608_v2 }
 0x1f6   : > { %8771 = vmatmul.mubr.msk.f32.gmra.mrb[22].mxu0 %vm364_vm2, %v10612_v13 }
 0x1f7   : > { %8775 = vmatprep.mubr.msk.f32.mxu0 %vm364_vm2, %v6237_v15 }
 0x1fa   : > { %8776 = vmatmul.mubr.msk.f32.vlgmr.msra.gmra.mrb[16].mxu0 %vm364_vm2, %v6238_v20 }
 0x1fb   : > { %8778 = vmatprep.mubr.msk.f32.mxu0 %vm364_vm2, %v6239_v22  ;;  %8788 = vmatpush3.msra.mxu0 %v5811_v5 }
 0x1fc   : > { %8801 = vmatprep.subr.mxu0 %v10620_v21 }
 0x1fe   : > { %8779 = vmatmul.mubr.msk.f32.gmra.mrb[18].mxu0 %vm364_vm2, %v6240_v25 }
 0x1ff   : > { %8781 = vmatprep.mubr.msk.f32.mxu0 %vm364_vm2, %v6241_v26 }
 0x202   : > { %8782 = vmatmul.mubr.msk.f32.gmra.mrb[20].mxu0 %vm364_vm2, %v6242_v27 }
 0x203   : > { %8784 = vmatprep.mubr.msk.f32.mxu0 %vm364_vm2, %v6243_v30  ;;  %v6527_v30 = vld [vmem:[#allocation2 + $0x121] sm:$0xff] }
 0x206   : > { %8785 = vmatmul.mubr.msk.f32.gmra.mrb[22].mxu0 %vm364_vm2, %v6244_v32  ;;  %v6528_v32 = vld [vmem:[#allocation2 + $0x131] sm:$0xff] }
 0x249   : > { %v8721_v33 = vpop.f32.mrb[16].mxu1 }
 0x24a   : > { %v5767_v34 = vadd.f32 %v8721_v33, %v10350_v28  ;;  %v5719_v36 = vpop.f32.mrb[17].mxu1  ;;  %v5814_v33 = vld [vmem:[%s10799_s6 + $0x38] sm:$0xff] }
 0x24b   : > { %v5766_v3 = vadd.f32 %v10350_v28, %v5719_v36  ;;  %v6530_v36 = vld [vmem:[#allocation2 + $0x151] sm:$0xff] }
 0x24c   : > { %vm5775_vm13 = vcmp.ge.f32.partialorder %v5767_v34, 0.0  ;;  %v5783_v37 = vmul.f32 0.2, %v5767_v34 }
 0x24d   : > { %vm5774_vm14 = vcmp.ge.f32.partialorder %v5766_v3, 0.0  ;;  %v5782_v38 = vmul.f32 0.2, %v5766_v3  ;;  %v8724_v39 = vpop.f32.mrb[18].mxu1 }
 0x24e   : > { %v5791_v40 = vsel %vm5775_vm13, %v5767_v34, %v5783_v37  ;;  %v5769_v41 = vadd.f32 %v8724_v39, %v10350_v28  ;;  %v5729_v42 = vpop.f32.mrb[19].mxu1  ;;  %v6529_v34 = vld [vmem:[#allocation2 + $0x141] sm:$0xff]  ;;  %v6532_v37 = vld [vmem:[#allocation2 + $0x171] sm:$0xff] }
 0x24f   : > { %5800 = vst.msk [vmem:[#allocation2 + $0x1c0] sm:$0xff] %vm364_vm2, %v5791_v40  ;;  %v5790_v43 = vsel %vm5774_vm14, %v5766_v3, %v5782_v38  ;;  %v5768_v44 = vadd.f32 %v10350_v28, %v5729_v42  ;;  %v6531_v3 = vld [vmem:[#allocation2 + $0x161] sm:$0xff]  ;;  %v6534_v39 = vld [vmem:[#allocation2 + $0x191] sm:$0xff] }
 0x250   : > { %5799 = vst.msk [vmem:[#allocation2 + $0x1b0] sm:$0xff] %vm364_vm2, %v5790_v43  ;;  %vm5777_vm15 = vcmp.ge.f32.partialorder %v5769_v41, 0.0  ;;  %v5785_v45 = vmul.f32 0.2, %v5769_v41  ;;  %v6533_v38 = vld [vmem:[#allocation2 + $0x181] sm:$0xff] }
 0x251   : > { %vm5776_vm0 = vcmp.ge.f32.partialorder %v5768_v44, 0.0  ;;  %v5784_v9 = vmul.f32 0.2, %v5768_v44  ;;  %v8727_v35 = vpop.f32.mrb[20].mxu1  ;;  %v5815_v40 = vld [vmem:[%s10799_s6 + $0x40] sm:$0xff] }
 0x252   : > { %v5793_v50 = vsel %vm5777_vm15, %v5769_v41, %v5785_v45  ;;  %v5771_v24 = vadd.f32 %v8727_v35, %v10350_v28  ;;  %v5739_v29 = vpop.f32.mrb[21].mxu1 }
 0x253   : > { %5802 = vst.msk [vmem:[#allocation2 + $0x1e0] sm:$0xff] %vm364_vm2, %v5793_v50  ;;  %v5792_v1 = vsel %vm5776_vm0, %v5768_v44, %v5784_v9  ;;  %v5770_v12 = vadd.f32 %v10350_v28, %v5739_v29 }
 0x254   : > { %5801 = vst.msk [vmem:[#allocation2 + $0x1d0] sm:$0xff] %vm364_vm2, %v5792_v1  ;;  %vm5779_vm1 = vcmp.ge.f32.partialorder %v5771_v24, 0.0  ;;  %v5787_v14 = vmul.f32 0.2, %v5771_v24 }
 0x255   : > { %vm5778_vm3 = vcmp.ge.f32.partialorder %v5770_v12, 0.0  ;;  %v5786_v48 = vmul.f32 0.2, %v5770_v12  ;;  %v8730_v49 = vpop.f32.mrb[22].mxu1 }
 0x256   : > { %v5795_v51 = vsel %vm5779_vm1, %v5771_v24, %v5787_v14  ;;  %v5773_v16 = vadd.f32 %v8730_v49, %v10350_v28  ;;  %v5749_v17 = vpop.f32.mrb[23].mxu1  ;;  %v6383_v58 = vld [vmem:[#allocation2 + $0x1c0] sm:$0xff] }
 0x257   : > { %5804 = vst.msk [vmem:[#allocation2 + $0x200] sm:$0xff] %vm364_vm2, %v5795_v51  ;;  %v5794_v52 = vsel %vm5778_vm3, %v5770_v12, %v5786_v48  ;;  %v5772_v53 = vadd.f32 %v10350_v28, %v5749_v17  ;;  %v6382_v31 = vld [vmem:[#allocation2 + $0x1b0] sm:$0xff] }
 0x258   : > { %5803 = vst.msk [vmem:[#allocation2 + $0x1f0] sm:$0xff] %vm364_vm2, %v5794_v52  ;;  %vm5781_vm4 = vcmp.ge.f32.partialorder %v5773_v16, 0.0  ;;  %v5789_v55 = vmul.f32 0.2, %v5773_v16  ;;  %8789 = vmatprep.mubr.msk.f32.mxu0 %vm364_vm2, %v6382_v31 }
 0x259   : > { %vm5780_vm5 = vcmp.ge.f32.partialorder %v5772_v53, 0.0  ;;  %v5788_v5 = vmul.f32 0.2, %v5772_v53  ;;  %8790 = vmatmul.mubr.msk.f32.vlgmr.msra.gmra.mrb[16].mxu0 %vm364_vm2, %v6383_v58 }
 0x25a   : > { %v5797_v15 = vsel %vm5781_vm4, %v5773_v16, %v5789_v55  ;;  %8802 = vmatpush3.msra.mxu0 %v10620_v21  ;;  %v6385_v22 = vld [vmem:[#allocation2 + $0x1e0] sm:$0xff] }
 0x25b   : > { %5806 = vst.msk [vmem:[#allocation2 + $0x220] sm:$0xff] %vm364_vm2, %v5797_v15  ;;  %v5796_v28 = vsel %vm5780_vm5, %v5772_v53, %v5788_v5  ;;  %v6384_v20 = vld [vmem:[#allocation2 + $0x1d0] sm:$0xff]  ;;  %8815 = vmatprep.subr.mxu0 %v5813_v10 }
 0x25c   : > { %5805 = vst.msk [vmem:[#allocation2 + $0x210] sm:$0xff] %vm364_vm2, %v5796_v28  ;;  %8792 = vmatprep.mubr.msk.f32.mxu0 %vm364_vm2, %v6384_v20 }
 0x25d   : > { %8793 = vmatmul.mubr.msk.f32.gmra.mrb[18].mxu0 %vm364_vm2, %v6385_v22 }
 0x25e   : > { %v6387_v26 = vld [vmem:[#allocation2 + $0x200] sm:$0xff] }
 0x25f   : > { %v6386_v25 = vld [vmem:[#allocation2 + $0x1f0] sm:$0xff] }
 0x260   : > { %8795 = vmatprep.mubr.msk.f32.mxu0 %vm364_vm2, %v6386_v25 }
 0x261   : > { %8796 = vmatmul.mubr.msk.f32.gmra.mrb[20].mxu0 %vm364_vm2, %v6387_v26 }
 0x262   : > { %v6389_v21 = vld [vmem:[#allocation2 + $0x220] sm:$0xff] }
 0x263   : > { %v6388_v27 = vld [vmem:[#allocation2 + $0x210] sm:$0xff] }
 0x264   : > { %8798 = vmatprep.mubr.msk.f32.mxu0 %vm364_vm2, %v6388_v27 }
 0x265   : > { %8799 = vmatmul.mubr.msk.f32.gmra.mrb[22].mxu0 %vm364_vm2, %v6389_v21 }
 0x266   : > { %8803 = vmatprep.mubr.msk.f32.mxu0 %vm364_vm2, %v6527_v30 }
 0x269   : > { %8804 = vmatmul.mubr.msk.f32.vlgmr.msra.gmra.mrb[16].mxu0 %vm364_vm2, %v6528_v32 }
 0x26a   : > { %8816 = vmatpush3.msra.mxu0 %v5813_v10  ;;  %8806 = vmatprep.mubr.msk.f32.mxu0 %vm364_vm2, %v6529_v34 }
 0x26b   : > { %8829 = vmatprep.subr.mxu0 %v5814_v33 }
 0x26d   : > { %8807 = vmatmul.mubr.msk.f32.gmra.mrb[18].mxu0 %vm364_vm2, %v6530_v36 }
 0x26e   : > { %8809 = vmatprep.mubr.msk.f32.mxu0 %vm364_vm2, %v6531_v3 }
 0x271   : > { %8810 = vmatmul.mubr.msk.f32.gmra.mrb[20].mxu0 %vm364_vm2, %v6532_v37 }
 0x272   : > { %8812 = vmatprep.mubr.msk.f32.mxu0 %vm364_vm2, %v6533_v38 }
 0x275   : > { %8813 = vmatmul.mubr.msk.f32.gmra.mrb[22].mxu0 %vm364_vm2, %v6534_v39 }
 0x276   : > { %8817 = vmatprep.mubr.msk.f32.mxu0 %vm364_vm2, %v10553_v57  ;;  %v6679_v57 = vld [vmem:[#allocation2 + $0x80] sm:$0xff] }
 0x279   : > { %8818 = vmatmul.mubr.msk.f32.vlgmr.msra.gmra.mrb[16].mxu0 %vm364_vm2, %v10560_v60 }
 0x27a   : > { %8830 = vmatpush3.msra.mxu0 %v5814_v33  ;;  %8820 = vmatprep.mubr.msk.f32.mxu0 %vm364_vm2, %v10564_v61 }
 0x27b   : > { %8843 = vmatprep.subr.mxu0 %v5815_v40 }
 0x27d   : > { %8821 = vmatmul.mubr.msk.f32.gmra.mrb[18].mxu0 %vm364_vm2, %v10568_v62 }
 0x27e   : > { %8823 = vmatprep.mubr.msk.f32.mxu0 %vm364_vm2, %v10572_v63 }
 0x281   : > { %8824 = vmatmul.mubr.msk.f32.gmra.mrb[20].mxu0 %vm364_vm2, %v10576_v59 }
 0x282   : > { %8826 = vmatprep.mubr.msk.f32.mxu0 %vm364_vm2, %v10580_v4 }
 0x285   : > { %8827 = vmatmul.mubr.msk.f32.gmra.mrb[22].mxu0 %vm364_vm2, %v6679_v57 }
 0x286   : > { %8831 = vmatprep.mubr.msk.f32.mxu0 %vm364_vm2, %v10510_v23  ;;  %v6824_v23 = vld [vmem:[#allocation2 + $0x110] sm:$0xff] }
 0x289   : > { %8832 = vmatmul.mubr.msk.f32.vlgmr.msra.gmra.mrb[16].mxu0 %vm364_vm2, %v10521_v47  ;;  %v6969_v47 = vld [vmem:[#allocation2 + $0x81] sm:$0xff] }
 0x28a   : > { %8844 = vmatpush3.msra.mxu0 %v5815_v40  ;;  %8834 = vmatprep.mubr.msk.f32.mxu0 %vm364_vm2, %v10528_v18  ;;  %v7815_v18 = vld [vmem:[%s10800_s7] ss:$0 sm:$0xff] }
 0x28d   : > { %8835 = vmatmul.mubr.msk.f32.gmra.mrb[18].mxu0 %vm364_vm2, %v10534_v19 }
 0x28e   : > { %8837 = vmatprep.mubr.msk.f32.mxu0 %vm364_vm2, %v10540_v46 }
 0x291   : > { %8838 = vmatmul.mubr.msk.f32.gmra.mrb[20].mxu0 %vm364_vm2, %v10544_v54 }
 0x292   : > { %8840 = vmatprep.mubr.msk.f32.mxu0 %vm364_vm2, %v10548_v56 }
 0x295   : > { %8841 = vmatmul.mubr.msk.f32.gmra.mrb[22].mxu0 %vm364_vm2, %v6824_v23 }
 0x296   : > { %8845 = vmatprep.mubr.msk.f32.mxu0 %vm364_vm2, %v10585_v11 }
 0x299   : > { %8846 = vmatmul.mubr.msk.f32.vlgmr.msra.gmra.mrb[16].mxu0 %vm364_vm2, %v10592_v0 }
 0x29a   : > { %8848 = vmatprep.mubr.msk.f32.mxu0 %vm364_vm2, %v10596_v6 }
 0x29d   : > { %8849 = vmatmul.mubr.msk.f32.gmra.mrb[18].mxu0 %vm364_vm2, %v10600_v7 }
 0x29e   : > { %8851 = vmatprep.mubr.msk.f32.mxu0 %vm364_vm2, %v10604_v8 }
 0x2a1   : > { %8852 = vmatmul.mubr.msk.f32.gmra.mrb[20].mxu0 %vm364_vm2, %v10608_v2 }
 0x2a2   : > { %8854 = vmatprep.mubr.msk.f32.mxu0 %vm364_vm2, %v10612_v13 }
 0x2a5   : > { %8855 = vmatmul.mubr.msk.f32.gmra.mrb[22].mxu0 %vm364_vm2, %v6969_v47 }
 0x36c   : > { %v8847_v19 = vpop.f32.mrb[16].mxu0 }
 0x36d   : > { %v7114_v46 = vadd.f32 %v8847_v19, %v7815_v18  ;;  %v7060_v54 = vpop.f32.mrb[17].mxu0 }
 0x36e   : > { %v7113_v56 = vadd.f32 %v7815_v18, %v7060_v54 }
 0x36f   : > { %vm7122_vm6 = vcmp.ge.f32.partialorder %v7114_v46, 0.0  ;;  %v7130_v60 = vmul.f32 0.2, %v7114_v46 }
 0x370   : > { %vm7121_vm7 = vcmp.ge.f32.partialorder %v7113_v56, 0.0  ;;  %v7129_v61 = vmul.f32 0.2, %v7113_v56  ;;  %v8850_v62 = vpop.f32.mrb[18].mxu0 }
 0x371   : > { %v7138_v63 = vsel %vm7122_vm6, %v7114_v46, %v7130_v60  ;;  %v7116_v59 = vadd.f32 %v8850_v62, %v7815_v18  ;;  %v7070_v4 = vpop.f32.mrb[19].mxu0 }
 0x372   : > { %7146 = vst.msk [vmem:[%s10723_s23 + $0x8] sm:$0xff] %vm364_vm2, %v7138_v63  ;;  %v7137_v11 = vsel %vm7121_vm7, %v7113_v56, %v7129_v61  ;;  %v7115_v0 = vadd.f32 %v7815_v18, %v7070_v4 }
 0x373   : > { %7145 = vst.msk [vmem:[%s10723_s23] sm:$0xff] %vm364_vm2, %v7137_v11  ;;  %vm7124_vm8 = vcmp.ge.f32.partialorder %v7116_v59, 0.0  ;;  %v7132_v6 = vmul.f32 0.2, %v7116_v59 }
 0x374   : > { %vm7123_vm9 = vcmp.ge.f32.partialorder %v7115_v0, 0.0  ;;  %v7131_v7 = vmul.f32 0.2, %v7115_v0  ;;  %v8853_v8 = vpop.f32.mrb[20].mxu0 }
 0x375   : > { %v7140_v2 = vsel %vm7124_vm8, %v7116_v59, %v7132_v6  ;;  %v7118_v13 = vadd.f32 %v8853_v8, %v7815_v18  ;;  %v7080_v41 = vpop.f32.mrb[21].mxu0 }
 0x376   : > { %7148 = vst.msk [vmem:[%s10723_s23 + $0x18] sm:$0xff] %vm364_vm2, %v7140_v2  ;;  %v7139_v42 = vsel %vm7123_vm9, %v7115_v0, %v7131_v7  ;;  %v7117_v43 = vadd.f32 %v7815_v18, %v7080_v41 }
 0x377   : > { %7147 = vst.msk [vmem:[%s10723_s23 + $0x10] sm:$0xff] %vm364_vm2, %v7139_v42  ;;  %vm7126_vm10 = vcmp.ge.f32.partialorder %v7118_v13, 0.0  ;;  %v7134_v44 = vmul.f32 0.2, %v7118_v13 }
 0x378   : > { %vm7125_vm11 = vcmp.ge.f32.partialorder %v7117_v43, 0.0  ;;  %v7133_v45 = vmul.f32 0.2, %v7117_v43  ;;  %v8856_v9 = vpop.f32.mrb[22].mxu0 }
 0x379   : > { %v7142_v35 = vsel %vm7126_vm10, %v7118_v13, %v7134_v44  ;;  %v7120_v50 = vadd.f32 %v8856_v9, %v7815_v18  ;;  %v7090_v24 = vpop.f32.mrb[23].mxu0 }
 0x37a   : > { %7150 = vst.msk [vmem:[%s10723_s23 + $0x28] sm:$0xff] %vm364_vm2, %v7142_v35  ;;  %v7141_v29 = vsel %vm7125_vm11, %v7117_v43, %v7133_v45  ;;  %v7119_v1 = vadd.f32 %v7815_v18, %v7090_v24 }
 0x37b   : > { %7149 = vst.msk [vmem:[%s10723_s23 + $0x20] sm:$0xff] %vm364_vm2, %v7141_v29  ;;  %vm7128_vm12 = vcmp.ge.f32.partialorder %v7120_v50, 0.0  ;;  %v7136_v12 = vmul.f32 0.2, %v7120_v50 }
 0x37c   : > { %vm7127_vm13 = vcmp.ge.f32.partialorder %v7119_v1, 0.0  ;;  %v7135_v14 = vmul.f32 0.2, %v7119_v1 }
 0x37d   : > { %v7144_v48 = vsel %vm7128_vm12, %v7120_v50, %v7136_v12 }
 0x37e   : > { %7152 = vst.msk [vmem:[%s10723_s23 + $0x38] sm:$0xff] %vm364_vm2, %v7144_v48  ;;  %v7143_v49 = vsel %vm7127_vm13, %v7119_v1, %v7135_v14 }
 0x37f   : > { %7151 = vst.msk [vmem:[%s10723_s23 + $0x30] sm:$0xff] %vm364_vm2, %v7143_v49 }
 0x380   : > { %9239 = shalt.err (!%p9236_p3)
}
 0x381   : > { %s9240_s22 = scalar_lea.hbm %s10742_s12, 1024  ;;  %s9244_s23 = scalar_lea.hbm %s10801_s8, 2048 }
 0x382   : > { %p9241_p4 = scmp.ne.s32.totalorder %s10742_s12, %s9240_s22  ;;  %p9245_p9 = scmp.lt.u32.totalorder %s10742_s12, %s10801_s8 }
 0x383   : > { %p9246_p10 = scmp.lt.u32.totalorder %s9244_s23, %s9240_s22  ;;  %p9248_p12 = scmp.lt.u32.totalorder %s9240_s22, %s10742_s12 }
 0x384   : > { %p9242_p7 = pnand %p9241_p4, %p9377_p5 }
 0x385   : > { %p9247_p11 = por %p9246_p10, %p9245_p9 }
 0x386   : > { %p9243_p8 = pneg %p9242_p7 }
 0x387   : > { %p9249_p13 = por %p9248_p12, %p9247_p11 }
 0x389   : > { %p9250_p0 = pnand %p9249_p13, %p9243_p8 }
 0x38b   : > { %9253 = shalt.err (!%p9250_p0)
}
 0x38c   : > { %s9292_s10 = smov 128   ;;  %s9293_s13 = smov 8  }
 0x38d   : > { %9180 = dma.vmem_to_hbm [thread:$0]  (%p9377_p5), %s10744_s18, 1024, %s10742_s12, %s10752_s9, %s9292_s10, %s9292_s10, %s9293_s13  }
 0x38e PF: > { %p9186_p1 = scmp.ge.s32.totalorder %s9288_s30, 2  ;;  %s7182_s17 = sand.u32 1, %s9276_s27  }
 0x38f   : > { %s7183_s19 = scalar_lea.sflag [#allocation4], %s7182_s17 }
 0x390   : > { %p9183_p2 = pnand %p9186_p1, %p9381_p6 }
 0x392   : > { %9271 = dma.done.wait (!%p9183_p2), %s7183_s19, 1024  }
 0x393   : > { %9273 = vsyncadd (!%p9183_p2), %s7183_s19, 4294966272  ;;  %p18_p3 = scmp.ge.s32.totalorder %s9364_s11, 4   ;;  %s10846_s27 = smov %s9280_s28 }
 0x394   : > { %s10847_s28 = smov %s9284_s29  ;;  %s10848_s29 = smov %s9375_s14 }
 0x395   : > { %s10849_s30 = smov %s9364_s11  ;;  %20 = sbr.rel (!%p18_p3) target bundleno = 3 (0x3), region = 105 }
 0x39c   :  { %7188 = vsyncpa [#allocation4], 1 }
 0x39d   :  { %7190 = vsyncpa [#allocation4 + $0x1], 1 }

</bundles_post_ra>
